<compile_context>
chip_gen: v7x
topology: tpu7x:2x2x1
jax: 0.10.0
libtpu: 0.0.40
codegen_flags: <defaults>
</compile_context>

<pallas_src>
import numpy as np
import jax
import jax.numpy as jnp
from jax import lax
from jax.experimental import pallas as pl
from jax.experimental.pallas import tpu as pltpu


# --------------------------- fused Pallas kernel -----------------------------

def _vqvae_kernel(x_ref,
                  a1_ref, r1_ref, g1_ref, be1_ref,
                  a2_ref, r2_ref, g2_ref, be2_ref,
                  g16_ref, g16t_ref, g4_ref, g4t_ref,
                  bdpre_ref, bpre_ref,
                  cbt_ref, p_ref, e_ref,
                  bdpost_ref, bpost_ref,
                  at1_ref, rt1_ref, g3_ref, be3_ref,
                  at2_ref, rt2_ref, bd2_ref,
                  out_ref, tot_ref, rec_ref, cbl_ref, cml_ref):
    f32 = jnp.float32
    # static widths derived from the constant-matrix shapes
    wh = r1_ref.shape[2] // 16      # spatial width after conv1 (= W/2)
    wq = r2_ref.shape[2] // 4       # spatial width at the quantizer (= W/4)

    def conv(x, a_ref, r_ref):
        # y = sum_kh A_kh @ (x @ R_kh): the spatial gather/scatter and the
        # (kh, kw, Cin)->Cout contraction are encoded in constant matrices,
        # so each term is two plain MXU matmuls on VMEM-resident slabs.
        acc = None
        for kh in range(4):
            t = jnp.dot(x, r_ref[kh], preferred_element_type=f32)
            t = jnp.dot(a_ref[kh], t, preferred_element_type=f32)
            acc = t if acc is None else acc + t
        return acc

    def bn_relu(y, g_ref, gt_ref, w, gamma, beta):
        # train-mode BatchNorm2d (biased batch stats, eps=1e-5) over all
        # N*H*W positions of each channel, then ReLU.  Channel sums are
        # formed with a constant (W*C, C) group matrix (columns are (w, c)).
        n = float(y.shape[0] * w)
        g = g_ref[...]
        gt = gt_ref[...]
        s_ch = jnp.dot(jnp.sum(y, axis=0, keepdims=True), g,
                       preferred_element_type=f32)
        mean_col = jnp.dot(s_ch * (1.0 / n), gt, preferred_element_type=f32)
        d = y - mean_col
        v_ch = jnp.dot(jnp.sum(d * d, axis=0, keepdims=True), g,
                       preferred_element_type=f32) * (1.0 / n)
        inv_col = jnp.dot(lax.rsqrt(v_ch + 1e-5), gt,
                          preferred_element_type=f32)
        return jnp.maximum(d * inv_col * gamma + beta, 0.0)

    x = x_ref[...]                                             # (B*H, W)

    # ---------------- encoder ----------------
    h1 = bn_relu(conv(x, a1_ref, r1_ref), g16_ref, g16t_ref, wh,
                 g1_ref[...], be1_ref[...])                    # (B*H/2, W/2*16)
    h2 = bn_relu(conv(h1, a2_ref, r2_ref), g4_ref, g4t_ref, wq,
                 g2_ref[...], be2_ref[...])                    # (B*H/4, W/4*4)
    z = jnp.dot(h2, bdpre_ref[...],
                preferred_element_type=f32) + bpre_ref[...]    # (B*H/4, W/4*2)

    # -------- vector quantization: K=4 codewords via VPU compares/selects ----
    pm = p_ref[...]            # (2*wq, wq)  channel-column -> pixel pair-sum
    em = e_ref[...]            # (wq, 2*wq)  pixel mask -> channel-column mask
    best_d = None
    q = None
    for k in range(cbt_ref.shape[0]):
        ck = cbt_ref[k:k + 1, :]                               # (1, 2*wq)
        diff = z - ck
        dk = jnp.dot(diff * diff, pm, preferred_element_type=f32)  # per-pixel d^2
        if k == 0:
            best_d = dk
            q = jnp.zeros_like(z) + ck
        else:
            upd = jnp.where(dk < best_d, 1.0, 0.0)             # first-min tiebreak
            updc = jnp.dot(upd, em, preferred_element_type=f32)
            q = updc * ck + (1.0 - updc) * q
            best_d = jnp.minimum(best_d, dk)
    dq = q - z
    cb_loss = jnp.sum(dq * dq, keepdims=True) * (1.0 / float(z.size))
    commit_loss = cb_loss                 # same forward value (detach affects grads only)
    quant_loss = cb_loss + 0.2 * commit_loss
    # straight-through estimator: forward value of quant_out is q.

    # ---------------- decoder ----------------
    d0 = jnp.dot(q, bdpost_ref[...],
                 preferred_element_type=f32) + bpost_ref[...]  # (B*H/4, W/4*4)
    h3 = bn_relu(conv(d0, at1_ref, rt1_ref), g16_ref, g16t_ref, wh,
                 g3_ref[...], be3_ref[...])                    # (B*H/2, W/2*16)
    y = jnp.tanh(conv(h3, at2_ref, rt2_ref) + bd2_ref[...])    # (B*H, W)
    out_ref[...] = y

    # ---------------- fused losses ----------------
    dr = y - x
    rec_loss = jnp.sum(dr * dr, keepdims=True) * (1.0 / float(x.size))
    tot_ref[...] = rec_loss + quant_loss
    rec_ref[...] = rec_loss
    cbl_ref[...] = cb_loss
    cml_ref[...] = commit_loss


# --------------------- constant gather / weight-placement ---------------------

def _conv_select(n_in, k):
    """(n_in//2, n_in) 0/1 matrix: out o gathers input 2*o + k - 1 (pad=1)."""
    n_out = n_in // 2
    m = np.zeros((n_out, n_in), np.float32)
    for o in range(n_out):
        i = 2 * o + k - 1
        if 0 <= i < n_in:
            m[o, i] = 1.0
    return m


def _deconv_scatter(n_in, k):
    """(2*n_in, n_in) 0/1 matrix: input i scatters to output 2*i + k - 1."""
    n_out = 2 * n_in
    m = np.zeros((n_out, n_in), np.float32)
    for i in range(n_in):
        o = 2 * i + k - 1
        if 0 <= o < n_out:
            m[o, i] = 1.0
    return m


def _conv_rows(batch, height):
    return np.stack([np.kron(np.eye(batch, dtype=np.float32),
                             _conv_select(height, kh)) for kh in range(4)])


def _deconv_rows(batch, height):
    return np.stack([np.kron(np.eye(batch, dtype=np.float32),
                             _deconv_scatter(height, kh)) for kh in range(4)])


def _conv_cols(w_conv, width):
    # w_conv: (Cout, Cin, 4, 4) torch Conv2d layout -> R[kh] of shape
    # (W*Cin, (W/2)*Cout), columns/rows ordered (w, c).
    d = np.stack([_conv_select(width, kw).T for kw in range(4)])     # (4, W, W/2)
    t = jnp.einsum('xwv,oihx->hwivo', jnp.asarray(d), w_conv)
    cout, cin = w_conv.shape[0], w_conv.shape[1]
    return t.reshape(4, width * cin, (width // 2) * cout)


def _deconv_cols(w_deconv, width):
    # w_deconv: (Cin, Cout, 4, 4) torch ConvTranspose2d layout -> R[kh] of
    # shape (W*Cin, (2W)*Cout).
    d = np.stack([_deconv_scatter(width, kw).T for kw in range(4)])  # (4, W, 2W)
    t = jnp.einsum('xwv,iohx->hwivo', jnp.asarray(d), w_deconv)
    cin, cout = w_deconv.shape[0], w_deconv.shape[1]
    return t.reshape(4, width * cin, (2 * width) * cout)


# ------------------------------ params & forward ------------------------------

def init_params(key):
    ks = jax.random.split(key, 13)

    def nrm(k, shape, scale=0.1):
        return scale * jax.random.normal(k, shape, dtype=jnp.float32)

    return dict(
        w_enc1=nrm(ks[0], (16, 1, 4, 4)), b_enc1=nrm(ks[1], (16,)),
        g_bn1=jnp.ones((16,), jnp.float32), be_bn1=jnp.zeros((16,), jnp.float32),
        w_enc2=nrm(ks[2], (4, 16, 4, 4)), b_enc2=nrm(ks[3], (4,)),
        g_bn2=jnp.ones((4,), jnp.float32), be_bn2=jnp.zeros((4,), jnp.float32),
        w_pre=nrm(ks[4], (2, 4, 1, 1)), b_pre=nrm(ks[5], (2,)),
        codebook=nrm(ks[6], (4, 2), scale=1.0),
        w_post=nrm(ks[7], (4, 2, 1, 1)), b_post=nrm(ks[8], (4,)),
        # ConvTranspose2d weights are (C_in, C_out, k, k)
        w_dec1=nrm(ks[9], (4, 16, 4, 4)), b_dec1=nrm(ks[10], (16,)),
        g_bn3=jnp.ones((16,), jnp.float32), be_bn3=jnp.zeros((16,), jnp.float32),
        w_dec2=nrm(ks[11], (16, 1, 4, 4)), b_dec2=nrm(ks[12], (1,)),
    )


def vqvae_forward(params, x):
    B, _, H, W = x.shape
    wh, wq = W // 2, W // 4

    # ----- constant 0/1 matrices (shape-only; baked as jit constants) -----
    a1 = jnp.asarray(_conv_rows(B, H))               # (4, B*H/2, B*H)
    a2 = jnp.asarray(_conv_rows(B, H // 2))          # (4, B*H/4, B*H/2)
    at1 = jnp.asarray(_deconv_rows(B, H // 4))       # (4, B*H/2, B*H/4)
    at2 = jnp.asarray(_deconv_rows(B, H // 2))       # (4, B*H,   B*H/2)
    g16 = jnp.asarray(np.tile(np.eye(16, dtype=np.float32), (wh, 1)))  # (wh*16, 16)
    g4 = jnp.asarray(np.tile(np.eye(4, dtype=np.float32), (wq, 1)))    # (wq*4, 4)
    pm = jnp.asarray(np.kron(np.eye(wq, dtype=np.float32),
                             np.ones((2, 1), np.float32)))             # (2*wq, wq)
    em = jnp.asarray(np.kron(np.eye(wq, dtype=np.float32),
                             np.ones((1, 2), np.float32)))             # (wq, 2*wq)

    # ----- weight-derived matrices (one-time parameter prep) -----
    r1 = _conv_cols(params['w_enc1'], W)             # (4, W,      wh*16)
    r2 = _conv_cols(params['w_enc2'], wh)            # (4, wh*16,  wq*4)
    rt1 = _deconv_cols(params['w_dec1'], wq)         # (4, wq*4,   wh*16)
    rt2 = _deconv_cols(params['w_dec2'], wh)         # (4, wh*16,  W)
    # note: conv biases followed by BatchNorm (b_enc1/b_enc2/b_dec1) are
    # dropped -- a per-channel constant before BN is cancelled by the mean.
    bd_pre = jnp.kron(jnp.eye(wq, dtype=jnp.float32),
                      params['w_pre'].reshape(2, 4).T)                 # (wq*4, wq*2)
    bd_post = jnp.kron(jnp.eye(wq, dtype=jnp.float32),
                       params['w_post'].reshape(4, 2).T)               # (wq*2, wq*4)
    bpre_t = jnp.tile(params['b_pre'], wq).reshape(1, 2 * wq)
    bpost_t = jnp.tile(params['b_post'], wq).reshape(1, 4 * wq)
    cbt = jnp.tile(params['codebook'], (1, wq))                        # (4, 2*wq)

    g1t = jnp.tile(params['g_bn1'], wh).reshape(1, 16 * wh)
    be1t = jnp.tile(params['be_bn1'], wh).reshape(1, 16 * wh)
    g2t = jnp.tile(params['g_bn2'], wq).reshape(1, 4 * wq)
    be2t = jnp.tile(params['be_bn2'], wq).reshape(1, 4 * wq)
    g3t = jnp.tile(params['g_bn3'], wh).reshape(1, 16 * wh)
    be3t = jnp.tile(params['be_bn3'], wh).reshape(1, 16 * wh)
    bd2 = params['b_dec2'].reshape(1, 1)

    x2d = x.reshape(B * H, W)     # NCHW with C==1 -> (B*H, W), pure metadata

    out_shapes = (
        jax.ShapeDtypeStruct((B * H, W), jnp.float32),   # reconstruction slab
        jax.ShapeDtypeStruct((1, 1), jnp.float32),       # total loss
        jax.ShapeDtypeStruct((1, 1), jnp.float32),       # recon loss
        jax.ShapeDtypeStruct((1, 1), jnp.float32),       # codebook loss
        jax.ShapeDtypeStruct((1, 1), jnp.float32),       # commitment loss
    )
    y2d, total, rec, cbl, cml = pl.pallas_call(
        _vqvae_kernel,
        out_shape=out_shapes,
        compiler_params=pltpu.CompilerParams(
            vmem_limit_bytes=32 * 1024 * 1024),
    )(x2d,
      a1, r1, g1t, be1t,
      a2, r2, g2t, be2t,
      g16, g16.T, g4, g4.T,
      bd_pre, bpre_t,
      cbt, pm, em,
      bd_post, bpost_t,
      at1, rt1, g3t, be3t,
      at2, rt2, bd2)

    out = y2d.reshape(B, 1, H, W)                      # metadata-only reshape
    return out, total[0, 0], (rec[0, 0], cbl[0, 0], cml[0, 0])


if __name__ == "__main__":
    key = jax.random.PRNGKey(0)
    k_x, k_p = jax.random.split(key)
    # VQVAE expects single-channel images with spatial dims divisible by 4.
    x = jax.random.normal(k_x, (2, 1, 16, 16), dtype=jnp.float32)
    params = init_params(k_p)

    fwd = jax.jit(vqvae_forward)
    out, total_loss, (recon_loss, codebook_loss, commitment_loss) = fwd(params, x)
    jax.block_until_ready((out, total_loss, recon_loss,
                           codebook_loss, commitment_loss))

    assert out.shape == x.shape and out.dtype == jnp.float32
    assert jnp.isfinite(total_loss)
    print("KERNEL_OK")
</pallas_src>

<mosaic_0001>
module attributes {stable_mosaic.version = 11 : i64} {
  func.func @_vqvae_kernel(%arg0: memref<32x16xf32, #tpu.memory_space<vmem>>, %arg1: memref<4x16x32xf32, #tpu.memory_space<vmem>>, %arg2: memref<4x16x128xf32, #tpu.memory_space<vmem>>, %arg3: memref<1x128xf32, #tpu.memory_space<vmem>>, %arg4: memref<1x128xf32, #tpu.memory_space<vmem>>, %arg5: memref<4x8x16xf32, #tpu.memory_space<vmem>>, %arg6: memref<4x128x16xf32, #tpu.memory_space<vmem>>, %arg7: memref<1x16xf32, #tpu.memory_space<vmem>>, %arg8: memref<1x16xf32, #tpu.memory_space<vmem>>, %arg9: memref<128x16xf32, #tpu.memory_space<vmem>>, %arg10: memref<16x128xf32, #tpu.memory_space<vmem>>, %arg11: memref<16x4xf32, #tpu.memory_space<vmem>>, %arg12: memref<4x16xf32, #tpu.memory_space<vmem>>, %arg13: memref<16x8xf32, #tpu.memory_space<vmem>>, %arg14: memref<1x8xf32, #tpu.memory_space<vmem>>, %arg15: memref<4x8xf32, #tpu.memory_space<vmem>>, %arg16: memref<8x4xf32, #tpu.memory_space<vmem>>, %arg17: memref<4x8xf32, #tpu.memory_space<vmem>>, %arg18: memref<8x16xf32, #tpu.memory_space<vmem>>, %arg19: memref<1x16xf32, #tpu.memory_space<vmem>>, %arg20: memref<4x16x8xf32, #tpu.memory_space<vmem>>, %arg21: memref<4x16x128xf32, #tpu.memory_space<vmem>>, %arg22: memref<1x128xf32, #tpu.memory_space<vmem>>, %arg23: memref<1x128xf32, #tpu.memory_space<vmem>>, %arg24: memref<4x32x16xf32, #tpu.memory_space<vmem>>, %arg25: memref<4x128x16xf32, #tpu.memory_space<vmem>>, %arg26: memref<1x1xf32, #tpu.memory_space<vmem>>, %arg27: memref<32x16xf32, #tpu.memory_space<vmem>>, %arg28: memref<1x1xf32, #tpu.memory_space<vmem>>, %arg29: memref<1x1xf32, #tpu.memory_space<vmem>>, %arg30: memref<1x1xf32, #tpu.memory_space<vmem>>, %arg31: memref<1x1xf32, #tpu.memory_space<vmem>>) attributes {dimension_semantics = [], scalar_prefetch = 0 : i64, scratch_operands = 0 : i64, tpu.core_type = #tpu.core_type<tc>} {
    %c0 = arith.constant 0 : index
    %c0_0 = arith.constant 0 : index
    %0 = vector.load %arg0[%c0, %c0_0] : memref<32x16xf32, #tpu.memory_space<vmem>>, vector<32x16xf32>
    %c0_1 = arith.constant 0 : index
    %c0_2 = arith.constant 0 : index
    %c0_3 = arith.constant 0 : index
    %1 = vector.load %arg2[%c0_1, %c0_2, %c0_3] : memref<4x16x128xf32, #tpu.memory_space<vmem>>, vector<1x16x128xf32>
    %2 = vector.shape_cast %1 : vector<1x16x128xf32> to vector<16x128xf32>
    %cst = arith.constant dense<0.000000e+00> : vector<32x128xf32>
    %3 = tpu.matmul %0, %2, %cst {dimension_numbers = #tpu.dot_dimension_numbers<[1], [0], [0], [1], [0, 0, 1, 1], [], []>} : vector<32x16xf32>, vector<16x128xf32>, vector<32x128xf32> -> vector<32x128xf32>
    %c0_4 = arith.constant 0 : index
    %c0_5 = arith.constant 0 : index
    %c0_6 = arith.constant 0 : index
    %4 = vector.load %arg1[%c0_4, %c0_5, %c0_6] : memref<4x16x32xf32, #tpu.memory_space<vmem>>, vector<1x16x32xf32>
    %5 = vector.shape_cast %4 : vector<1x16x32xf32> to vector<16x32xf32>
    %cst_7 = arith.constant dense<0.000000e+00> : vector<16x128xf32>
    %6 = tpu.matmul %5, %3, %cst_7 {dimension_numbers = #tpu.dot_dimension_numbers<[1], [0], [0], [1], [0, 0, 1, 1], [], []>} : vector<16x32xf32>, vector<32x128xf32>, vector<16x128xf32> -> vector<16x128xf32>
    %c1 = arith.constant 1 : index
    %c0_8 = arith.constant 0 : index
    %c0_9 = arith.constant 0 : index
    %7 = vector.load %arg2[%c1, %c0_8, %c0_9] : memref<4x16x128xf32, #tpu.memory_space<vmem>>, vector<1x16x128xf32>
    %8 = vector.shape_cast %7 : vector<1x16x128xf32> to vector<16x128xf32>
    %cst_10 = arith.constant dense<0.000000e+00> : vector<32x128xf32>
    %9 = tpu.matmul %0, %8, %cst_10 {dimension_numbers = #tpu.dot_dimension_numbers<[1], [0], [0], [1], [0, 0, 1, 1], [], []>} : vector<32x16xf32>, vector<16x128xf32>, vector<32x128xf32> -> vector<32x128xf32>
    %c1_11 = arith.constant 1 : index
    %c0_12 = arith.constant 0 : index
    %c0_13 = arith.constant 0 : index
    %10 = vector.load %arg1[%c1_11, %c0_12, %c0_13] : memref<4x16x32xf32, #tpu.memory_space<vmem>>, vector<1x16x32xf32>
    %11 = vector.shape_cast %10 : vector<1x16x32xf32> to vector<16x32xf32>
    %cst_14 = arith.constant dense<0.000000e+00> : vector<16x128xf32>
    %12 = tpu.matmul %11, %9, %cst_14 {dimension_numbers = #tpu.dot_dimension_numbers<[1], [0], [0], [1], [0, 0, 1, 1], [], []>} : vector<16x32xf32>, vector<32x128xf32>, vector<16x128xf32> -> vector<16x128xf32>
    %13 = arith.addf %6, %12 : vector<16x128xf32>
    %c2 = arith.constant 2 : index
    %c0_15 = arith.constant 0 : index
    %c0_16 = arith.constant 0 : index
    %14 = vector.load %arg2[%c2, %c0_15, %c0_16] : memref<4x16x128xf32, #tpu.memory_space<vmem>>, vector<1x16x128xf32>
    %15 = vector.shape_cast %14 : vector<1x16x128xf32> to vector<16x128xf32>
    %cst_17 = arith.constant dense<0.000000e+00> : vector<32x128xf32>
    %16 = tpu.matmul %0, %15, %cst_17 {dimension_numbers = #tpu.dot_dimension_numbers<[1], [0], [0], [1], [0, 0, 1, 1], [], []>} : vector<32x16xf32>, vector<16x128xf32>, vector<32x128xf32> -> vector<32x128xf32>
    %c2_18 = arith.constant 2 : index
    %c0_19 = arith.constant 0 : index
    %c0_20 = arith.constant 0 : index
    %17 = vector.load %arg1[%c2_18, %c0_19, %c0_20] : memref<4x16x32xf32, #tpu.memory_space<vmem>>, vector<1x16x32xf32>
    %18 = vector.shape_cast %17 : vector<1x16x32xf32> to vector<16x32xf32>
    %cst_21 = arith.constant dense<0.000000e+00> : vector<16x128xf32>
    %19 = tpu.matmul %18, %16, %cst_21 {dimension_numbers = #tpu.dot_dimension_numbers<[1], [0], [0], [1], [0, 0, 1, 1], [], []>} : vector<16x32xf32>, vector<32x128xf32>, vector<16x128xf32> -> vector<16x128xf32>
    %20 = arith.addf %13, %19 : vector<16x128xf32>
    %c3 = arith.constant 3 : index
    %c0_22 = arith.constant 0 : index
    %c0_23 = arith.constant 0 : index
    %21 = vector.load %arg2[%c3, %c0_22, %c0_23] : memref<4x16x128xf32, #tpu.memory_space<vmem>>, vector<1x16x128xf32>
    %22 = vector.shape_cast %21 : vector<1x16x128xf32> to vector<16x128xf32>
    %cst_24 = arith.constant dense<0.000000e+00> : vector<32x128xf32>
    %23 = tpu.matmul %0, %22, %cst_24 {dimension_numbers = #tpu.dot_dimension_numbers<[1], [0], [0], [1], [0, 0, 1, 1], [], []>} : vector<32x16xf32>, vector<16x128xf32>, vector<32x128xf32> -> vector<32x128xf32>
    %c3_25 = arith.constant 3 : index
    %c0_26 = arith.constant 0 : index
    %c0_27 = arith.constant 0 : index
    %24 = vector.load %arg1[%c3_25, %c0_26, %c0_27] : memref<4x16x32xf32, #tpu.memory_space<vmem>>, vector<1x16x32xf32>
    %25 = vector.shape_cast %24 : vector<1x16x32xf32> to vector<16x32xf32>
    %cst_28 = arith.constant dense<0.000000e+00> : vector<16x128xf32>
    %26 = tpu.matmul %25, %23, %cst_28 {dimension_numbers = #tpu.dot_dimension_numbers<[1], [0], [0], [1], [0, 0, 1, 1], [], []>} : vector<16x32xf32>, vector<32x128xf32>, vector<16x128xf32> -> vector<16x128xf32>
    %27 = arith.addf %20, %26 : vector<16x128xf32>
    %c0_29 = arith.constant 0 : index
    %c0_30 = arith.constant 0 : index
    %28 = vector.load %arg3[%c0_29, %c0_30] : memref<1x128xf32, #tpu.memory_space<vmem>>, vector<1x128xf32>
    %c0_31 = arith.constant 0 : index
    %c0_32 = arith.constant 0 : index
    %29 = vector.load %arg4[%c0_31, %c0_32] : memref<1x128xf32, #tpu.memory_space<vmem>>, vector<1x128xf32>
    %c0_33 = arith.constant 0 : index
    %c0_34 = arith.constant 0 : index
    %30 = vector.load %arg9[%c0_33, %c0_34] : memref<128x16xf32, #tpu.memory_space<vmem>>, vector<128x16xf32>
    %c0_35 = arith.constant 0 : index
    %c0_36 = arith.constant 0 : index
    %31 = vector.load %arg10[%c0_35, %c0_36] : memref<16x128xf32, #tpu.memory_space<vmem>>, vector<16x128xf32>
    %cst_37 = arith.constant dense<0.000000e+00> : vector<128xf32>
    %32 = vector.multi_reduction <add>, %27, %cst_37 [0] : vector<16x128xf32> to vector<128xf32>
    %33 = vector.shape_cast %32 : vector<128xf32> to vector<1x128xf32>
    %cst_38 = arith.constant dense<0.000000e+00> : vector<1x16xf32>
    %34 = tpu.matmul %33, %30, %cst_38 {dimension_numbers = #tpu.dot_dimension_numbers<[1], [0], [0], [1], [0, 0, 1, 1], [], []>} : vector<1x128xf32>, vector<128x16xf32>, vector<1x16xf32> -> vector<1x16xf32>
    %cst_39 = arith.constant 7.812500e-03 : f32
    %35 = vector.broadcast %cst_39 : f32 to vector<1x16xf32>
    %36 = arith.mulf %34, %35 : vector<1x16xf32>
    %cst_40 = arith.constant dense<0.000000e+00> : vector<1x128xf32>
    %37 = tpu.matmul %36, %31, %cst_40 {dimension_numbers = #tpu.dot_dimension_numbers<[1], [0], [0], [1], [0, 0, 1, 1], [], []>} : vector<1x16xf32>, vector<16x128xf32>, vector<1x128xf32> -> vector<1x128xf32>
    %38 = vector.broadcast %37 : vector<1x128xf32> to vector<16x128xf32>
    %39 = arith.subf %27, %38 : vector<16x128xf32>
    %40 = arith.mulf %39, %39 : vector<16x128xf32>
    %cst_41 = arith.constant dense<0.000000e+00> : vector<128xf32>
    %41 = vector.multi_reduction <add>, %40, %cst_41 [0] : vector<16x128xf32> to vector<128xf32>
    %42 = vector.shape_cast %41 : vector<128xf32> to vector<1x128xf32>
    %cst_42 = arith.constant dense<0.000000e+00> : vector<1x16xf32>
    %43 = tpu.matmul %42, %30, %cst_42 {dimension_numbers = #tpu.dot_dimension_numbers<[1], [0], [0], [1], [0, 0, 1, 1], [], []>} : vector<1x128xf32>, vector<128x16xf32>, vector<1x16xf32> -> vector<1x16xf32>
    %cst_43 = arith.constant 7.812500e-03 : f32
    %44 = vector.broadcast %cst_43 : f32 to vector<1x16xf32>
    %45 = arith.mulf %43, %44 : vector<1x16xf32>
    %cst_44 = arith.constant 9.99999974E-6 : f32
    %46 = vector.broadcast %cst_44 : f32 to vector<1x16xf32>
    %47 = arith.addf %45, %46 : vector<1x16xf32>
    %48 = math.rsqrt %47 : vector<1x16xf32>
    %cst_45 = arith.constant dense<0.000000e+00> : vector<1x128xf32>
    %49 = tpu.matmul %48, %31, %cst_45 {dimension_numbers = #tpu.dot_dimension_numbers<[1], [0], [0], [1], [0, 0, 1, 1], [], []>} : vector<1x16xf32>, vector<16x128xf32>, vector<1x128xf32> -> vector<1x128xf32>
    %50 = vector.broadcast %49 : vector<1x128xf32> to vector<16x128xf32>
    %51 = arith.mulf %39, %50 : vector<16x128xf32>
    %52 = vector.broadcast %28 : vector<1x128xf32> to vector<16x128xf32>
    %53 = arith.mulf %51, %52 : vector<16x128xf32>
    %54 = vector.broadcast %29 : vector<1x128xf32> to vector<16x128xf32>
    %55 = arith.addf %53, %54 : vector<16x128xf32>
    %cst_46 = arith.constant 0.000000e+00 : f32
    %56 = vector.broadcast %cst_46 : f32 to vector<16x128xf32>
    %57 = arith.maximumf %55, %56 : vector<16x128xf32>
    %c0_47 = arith.constant 0 : index
    %c0_48 = arith.constant 0 : index
    %c0_49 = arith.constant 0 : index
    %58 = vector.load %arg6[%c0_47, %c0_48, %c0_49] : memref<4x128x16xf32, #tpu.memory_space<vmem>>, vector<1x128x16xf32>
    %59 = vector.shape_cast %58 : vector<1x128x16xf32> to vector<128x16xf32>
    %cst_50 = arith.constant dense<0.000000e+00> : vector<16x16xf32>
    %60 = tpu.matmul %57, %59, %cst_50 {dimension_numbers = #tpu.dot_dimension_numbers<[1], [0], [0], [1], [0, 0, 1, 1], [], []>} : vector<16x128xf32>, vector<128x16xf32>, vector<16x16xf32> -> vector<16x16xf32>
    %c0_51 = arith.constant 0 : index
    %c0_52 = arith.constant 0 : index
    %c0_53 = arith.constant 0 : index
    %61 = vector.load %arg5[%c0_51, %c0_52, %c0_53] : memref<4x8x16xf32, #tpu.memory_space<vmem>>, vector<1x8x16xf32>
    %62 = vector.shape_cast %61 : vector<1x8x16xf32> to vector<8x16xf32>
    %cst_54 = arith.constant dense<0.000000e+00> : vector<8x16xf32>
    %63 = tpu.matmul %62, %60, %cst_54 {dimension_numbers = #tpu.dot_dimension_numbers<[1], [0], [0], [1], [0, 0, 1, 1], [], []>} : vector<8x16xf32>, vector<16x16xf32>, vector<8x16xf32> -> vector<8x16xf32>
    %c1_55 = arith.constant 1 : index
    %c0_56 = arith.constant 0 : index
    %c0_57 = arith.constant 0 : index
    %64 = vector.load %arg6[%c1_55, %c0_56, %c0_57] : memref<4x128x16xf32, #tpu.memory_space<vmem>>, vector<1x128x16xf32>
    %65 = vector.shape_cast %64 : vector<1x128x16xf32> to vector<128x16xf32>
    %cst_58 = arith.constant dense<0.000000e+00> : vector<16x16xf32>
    %66 = tpu.matmul %57, %65, %cst_58 {dimension_numbers = #tpu.dot_dimension_numbers<[1], [0], [0], [1], [0, 0, 1, 1], [], []>} : vector<16x128xf32>, vector<128x16xf32>, vector<16x16xf32> -> vector<16x16xf32>
    %c1_59 = arith.constant 1 : index
    %c0_60 = arith.constant 0 : index
    %c0_61 = arith.constant 0 : index
    %67 = vector.load %arg5[%c1_59, %c0_60, %c0_61] : memref<4x8x16xf32, #tpu.memory_space<vmem>>, vector<1x8x16xf32>
    %68 = vector.shape_cast %67 : vector<1x8x16xf32> to vector<8x16xf32>
    %cst_62 = arith.constant dense<0.000000e+00> : vector<8x16xf32>
    %69 = tpu.matmul %68, %66, %cst_62 {dimension_numbers = #tpu.dot_dimension_numbers<[1], [0], [0], [1], [0, 0, 1, 1], [], []>} : vector<8x16xf32>, vector<16x16xf32>, vector<8x16xf32> -> vector<8x16xf32>
    %70 = arith.addf %63, %69 : vector<8x16xf32>
    %c2_63 = arith.constant 2 : index
    %c0_64 = arith.constant 0 : index
    %c0_65 = arith.constant 0 : index
    %71 = vector.load %arg6[%c2_63, %c0_64, %c0_65] : memref<4x128x16xf32, #tpu.memory_space<vmem>>, vector<1x128x16xf32>
    %72 = vector.shape_cast %71 : vector<1x128x16xf32> to vector<128x16xf32>
    %cst_66 = arith.constant dense<0.000000e+00> : vector<16x16xf32>
    %73 = tpu.matmul %57, %72, %cst_66 {dimension_numbers = #tpu.dot_dimension_numbers<[1], [0], [0], [1], [0, 0, 1, 1], [], []>} : vector<16x128xf32>, vector<128x16xf32>, vector<16x16xf32> -> vector<16x16xf32>
    %c2_67 = arith.constant 2 : index
    %c0_68 = arith.constant 0 : index
    %c0_69 = arith.constant 0 : index
    %74 = vector.load %arg5[%c2_67, %c0_68, %c0_69] : memref<4x8x16xf32, #tpu.memory_space<vmem>>, vector<1x8x16xf32>
    %75 = vector.shape_cast %74 : vector<1x8x16xf32> to vector<8x16xf32>
    %cst_70 = arith.constant dense<0.000000e+00> : vector<8x16xf32>
    %76 = tpu.matmul %75, %73, %cst_70 {dimension_numbers = #tpu.dot_dimension_numbers<[1], [0], [0], [1], [0, 0, 1, 1], [], []>} : vector<8x16xf32>, vector<16x16xf32>, vector<8x16xf32> -> vector<8x16xf32>
    %77 = arith.addf %70, %76 : vector<8x16xf32>
    %c3_71 = arith.constant 3 : index
    %c0_72 = arith.constant 0 : index
    %c0_73 = arith.constant 0 : index
    %78 = vector.load %arg6[%c3_71, %c0_72, %c0_73] : memref<4x128x16xf32, #tpu.memory_space<vmem>>, vector<1x128x16xf32>
    %79 = vector.shape_cast %78 : vector<1x128x16xf32> to vector<128x16xf32>
    %cst_74 = arith.constant dense<0.000000e+00> : vector<16x16xf32>
    %80 = tpu.matmul %57, %79, %cst_74 {dimension_numbers = #tpu.dot_dimension_numbers<[1], [0], [0], [1], [0, 0, 1, 1], [], []>} : vector<16x128xf32>, vector<128x16xf32>, vector<16x16xf32> -> vector<16x16xf32>
    %c3_75 = arith.constant 3 : index
    %c0_76 = arith.constant 0 : index
    %c0_77 = arith.constant 0 : index
    %81 = vector.load %arg5[%c3_75, %c0_76, %c0_77] : memref<4x8x16xf32, #tpu.memory_space<vmem>>, vector<1x8x16xf32>
    %82 = vector.shape_cast %81 : vector<1x8x16xf32> to vector<8x16xf32>
    %cst_78 = arith.constant dense<0.000000e+00> : vector<8x16xf32>
    %83 = tpu.matmul %82, %80, %cst_78 {dimension_numbers = #tpu.dot_dimension_numbers<[1], [0], [0], [1], [0, 0, 1, 1], [], []>} : vector<8x16xf32>, vector<16x16xf32>, vector<8x16xf32> -> vector<8x16xf32>
    %84 = arith.addf %77, %83 : vector<8x16xf32>
    %c0_79 = arith.constant 0 : index
    %c0_80 = arith.constant 0 : index
    %85 = vector.load %arg7[%c0_79, %c0_80] : memref<1x16xf32, #tpu.memory_space<vmem>>, vector<1x16xf32>
    %c0_81 = arith.constant 0 : index
    %c0_82 = arith.constant 0 : index
    %86 = vector.load %arg8[%c0_81, %c0_82] : memref<1x16xf32, #tpu.memory_space<vmem>>, vector<1x16xf32>
    %c0_83 = arith.constant 0 : index
    %c0_84 = arith.constant 0 : index
    %87 = vector.load %arg11[%c0_83, %c0_84] : memref<16x4xf32, #tpu.memory_space<vmem>>, vector<16x4xf32>
    %c0_85 = arith.constant 0 : index
    %c0_86 = arith.constant 0 : index
    %88 = vector.load %arg12[%c0_85, %c0_86] : memref<4x16xf32, #tpu.memory_space<vmem>>, vector<4x16xf32>
    %cst_87 = arith.constant dense<0.000000e+00> : vector<16xf32>
    %89 = vector.multi_reduction <add>, %84, %cst_87 [0] : vector<8x16xf32> to vector<16xf32>
    %90 = vector.shape_cast %89 : vector<16xf32> to vector<1x16xf32>
    %cst_88 = arith.constant dense<0.000000e+00> : vector<1x4xf32>
    %91 = tpu.matmul %90, %87, %cst_88 {dimension_numbers = #tpu.dot_dimension_numbers<[1], [0], [0], [1], [0, 0, 1, 1], [], []>} : vector<1x16xf32>, vector<16x4xf32>, vector<1x4xf32> -> vector<1x4xf32>
    %cst_89 = arith.constant 3.125000e-02 : f32
    %92 = vector.broadcast %cst_89 : f32 to vector<1x4xf32>
    %93 = arith.mulf %91, %92 : vector<1x4xf32>
    %cst_90 = arith.constant dense<0.000000e+00> : vector<1x16xf32>
    %94 = tpu.matmul %93, %88, %cst_90 {dimension_numbers = #tpu.dot_dimension_numbers<[1], [0], [0], [1], [0, 0, 1, 1], [], []>} : vector<1x4xf32>, vector<4x16xf32>, vector<1x16xf32> -> vector<1x16xf32>
    %95 = vector.broadcast %94 : vector<1x16xf32> to vector<8x16xf32>
    %96 = arith.subf %84, %95 : vector<8x16xf32>
    %97 = arith.mulf %96, %96 : vector<8x16xf32>
    %cst_91 = arith.constant dense<0.000000e+00> : vector<16xf32>
    %98 = vector.multi_reduction <add>, %97, %cst_91 [0] : vector<8x16xf32> to vector<16xf32>
    %99 = vector.shape_cast %98 : vector<16xf32> to vector<1x16xf32>
    %cst_92 = arith.constant dense<0.000000e+00> : vector<1x4xf32>
    %100 = tpu.matmul %99, %87, %cst_92 {dimension_numbers = #tpu.dot_dimension_numbers<[1], [0], [0], [1], [0, 0, 1, 1], [], []>} : vector<1x16xf32>, vector<16x4xf32>, vector<1x4xf32> -> vector<1x4xf32>
    %cst_93 = arith.constant 3.125000e-02 : f32
    %101 = vector.broadcast %cst_93 : f32 to vector<1x4xf32>
    %102 = arith.mulf %100, %101 : vector<1x4xf32>
    %cst_94 = arith.constant 9.99999974E-6 : f32
    %103 = vector.broadcast %cst_94 : f32 to vector<1x4xf32>
    %104 = arith.addf %102, %103 : vector<1x4xf32>
    %105 = math.rsqrt %104 : vector<1x4xf32>
    %cst_95 = arith.constant dense<0.000000e+00> : vector<1x16xf32>
    %106 = tpu.matmul %105, %88, %cst_95 {dimension_numbers = #tpu.dot_dimension_numbers<[1], [0], [0], [1], [0, 0, 1, 1], [], []>} : vector<1x4xf32>, vector<4x16xf32>, vector<1x16xf32> -> vector<1x16xf32>
    %107 = vector.broadcast %106 : vector<1x16xf32> to vector<8x16xf32>
    %108 = arith.mulf %96, %107 : vector<8x16xf32>
    %109 = vector.broadcast %85 : vector<1x16xf32> to vector<8x16xf32>
    %110 = arith.mulf %108, %109 : vector<8x16xf32>
    %111 = vector.broadcast %86 : vector<1x16xf32> to vector<8x16xf32>
    %112 = arith.addf %110, %111 : vector<8x16xf32>
    %cst_96 = arith.constant 0.000000e+00 : f32
    %113 = vector.broadcast %cst_96 : f32 to vector<8x16xf32>
    %114 = arith.maximumf %112, %113 : vector<8x16xf32>
    %c0_97 = arith.constant 0 : index
    %c0_98 = arith.constant 0 : index
    %115 = vector.load %arg13[%c0_97, %c0_98] : memref<16x8xf32, #tpu.memory_space<vmem>>, vector<16x8xf32>
    %cst_99 = arith.constant dense<0.000000e+00> : vector<8x8xf32>
    %116 = tpu.matmul %114, %115, %cst_99 {dimension_numbers = #tpu.dot_dimension_numbers<[1], [0], [0], [1], [0, 0, 1, 1], [], []>} : vector<8x16xf32>, vector<16x8xf32>, vector<8x8xf32> -> vector<8x8xf32>
    %c0_100 = arith.constant 0 : index
    %c0_101 = arith.constant 0 : index
    %117 = vector.load %arg14[%c0_100, %c0_101] : memref<1x8xf32, #tpu.memory_space<vmem>>, vector<1x8xf32>
    %118 = vector.broadcast %117 : vector<1x8xf32> to vector<8x8xf32>
    %119 = arith.addf %116, %118 : vector<8x8xf32>
    %c0_102 = arith.constant 0 : index
    %c0_103 = arith.constant 0 : index
    %120 = vector.load %arg16[%c0_102, %c0_103] : memref<8x4xf32, #tpu.memory_space<vmem>>, vector<8x4xf32>
    %c0_104 = arith.constant 0 : index
    %c0_105 = arith.constant 0 : index
    %121 = vector.load %arg17[%c0_104, %c0_105] : memref<4x8xf32, #tpu.memory_space<vmem>>, vector<4x8xf32>
    %c0_106 = arith.constant 0 : index
    %c0_107 = arith.constant 0 : index
    %122 = vector.load %arg15[%c0_106, %c0_107] : memref<4x8xf32, #tpu.memory_space<vmem>>, vector<1x8xf32>
    %123 = vector.broadcast %122 : vector<1x8xf32> to vector<8x8xf32>
    %124 = arith.subf %119, %123 : vector<8x8xf32>
    %125 = arith.mulf %124, %124 : vector<8x8xf32>
    %cst_108 = arith.constant dense<0.000000e+00> : vector<8x4xf32>
    %126 = tpu.matmul %125, %120, %cst_108 {dimension_numbers = #tpu.dot_dimension_numbers<[1], [0], [0], [1], [0, 0, 1, 1], [], []>} : vector<8x8xf32>, vector<8x4xf32>, vector<8x4xf32> -> vector<8x4xf32>
    %cst_109 = arith.constant 0.000000e+00 : f32
    %127 = vector.broadcast %cst_109 : f32 to vector<8x8xf32>
    %128 = vector.broadcast %122 : vector<1x8xf32> to vector<8x8xf32>
    %129 = arith.addf %127, %128 : vector<8x8xf32>
    %c1_110 = arith.constant 1 : index
    %c0_111 = arith.constant 0 : index
    %130 = vector.load %arg15[%c1_110, %c0_111] : memref<4x8xf32, #tpu.memory_space<vmem>>, vector<1x8xf32>
    %131 = vector.broadcast %130 : vector<1x8xf32> to vector<8x8xf32>
    %132 = arith.subf %119, %131 : vector<8x8xf32>
    %133 = arith.mulf %132, %132 : vector<8x8xf32>
    %cst_112 = arith.constant dense<0.000000e+00> : vector<8x4xf32>
    %134 = tpu.matmul %133, %120, %cst_112 {dimension_numbers = #tpu.dot_dimension_numbers<[1], [0], [0], [1], [0, 0, 1, 1], [], []>} : vector<8x8xf32>, vector<8x4xf32>, vector<8x4xf32> -> vector<8x4xf32>
    %135 = arith.cmpf olt, %134, %126 : vector<8x4xf32>
    %cst_113 = arith.constant 1.000000e+00 : f32
    %cst_114 = arith.constant 0.000000e+00 : f32
    %136 = vector.broadcast %cst_113 : f32 to vector<8x4xf32>
    %137 = vector.broadcast %cst_114 : f32 to vector<8x4xf32>
    %138 = arith.select %135, %136, %137 : vector<8x4xi1>, vector<8x4xf32>
    %cst_115 = arith.constant dense<0.000000e+00> : vector<8x8xf32>
    %139 = tpu.matmul %138, %121, %cst_115 {dimension_numbers = #tpu.dot_dimension_numbers<[1], [0], [0], [1], [0, 0, 1, 1], [], []>} : vector<8x4xf32>, vector<4x8xf32>, vector<8x8xf32> -> vector<8x8xf32>
    %140 = vector.broadcast %130 : vector<1x8xf32> to vector<8x8xf32>
    %141 = arith.mulf %139, %140 : vector<8x8xf32>
    %cst_116 = arith.constant 1.000000e+00 : f32
    %142 = vector.broadcast %cst_116 : f32 to vector<8x8xf32>
    %143 = arith.subf %142, %139 : vector<8x8xf32>
    %144 = arith.mulf %143, %129 : vector<8x8xf32>
    %145 = arith.addf %141, %144 : vector<8x8xf32>
    %146 = arith.minimumf %126, %134 : vector<8x4xf32>
    %c2_117 = arith.constant 2 : index
    %c0_118 = arith.constant 0 : index
    %147 = vector.load %arg15[%c2_117, %c0_118] : memref<4x8xf32, #tpu.memory_space<vmem>>, vector<1x8xf32>
    %148 = vector.broadcast %147 : vector<1x8xf32> to vector<8x8xf32>
    %149 = arith.subf %119, %148 : vector<8x8xf32>
    %150 = arith.mulf %149, %149 : vector<8x8xf32>
    %cst_119 = arith.constant dense<0.000000e+00> : vector<8x4xf32>
    %151 = tpu.matmul %150, %120, %cst_119 {dimension_numbers = #tpu.dot_dimension_numbers<[1], [0], [0], [1], [0, 0, 1, 1], [], []>} : vector<8x8xf32>, vector<8x4xf32>, vector<8x4xf32> -> vector<8x4xf32>
    %152 = arith.cmpf olt, %151, %146 : vector<8x4xf32>
    %cst_120 = arith.constant 1.000000e+00 : f32
    %cst_121 = arith.constant 0.000000e+00 : f32
    %153 = vector.broadcast %cst_120 : f32 to vector<8x4xf32>
    %154 = vector.broadcast %cst_121 : f32 to vector<8x4xf32>
    %155 = arith.select %152, %153, %154 : vector<8x4xi1>, vector<8x4xf32>
    %cst_122 = arith.constant dense<0.000000e+00> : vector<8x8xf32>
    %156 = tpu.matmul %155, %121, %cst_122 {dimension_numbers = #tpu.dot_dimension_numbers<[1], [0], [0], [1], [0, 0, 1, 1], [], []>} : vector<8x4xf32>, vector<4x8xf32>, vector<8x8xf32> -> vector<8x8xf32>
    %157 = vector.broadcast %147 : vector<1x8xf32> to vector<8x8xf32>
    %158 = arith.mulf %156, %157 : vector<8x8xf32>
    %cst_123 = arith.constant 1.000000e+00 : f32
    %159 = vector.broadcast %cst_123 : f32 to vector<8x8xf32>
    %160 = arith.subf %159, %156 : vector<8x8xf32>
    %161 = arith.mulf %160, %145 : vector<8x8xf32>
    %162 = arith.addf %158, %161 : vector<8x8xf32>
    %163 = arith.minimumf %146, %151 : vector<8x4xf32>
    %c3_124 = arith.constant 3 : index
    %c0_125 = arith.constant 0 : index
    %164 = vector.load %arg15[%c3_124, %c0_125] : memref<4x8xf32, #tpu.memory_space<vmem>>, vector<1x8xf32>
    %165 = vector.broadcast %164 : vector<1x8xf32> to vector<8x8xf32>
    %166 = arith.subf %119, %165 : vector<8x8xf32>
    %167 = arith.mulf %166, %166 : vector<8x8xf32>
    %cst_126 = arith.constant dense<0.000000e+00> : vector<8x4xf32>
    %168 = tpu.matmul %167, %120, %cst_126 {dimension_numbers = #tpu.dot_dimension_numbers<[1], [0], [0], [1], [0, 0, 1, 1], [], []>} : vector<8x8xf32>, vector<8x4xf32>, vector<8x4xf32> -> vector<8x4xf32>
    %169 = arith.cmpf olt, %168, %163 : vector<8x4xf32>
    %cst_127 = arith.constant 1.000000e+00 : f32
    %cst_128 = arith.constant 0.000000e+00 : f32
    %170 = vector.broadcast %cst_127 : f32 to vector<8x4xf32>
    %171 = vector.broadcast %cst_128 : f32 to vector<8x4xf32>
    %172 = arith.select %169, %170, %171 : vector<8x4xi1>, vector<8x4xf32>
    %cst_129 = arith.constant dense<0.000000e+00> : vector<8x8xf32>
    %173 = tpu.matmul %172, %121, %cst_129 {dimension_numbers = #tpu.dot_dimension_numbers<[1], [0], [0], [1], [0, 0, 1, 1], [], []>} : vector<8x4xf32>, vector<4x8xf32>, vector<8x8xf32> -> vector<8x8xf32>
    %174 = vector.broadcast %164 : vector<1x8xf32> to vector<8x8xf32>
    %175 = arith.mulf %173, %174 : vector<8x8xf32>
    %cst_130 = arith.constant 1.000000e+00 : f32
    %176 = vector.broadcast %cst_130 : f32 to vector<8x8xf32>
    %177 = arith.subf %176, %173 : vector<8x8xf32>
    %178 = arith.mulf %177, %162 : vector<8x8xf32>
    %179 = arith.addf %175, %178 : vector<8x8xf32>
    %180 = arith.subf %179, %119 : vector<8x8xf32>
    %181 = arith.mulf %180, %180 : vector<8x8xf32>
    %182 = vector.shape_cast %181 : vector<8x8xf32> to vector<1x8x8xf32>
    %cst_131 = arith.constant dense<0.000000e+00> : vector<1xf32>
    %183 = vector.multi_reduction <add>, %182, %cst_131 [1, 2] : vector<1x8x8xf32> to vector<1xf32>
    %184 = vector.shape_cast %183 : vector<1xf32> to vector<1x1x1xf32>
    %185 = vector.extract %184[0, 0, 0] : f32 from vector<1x1x1xf32>
    %186 = vector.broadcast %185 : f32 to vector<1x1xf32>
    %cst_132 = arith.constant 1.562500e-02 : f32
    %187 = vector.broadcast %cst_132 : f32 to vector<1x1xf32>
    %188 = arith.mulf %186, %187 : vector<1x1xf32>
    %cst_133 = arith.constant 2.000000e-01 : f32
    %189 = vector.broadcast %cst_133 : f32 to vector<1x1xf32>
    %190 = arith.mulf %189, %188 : vector<1x1xf32>
    %191 = arith.addf %188, %190 : vector<1x1xf32>
    %c0_134 = arith.constant 0 : index
    %c0_135 = arith.constant 0 : index
    %192 = vector.load %arg18[%c0_134, %c0_135] : memref<8x16xf32, #tpu.memory_space<vmem>>, vector<8x16xf32>
    %cst_136 = arith.constant dense<0.000000e+00> : vector<8x16xf32>
    %193 = tpu.matmul %179, %192, %cst_136 {dimension_numbers = #tpu.dot_dimension_numbers<[1], [0], [0], [1], [0, 0, 1, 1], [], []>} : vector<8x8xf32>, vector<8x16xf32>, vector<8x16xf32> -> vector<8x16xf32>
    %c0_137 = arith.constant 0 : index
    %c0_138 = arith.constant 0 : index
    %194 = vector.load %arg19[%c0_137, %c0_138] : memref<1x16xf32, #tpu.memory_space<vmem>>, vector<1x16xf32>
    %195 = vector.broadcast %194 : vector<1x16xf32> to vector<8x16xf32>
    %196 = arith.addf %193, %195 : vector<8x16xf32>
    %c0_139 = arith.constant 0 : index
    %c0_140 = arith.constant 0 : index
    %c0_141 = arith.constant 0 : index
    %197 = vector.load %arg21[%c0_139, %c0_140, %c0_141] : memref<4x16x128xf32, #tpu.memory_space<vmem>>, vector<1x16x128xf32>
    %198 = vector.shape_cast %197 : vector<1x16x128xf32> to vector<16x128xf32>
    %cst_142 = arith.constant dense<0.000000e+00> : vector<8x128xf32>
    %199 = tpu.matmul %196, %198, %cst_142 {dimension_numbers = #tpu.dot_dimension_numbers<[1], [0], [0], [1], [0, 0, 1, 1], [], []>} : vector<8x16xf32>, vector<16x128xf32>, vector<8x128xf32> -> vector<8x128xf32>
    %c0_143 = arith.constant 0 : index
    %c0_144 = arith.constant 0 : index
    %c0_145 = arith.constant 0 : index
    %200 = vector.load %arg20[%c0_143, %c0_144, %c0_145] : memref<4x16x8xf32, #tpu.memory_space<vmem>>, vector<1x16x8xf32>
    %201 = vector.shape_cast %200 : vector<1x16x8xf32> to vector<16x8xf32>
    %cst_146 = arith.constant dense<0.000000e+00> : vector<16x128xf32>
    %202 = tpu.matmul %201, %199, %cst_146 {dimension_numbers = #tpu.dot_dimension_numbers<[1], [0], [0], [1], [0, 0, 1, 1], [], []>} : vector<16x8xf32>, vector<8x128xf32>, vector<16x128xf32> -> vector<16x128xf32>
    %c1_147 = arith.constant 1 : index
    %c0_148 = arith.constant 0 : index
    %c0_149 = arith.constant 0 : index
    %203 = vector.load %arg21[%c1_147, %c0_148, %c0_149] : memref<4x16x128xf32, #tpu.memory_space<vmem>>, vector<1x16x128xf32>
    %204 = vector.shape_cast %203 : vector<1x16x128xf32> to vector<16x128xf32>
    %cst_150 = arith.constant dense<0.000000e+00> : vector<8x128xf32>
    %205 = tpu.matmul %196, %204, %cst_150 {dimension_numbers = #tpu.dot_dimension_numbers<[1], [0], [0], [1], [0, 0, 1, 1], [], []>} : vector<8x16xf32>, vector<16x128xf32>, vector<8x128xf32> -> vector<8x128xf32>
    %c1_151 = arith.constant 1 : index
    %c0_152 = arith.constant 0 : index
    %c0_153 = arith.constant 0 : index
    %206 = vector.load %arg20[%c1_151, %c0_152, %c0_153] : memref<4x16x8xf32, #tpu.memory_space<vmem>>, vector<1x16x8xf32>
    %207 = vector.shape_cast %206 : vector<1x16x8xf32> to vector<16x8xf32>
    %cst_154 = arith.constant dense<0.000000e+00> : vector<16x128xf32>
    %208 = tpu.matmul %207, %205, %cst_154 {dimension_numbers = #tpu.dot_dimension_numbers<[1], [0], [0], [1], [0, 0, 1, 1], [], []>} : vector<16x8xf32>, vector<8x128xf32>, vector<16x128xf32> -> vector<16x128xf32>
    %209 = arith.addf %202, %208 : vector<16x128xf32>
    %c2_155 = arith.constant 2 : index
    %c0_156 = arith.constant 0 : index
    %c0_157 = arith.constant 0 : index
    %210 = vector.load %arg21[%c2_155, %c0_156, %c0_157] : memref<4x16x128xf32, #tpu.memory_space<vmem>>, vector<1x16x128xf32>
    %211 = vector.shape_cast %210 : vector<1x16x128xf32> to vector<16x128xf32>
    %cst_158 = arith.constant dense<0.000000e+00> : vector<8x128xf32>
    %212 = tpu.matmul %196, %211, %cst_158 {dimension_numbers = #tpu.dot_dimension_numbers<[1], [0], [0], [1], [0, 0, 1, 1], [], []>} : vector<8x16xf32>, vector<16x128xf32>, vector<8x128xf32> -> vector<8x128xf32>
    %c2_159 = arith.constant 2 : index
    %c0_160 = arith.constant 0 : index
    %c0_161 = arith.constant 0 : index
    %213 = vector.load %arg20[%c2_159, %c0_160, %c0_161] : memref<4x16x8xf32, #tpu.memory_space<vmem>>, vector<1x16x8xf32>
    %214 = vector.shape_cast %213 : vector<1x16x8xf32> to vector<16x8xf32>
    %cst_162 = arith.constant dense<0.000000e+00> : vector<16x128xf32>
    %215 = tpu.matmul %214, %212, %cst_162 {dimension_numbers = #tpu.dot_dimension_numbers<[1], [0], [0], [1], [0, 0, 1, 1], [], []>} : vector<16x8xf32>, vector<8x128xf32>, vector<16x128xf32> -> vector<16x128xf32>
    %216 = arith.addf %209, %215 : vector<16x128xf32>
    %c3_163 = arith.constant 3 : index
    %c0_164 = arith.constant 0 : index
    %c0_165 = arith.constant 0 : index
    %217 = vector.load %arg21[%c3_163, %c0_164, %c0_165] : memref<4x16x128xf32, #tpu.memory_space<vmem>>, vector<1x16x128xf32>
    %218 = vector.shape_cast %217 : vector<1x16x128xf32> to vector<16x128xf32>
    %cst_166 = arith.constant dense<0.000000e+00> : vector<8x128xf32>
    %219 = tpu.matmul %196, %218, %cst_166 {dimension_numbers = #tpu.dot_dimension_numbers<[1], [0], [0], [1], [0, 0, 1, 1], [], []>} : vector<8x16xf32>, vector<16x128xf32>, vector<8x128xf32> -> vector<8x128xf32>
    %c3_167 = arith.constant 3 : index
    %c0_168 = arith.constant 0 : index
    %c0_169 = arith.constant 0 : index
    %220 = vector.load %arg20[%c3_167, %c0_168, %c0_169] : memref<4x16x8xf32, #tpu.memory_space<vmem>>, vector<1x16x8xf32>
    %221 = vector.shape_cast %220 : vector<1x16x8xf32> to vector<16x8xf32>
    %cst_170 = arith.constant dense<0.000000e+00> : vector<16x128xf32>
    %222 = tpu.matmul %221, %219, %cst_170 {dimension_numbers = #tpu.dot_dimension_numbers<[1], [0], [0], [1], [0, 0, 1, 1], [], []>} : vector<16x8xf32>, vector<8x128xf32>, vector<16x128xf32> -> vector<16x128xf32>
    %223 = arith.addf %216, %222 : vector<16x128xf32>
    %c0_171 = arith.constant 0 : index
    %c0_172 = arith.constant 0 : index
    %224 = vector.load %arg22[%c0_171, %c0_172] : memref<1x128xf32, #tpu.memory_space<vmem>>, vector<1x128xf32>
    %c0_173 = arith.constant 0 : index
    %c0_174 = arith.constant 0 : index
    %225 = vector.load %arg23[%c0_173, %c0_174] : memref<1x128xf32, #tpu.memory_space<vmem>>, vector<1x128xf32>
    %c0_175 = arith.constant 0 : index
    %c0_176 = arith.constant 0 : index
    %226 = vector.load %arg9[%c0_175, %c0_176] : memref<128x16xf32, #tpu.memory_space<vmem>>, vector<128x16xf32>
    %c0_177 = arith.constant 0 : index
    %c0_178 = arith.constant 0 : index
    %227 = vector.load %arg10[%c0_177, %c0_178] : memref<16x128xf32, #tpu.memory_space<vmem>>, vector<16x128xf32>
    %cst_179 = arith.constant dense<0.000000e+00> : vector<128xf32>
    %228 = vector.multi_reduction <add>, %223, %cst_179 [0] : vector<16x128xf32> to vector<128xf32>
    %229 = vector.shape_cast %228 : vector<128xf32> to vector<1x128xf32>
    %cst_180 = arith.constant dense<0.000000e+00> : vector<1x16xf32>
    %230 = tpu.matmul %229, %226, %cst_180 {dimension_numbers = #tpu.dot_dimension_numbers<[1], [0], [0], [1], [0, 0, 1, 1], [], []>} : vector<1x128xf32>, vector<128x16xf32>, vector<1x16xf32> -> vector<1x16xf32>
    %cst_181 = arith.constant 7.812500e-03 : f32
    %231 = vector.broadcast %cst_181 : f32 to vector<1x16xf32>
    %232 = arith.mulf %230, %231 : vector<1x16xf32>
    %cst_182 = arith.constant dense<0.000000e+00> : vector<1x128xf32>
    %233 = tpu.matmul %232, %227, %cst_182 {dimension_numbers = #tpu.dot_dimension_numbers<[1], [0], [0], [1], [0, 0, 1, 1], [], []>} : vector<1x16xf32>, vector<16x128xf32>, vector<1x128xf32> -> vector<1x128xf32>
    %234 = vector.broadcast %233 : vector<1x128xf32> to vector<16x128xf32>
    %235 = arith.subf %223, %234 : vector<16x128xf32>
    %236 = arith.mulf %235, %235 : vector<16x128xf32>
    %cst_183 = arith.constant dense<0.000000e+00> : vector<128xf32>
    %237 = vector.multi_reduction <add>, %236, %cst_183 [0] : vector<16x128xf32> to vector<128xf32>
    %238 = vector.shape_cast %237 : vector<128xf32> to vector<1x128xf32>
    %cst_184 = arith.constant dense<0.000000e+00> : vector<1x16xf32>
    %239 = tpu.matmul %238, %226, %cst_184 {dimension_numbers = #tpu.dot_dimension_numbers<[1], [0], [0], [1], [0, 0, 1, 1], [], []>} : vector<1x128xf32>, vector<128x16xf32>, vector<1x16xf32> -> vector<1x16xf32>
    %cst_185 = arith.constant 7.812500e-03 : f32
    %240 = vector.broadcast %cst_185 : f32 to vector<1x16xf32>
    %241 = arith.mulf %239, %240 : vector<1x16xf32>
    %cst_186 = arith.constant 9.99999974E-6 : f32
    %242 = vector.broadcast %cst_186 : f32 to vector<1x16xf32>
    %243 = arith.addf %241, %242 : vector<1x16xf32>
    %244 = math.rsqrt %243 : vector<1x16xf32>
    %cst_187 = arith.constant dense<0.000000e+00> : vector<1x128xf32>
    %245 = tpu.matmul %244, %227, %cst_187 {dimension_numbers = #tpu.dot_dimension_numbers<[1], [0], [0], [1], [0, 0, 1, 1], [], []>} : vector<1x16xf32>, vector<16x128xf32>, vector<1x128xf32> -> vector<1x128xf32>
    %246 = vector.broadcast %245 : vector<1x128xf32> to vector<16x128xf32>
    %247 = arith.mulf %235, %246 : vector<16x128xf32>
    %248 = vector.broadcast %224 : vector<1x128xf32> to vector<16x128xf32>
    %249 = arith.mulf %247, %248 : vector<16x128xf32>
    %250 = vector.broadcast %225 : vector<1x128xf32> to vector<16x128xf32>
    %251 = arith.addf %249, %250 : vector<16x128xf32>
    %cst_188 = arith.constant 0.000000e+00 : f32
    %252 = vector.broadcast %cst_188 : f32 to vector<16x128xf32>
    %253 = arith.maximumf %251, %252 : vector<16x128xf32>
    %c0_189 = arith.constant 0 : index
    %c0_190 = arith.constant 0 : index
    %c0_191 = arith.constant 0 : index
    %254 = vector.load %arg25[%c0_189, %c0_190, %c0_191] : memref<4x128x16xf32, #tpu.memory_space<vmem>>, vector<1x128x16xf32>
    %255 = vector.shape_cast %254 : vector<1x128x16xf32> to vector<128x16xf32>
    %cst_192 = arith.constant dense<0.000000e+00> : vector<16x16xf32>
    %256 = tpu.matmul %253, %255, %cst_192 {dimension_numbers = #tpu.dot_dimension_numbers<[1], [0], [0], [1], [0, 0, 1, 1], [], []>} : vector<16x128xf32>, vector<128x16xf32>, vector<16x16xf32> -> vector<16x16xf32>
    %c0_193 = arith.constant 0 : index
    %c0_194 = arith.constant 0 : index
    %c0_195 = arith.constant 0 : index
    %257 = vector.load %arg24[%c0_193, %c0_194, %c0_195] : memref<4x32x16xf32, #tpu.memory_space<vmem>>, vector<1x32x16xf32>
    %258 = vector.shape_cast %257 : vector<1x32x16xf32> to vector<32x16xf32>
    %cst_196 = arith.constant dense<0.000000e+00> : vector<32x16xf32>
    %259 = tpu.matmul %258, %256, %cst_196 {dimension_numbers = #tpu.dot_dimension_numbers<[1], [0], [0], [1], [0, 0, 1, 1], [], []>} : vector<32x16xf32>, vector<16x16xf32>, vector<32x16xf32> -> vector<32x16xf32>
    %c1_197 = arith.constant 1 : index
    %c0_198 = arith.constant 0 : index
    %c0_199 = arith.constant 0 : index
    %260 = vector.load %arg25[%c1_197, %c0_198, %c0_199] : memref<4x128x16xf32, #tpu.memory_space<vmem>>, vector<1x128x16xf32>
    %261 = vector.shape_cast %260 : vector<1x128x16xf32> to vector<128x16xf32>
    %cst_200 = arith.constant dense<0.000000e+00> : vector<16x16xf32>
    %262 = tpu.matmul %253, %261, %cst_200 {dimension_numbers = #tpu.dot_dimension_numbers<[1], [0], [0], [1], [0, 0, 1, 1], [], []>} : vector<16x128xf32>, vector<128x16xf32>, vector<16x16xf32> -> vector<16x16xf32>
    %c1_201 = arith.constant 1 : index
    %c0_202 = arith.constant 0 : index
    %c0_203 = arith.constant 0 : index
    %263 = vector.load %arg24[%c1_201, %c0_202, %c0_203] : memref<4x32x16xf32, #tpu.memory_space<vmem>>, vector<1x32x16xf32>
    %264 = vector.shape_cast %263 : vector<1x32x16xf32> to vector<32x16xf32>
    %cst_204 = arith.constant dense<0.000000e+00> : vector<32x16xf32>
    %265 = tpu.matmul %264, %262, %cst_204 {dimension_numbers = #tpu.dot_dimension_numbers<[1], [0], [0], [1], [0, 0, 1, 1], [], []>} : vector<32x16xf32>, vector<16x16xf32>, vector<32x16xf32> -> vector<32x16xf32>
    %266 = arith.addf %259, %265 : vector<32x16xf32>
    %c2_205 = arith.constant 2 : index
    %c0_206 = arith.constant 0 : index
    %c0_207 = arith.constant 0 : index
    %267 = vector.load %arg25[%c2_205, %c0_206, %c0_207] : memref<4x128x16xf32, #tpu.memory_space<vmem>>, vector<1x128x16xf32>
    %268 = vector.shape_cast %267 : vector<1x128x16xf32> to vector<128x16xf32>
    %cst_208 = arith.constant dense<0.000000e+00> : vector<16x16xf32>
    %269 = tpu.matmul %253, %268, %cst_208 {dimension_numbers = #tpu.dot_dimension_numbers<[1], [0], [0], [1], [0, 0, 1, 1], [], []>} : vector<16x128xf32>, vector<128x16xf32>, vector<16x16xf32> -> vector<16x16xf32>
    %c2_209 = arith.constant 2 : index
    %c0_210 = arith.constant 0 : index
    %c0_211 = arith.constant 0 : index
    %270 = vector.load %arg24[%c2_209, %c0_210, %c0_211] : memref<4x32x16xf32, #tpu.memory_space<vmem>>, vector<1x32x16xf32>
    %271 = vector.shape_cast %270 : vector<1x32x16xf32> to vector<32x16xf32>
    %cst_212 = arith.constant dense<0.000000e+00> : vector<32x16xf32>
    %272 = tpu.matmul %271, %269, %cst_212 {dimension_numbers = #tpu.dot_dimension_numbers<[1], [0], [0], [1], [0, 0, 1, 1], [], []>} : vector<32x16xf32>, vector<16x16xf32>, vector<32x16xf32> -> vector<32x16xf32>
    %273 = arith.addf %266, %272 : vector<32x16xf32>
    %c3_213 = arith.constant 3 : index
    %c0_214 = arith.constant 0 : index
    %c0_215 = arith.constant 0 : index
    %274 = vector.load %arg25[%c3_213, %c0_214, %c0_215] : memref<4x128x16xf32, #tpu.memory_space<vmem>>, vector<1x128x16xf32>
    %275 = vector.shape_cast %274 : vector<1x128x16xf32> to vector<128x16xf32>
    %cst_216 = arith.constant dense<0.000000e+00> : vector<16x16xf32>
    %276 = tpu.matmul %253, %275, %cst_216 {dimension_numbers = #tpu.dot_dimension_numbers<[1], [0], [0], [1], [0, 0, 1, 1], [], []>} : vector<16x128xf32>, vector<128x16xf32>, vector<16x16xf32> -> vector<16x16xf32>
    %c3_217 = arith.constant 3 : index
    %c0_218 = arith.constant 0 : index
    %c0_219 = arith.constant 0 : index
    %277 = vector.load %arg24[%c3_217, %c0_218, %c0_219] : memref<4x32x16xf32, #tpu.memory_space<vmem>>, vector<1x32x16xf32>
    %278 = vector.shape_cast %277 : vector<1x32x16xf32> to vector<32x16xf32>
    %cst_220 = arith.constant dense<0.000000e+00> : vector<32x16xf32>
    %279 = tpu.matmul %278, %276, %cst_220 {dimension_numbers = #tpu.dot_dimension_numbers<[1], [0], [0], [1], [0, 0, 1, 1], [], []>} : vector<32x16xf32>, vector<16x16xf32>, vector<32x16xf32> -> vector<32x16xf32>
    %280 = arith.addf %273, %279 : vector<32x16xf32>
    %c0_221 = arith.constant 0 : index
    %c0_222 = arith.constant 0 : index
    %281 = vector.load %arg26[%c0_221, %c0_222] : memref<1x1xf32, #tpu.memory_space<vmem>>, vector<1x1xf32>
    %282 = vector.broadcast %281 : vector<1x1xf32> to vector<32x16xf32>
    %283 = arith.addf %280, %282 : vector<32x16xf32>
    %284 = math.tanh %283 : vector<32x16xf32>
    %c0_223 = arith.constant 0 : index
    %c0_224 = arith.constant 0 : index
    %285 = vector.load %arg27[%c0_223, %c0_224] : memref<32x16xf32, #tpu.memory_space<vmem>>, vector<32x16xf32>
    tpu.vector_store %arg27[%c0_223, %c0_224], %284 {strides = array<i32>} : memref<32x16xf32, #tpu.memory_space<vmem>>, vector<32x16xf32>,
    %286 = arith.subf %284, %0 : vector<32x16xf32>
    %287 = arith.mulf %286, %286 : vector<32x16xf32>
    %288 = vector.shape_cast %287 : vector<32x16xf32> to vector<1x32x16xf32>
    %cst_225 = arith.constant dense<0.000000e+00> : vector<1xf32>
    %289 = vector.multi_reduction <add>, %288, %cst_225 [1, 2] : vector<1x32x16xf32> to vector<1xf32>
    %290 = vector.shape_cast %289 : vector<1xf32> to vector<1x1x1xf32>
    %291 = vector.extract %290[0, 0, 0] : f32 from vector<1x1x1xf32>
    %292 = vector.broadcast %291 : f32 to vector<1x1xf32>
    %cst_226 = arith.constant 0.001953125 : f32
    %293 = vector.broadcast %cst_226 : f32 to vector<1x1xf32>
    %294 = arith.mulf %292, %293 : vector<1x1xf32>
    %295 = arith.addf %294, %191 : vector<1x1xf32>
    %c0_227 = arith.constant 0 : index
    %c0_228 = arith.constant 0 : index
    %296 = vector.load %arg28[%c0_227, %c0_228] : memref<1x1xf32, #tpu.memory_space<vmem>>, vector<1x1xf32>
    tpu.vector_store %arg28[%c0_227, %c0_228], %295 {strides = array<i32>} : memref<1x1xf32, #tpu.memory_space<vmem>>, vector<1x1xf32>,
    %c0_229 = arith.constant 0 : index
    %c0_230 = arith.constant 0 : index
    %297 = vector.load %arg29[%c0_229, %c0_230] : memref<1x1xf32, #tpu.memory_space<vmem>>, vector<1x1xf32>
    tpu.vector_store %arg29[%c0_229, %c0_230], %294 {strides = array<i32>} : memref<1x1xf32, #tpu.memory_space<vmem>>, vector<1x1xf32>,
    %c0_231 = arith.constant 0 : index
    %c0_232 = arith.constant 0 : index
    %298 = vector.load %arg30[%c0_231, %c0_232] : memref<1x1xf32, #tpu.memory_space<vmem>>, vector<1x1xf32>
    tpu.vector_store %arg30[%c0_231, %c0_232], %188 {strides = array<i32>} : memref<1x1xf32, #tpu.memory_space<vmem>>, vector<1x1xf32>,
    %c0_233 = arith.constant 0 : index
    %c0_234 = arith.constant 0 : index
    %299 = vector.load %arg31[%c0_233, %c0_234] : memref<1x1xf32, #tpu.memory_space<vmem>>, vector<1x1xf32>
    tpu.vector_store %arg31[%c0_233, %c0_234], %188 {strides = array<i32>} : memref<1x1xf32, #tpu.memory_space<vmem>>, vector<1x1xf32>,
    return
  }
}

</mosaic_0001>

<bundles_post_ra>
// kernel: tile.53
= control target key start
LH: loop header
LB: loop body
LE: loop exit
PB: predicated region body
PF: predicated region fallthrough
CT: control target
= control target key end

     0   :  { %s22_s0 = inlined_call_operand.vmem [shape: f32[4], index: 0, kind: input, shape index: {}]   ;;  %s23_s1 = inlined_call_operand.vmem [shape: f32[4,4], index: 1, kind: output, shape index: {}]  }
   0x1   :  { %v4_v0 = vld [vmem:[%s22_s0] ss:$0 sm:$0xff] }
   0x2   :  { %5 = vst [vmem:[%s23_s1] sm:$0xf] %v4_v0 }

// kernel: tile.54
= control target key start
LH: loop header
LB: loop body
LE: loop exit
PB: predicated region body
PF: predicated region fallthrough
CT: control target
= control target key end

     0   :  { %vm7_vm0 = vcmask 31744   ;;  %s37_s8 = smov 4   ;;  %s38_s9 = smov 8   ;;  %vm13_vm1 = vcmask 130144   ;;  %vm19_vm2 = vcmask 97344   ;;  %vm25_vm3 = vcmask 64544   ;;  %s55_s0 = inlined_call_operand.vmem [shape: f32[4,4], index: 0, kind: input, shape index: {}]   ;;  %s56_s1 = inlined_call_operand.vmem [shape: f32[1,16], index: 1, kind: output, shape index: {}]  }
   0x1   :  { %v4_v0 = vld [vmem:[%s55_s0] sm:$0xf]  ;;  %s36_s0 = smov 12  }
   0x2   :  { %5 = vst [vmem:[#allocation1] sm:$0xf] %v4_v0 }
   0x9   :  { %v10_v1 = vld [vmem:[#allocation1 + $0x3] sm:$0x1]   ;;  %v22_v2 = vld [vmem:[#allocation1 + $0x1] sm:$0x1]   ;;  %v6_v3 = vld [vmem:[#allocation1] sm:$0x1]  }
   0xa   :  { %11 = vrot.lane.b32.xlu0 %v10_v1, %s36_s0  ;;  %23 = vrot.lane.b32.xlu1 %v22_v2, %s37_s8  ;;  %v16_v4 = vld [vmem:[#allocation1 + $0x2] sm:$0x1]   ;;  %8 = vst.msk [vmem:[#allocation0] sm:$0x1] %vm7_vm0, %v6_v3  }
   0xe   :  { %17 = vrot.lane.b32.xlu0 %v16_v4, %s38_s9 }
  0x7c   :  { %v12_v5 = vpop.permute.xlu0 %11   ;;  %v24_v6 = vpop.permute.xlu1 %23  }
  0x7d   :  { %14 = vst.msk [vmem:[#allocation0] sm:$0x1] %vm13_vm1, %v12_v5  }
  0x80   :  { %v18_v7 = vpop.permute.xlu0 %17  }
  0x81   :  { %20 = vst.msk [vmem:[#allocation0] sm:$0x1] %vm19_vm2, %v18_v7  }
  0x82   :  { %26 = vst.msk [vmem:[#allocation0] sm:$0x1] %vm25_vm3, %v24_v6  }
  0x89   :  { %v30_v8 = vld [vmem:[#allocation0] sm:$0x1] }
  0x8a   :  { %32 = vst [vmem:[%s56_s1] sm:$0x1] %v30_v8 }

// kernel: tile.49
= control target key start
LH: loop header
LB: loop body
LE: loop exit
PB: predicated region body
PF: predicated region fallthrough
CT: control target
= control target key end

     0   :  { %vm7_vm0 = vcmask 15360   ;;  %s37_s8 = smov 2   ;;  %s38_s9 = smov 4   ;;  %vm13_vm1 = vcmask 64560   ;;  %vm19_vm2 = vcmask 48160   ;;  %vm25_vm3 = vcmask 31760   ;;  %s55_s0 = inlined_call_operand.vmem [shape: f32[4,2], index: 0, kind: input, shape index: {}]   ;;  %s56_s1 = inlined_call_operand.vmem [shape: f32[1,8], index: 1, kind: output, shape index: {}]  }
   0x1   :  { %v4_v0 = vld [vmem:[%s55_s0] sm:$0xf]  ;;  %s36_s0 = smov 6  }
   0x2   :  { %5 = vst [vmem:[#allocation1] sm:$0xf] %v4_v0 }
   0x9   :  { %v10_v1 = vld [vmem:[#allocation1 + $0x3] sm:$0x1]   ;;  %v22_v2 = vld [vmem:[#allocation1 + $0x1] sm:$0x1]   ;;  %v6_v3 = vld [vmem:[#allocation1] sm:$0x1]  }
   0xa   :  { %11 = vrot.lane.b32.xlu0 %v10_v1, %s36_s0  ;;  %23 = vrot.lane.b32.xlu1 %v22_v2, %s37_s8  ;;  %v16_v4 = vld [vmem:[#allocation1 + $0x2] sm:$0x1]   ;;  %8 = vst.msk [vmem:[#allocation0] sm:$0x1] %vm7_vm0, %v6_v3  }
   0xe   :  { %17 = vrot.lane.b32.xlu0 %v16_v4, %s38_s9 }
  0x7c   :  { %v12_v5 = vpop.permute.xlu0 %11   ;;  %v24_v6 = vpop.permute.xlu1 %23  }
  0x7d   :  { %14 = vst.msk [vmem:[#allocation0] sm:$0x1] %vm13_vm1, %v12_v5  }
  0x80   :  { %v18_v7 = vpop.permute.xlu0 %17  }
  0x81   :  { %20 = vst.msk [vmem:[#allocation0] sm:$0x1] %vm19_vm2, %v18_v7  }
  0x82   :  { %26 = vst.msk [vmem:[#allocation0] sm:$0x1] %vm25_vm3, %v24_v6  }
  0x89   :  { %v30_v8 = vld [vmem:[#allocation0] sm:$0x1] }
  0x8a   :  { %32 = vst [vmem:[%s56_s1] sm:$0x1] %v30_v8 }

// kernel: tile.48
= control target key start
LH: loop header
LB: loop body
LE: loop exit
PB: predicated region body
PF: predicated region fallthrough
CT: control target
= control target key end

     0   :  { %s22_s0 = inlined_call_operand.vmem [shape: f32[2], index: 0, kind: input, shape index: {}]   ;;  %s23_s1 = inlined_call_operand.vmem [shape: f32[4,2], index: 1, kind: output, shape index: {}]  }
   0x1   :  { %v4_v0 = vld [vmem:[%s22_s0] ss:$0 sm:$0xff] }
   0x2   :  { %5 = vst [vmem:[%s23_s1] sm:$0xf] %v4_v0 }

// kernel: tile.68
= control target key start
LH: loop header
LB: loop body
LE: loop exit
PB: predicated region body
PF: predicated region fallthrough
CT: control target
= control target key end

     0   :  { %s22_s0 = inlined_call_operand.vmem [shape: f32[16], index: 0, kind: input, shape index: {}]   ;;  %s23_s1 = inlined_call_operand.vmem [shape: f32[8,16], index: 1, kind: output, shape index: {}]  }
   0x1   :  { %v4_v0 = vld [vmem:[%s22_s0] ss:$0 sm:$0xff] }
   0x2   :  { %5 = vst [vmem:[%s23_s1] sm:$0xff] %v4_v0 }

// kernel: tile.69
= control target key start
LH: loop header
LB: loop body
LE: loop exit
PB: predicated region body
PF: predicated region fallthrough
CT: control target
= control target key end

     0   :  { %s67_s10 = smov 112   ;;  %s68_s11 = smov 80   ;;  %vm3_vm0 = vcmask 130048   ;;  %vm9_vm1 = vcmask 1048448   ;;  %vm15_vm2 = vcmask 917248   ;;  %vm21_vm3 = vcmask 786048   ;;  %s111_s0 = inlined_call_operand.vmem [shape: f32[8,16], index: 0, kind: input, shape index: {}]   ;;  %s112_s1 = inlined_call_operand.vmem [shape: f32[1,128], index: 1, kind: output, shape index: {}]  }
   0x1   :  { %v53_v0 = vld [vmem:[%s111_s0 + $0x7] sm:$0x1]   ;;  %v55_v1 = vld [vmem:[%s111_s0 + $0x5] sm:$0x1]   ;;  %v54_v2 = vld [vmem:[%s111_s0 + $0x6] sm:$0x1]  }
   0x2   :  { %7 = vrot.lane.b32.xlu0 %v53_v0, %s67_s10  ;;  %19 = vrot.lane.b32.xlu1 %v55_v1, %s68_s11  ;;  %v56_v3 = vld [vmem:[%s111_s0 + $0x4] sm:$0x1]   ;;  %v2_v4 = vld [vmem:[%s111_s0] sm:$0x1]   ;;  %s69_s18 = smov 96   ;;  %s70_s19 = smov 64  }
   0x3   :  { %4 = vst.msk [vmem:[#allocation0] sm:$0x1] %vm3_vm0, %v2_v4   ;;  %v57_v5 = vld [vmem:[%s111_s0 + $0x3] sm:$0x1]   ;;  %v58_v6 = vld [vmem:[%s111_s0 + $0x2] sm:$0x1]  }
   0x4   :  { %s71_s24 = smov 48   ;;  %s72_s25 = smov 32   ;;  %v59_v7 = vld [vmem:[%s111_s0 + $0x1] sm:$0x1]   ;;  %vm27_vm4 = vcmask 654848   ;;  %vm33_vm5 = vcmask 523648  }
   0x5   :  { %s73_s0 = smov 16   ;;  %vm39_vm6 = vcmask 392448   ;;  %vm45_vm7 = vcmask 261248  }
   0x6   :  { %13 = vrot.lane.b32.xlu0 %v54_v2, %s69_s18  ;;  %25 = vrot.lane.b32.xlu1 %v56_v3, %s70_s19 }
   0xa   :  { %31 = vrot.lane.b32.xlu0 %v57_v5, %s71_s24  ;;  %37 = vrot.lane.b32.xlu1 %v58_v6, %s72_s25 }
   0xe   :  { %43 = vrot.lane.b32.xlu0 %v59_v7, %s73_s0 }
  0x74   :  { %v8_v8 = vpop.permute.xlu0 %7   ;;  %v20_v9 = vpop.permute.xlu1 %19  }
  0x75   :  { %10 = vst.msk [vmem:[#allocation0] sm:$0x1] %vm9_vm1, %v8_v8  }
  0x78   :  { %v14_v10 = vpop.permute.xlu0 %13   ;;  %v26_v11 = vpop.permute.xlu1 %25  }
  0x79   :  { %16 = vst.msk [vmem:[#allocation0] sm:$0x1] %vm15_vm2, %v14_v10  }
  0x7a   :  { %22 = vst.msk [vmem:[#allocation0] sm:$0x1] %vm21_vm3, %v20_v9  }
  0x7b   :  { %28 = vst.msk [vmem:[#allocation0] sm:$0x1] %vm27_vm4, %v26_v11  }
  0x7c   :  { %v32_v12 = vpop.permute.xlu0 %31   ;;  %v38_v13 = vpop.permute.xlu1 %37  }
  0x7d   :  { %34 = vst.msk [vmem:[#allocation0] sm:$0x1] %vm33_vm5, %v32_v12  }
  0x7e   :  { %40 = vst.msk [vmem:[#allocation0] sm:$0x1] %vm39_vm6, %v38_v13  }
  0x80   :  { %v44_v14 = vpop.permute.xlu0 %43  }
  0x81   :  { %46 = vst.msk [vmem:[#allocation0] sm:$0x1] %vm45_vm7, %v44_v14  }
  0x88   :  { %v50_v15 = vld [vmem:[#allocation0] sm:$0x1] }
  0x89   :  { %52 = vst [vmem:[%s112_s1] sm:$0x1] %v50_v15 }

// kernel: vqvae_forward.1
= control target key start
LH: loop header
LB: loop body
LE: loop exit
PB: predicated region body
PF: predicated region fallthrough
CT: control target
= control target key end

     0   :  { %s6837_s6 = smov 1   ;;  %s6838_s10 = smov 2   ;;  %s7672_s0 = inlined_call_operand.smem [shape: u32[32], index: -1, kind: input, shape index: {}] }
   0x1   :  { %s6887_s5 = sld [smem:[%s7672_s0]]   ;;  %s6839_s14 = smov 3  }
   0x2   :  { %s6892_s9 = sld [smem:[%s7672_s0 + %s6837_s6]]   ;;  %s6840_s18 = smov 4  }
   0x3   :  { %s6897_s13 = sld [smem:[%s7672_s0 + %s6838_s10]]   ;;  %s6841_s22 = smov 5  }
   0x4   :  { %s6902_s17 = sld [smem:[%s7672_s0 + %s6839_s14]]   ;;  %s6842_s26 = smov 6  }
   0x5   :  { %s6907_s21 = sld [smem:[%s7672_s0 + %s6840_s18]]   ;;  %s6843_s30 = smov 7  }
   0x6   :  { %s6912_s25 = sld [smem:[%s7672_s0 + %s6841_s22]]   ;;  %s6844_s4 = smov 8  }
   0x7   :  { %s6917_s29 = sld [smem:[%s7672_s0 + %s6842_s26]]   ;;  %s6845_s10 = smov 9  }
   0x8   :  { %s6922_s3 = sld [smem:[%s7672_s0 + %s6843_s30]]   ;;  %s6846_s15 = smov 10  }
   0x9   :  { %s6927_s8 = sld [smem:[%s7672_s0 + %s6844_s4]]   ;;  %s6847_s20 = smov 11  }
   0xa   :  { %s6932_s14 = sld [smem:[%s7672_s0 + %s6845_s10]]   ;;  %s6848_s26 = smov 12  }
   0xb   :  { %s6937_s19 = sld [smem:[%s7672_s0 + %s6846_s15]]   ;;  %s6849_s1 = smov 13  }
   0xc   :  { %s6942_s24 = sld [smem:[%s7672_s0 + %s6847_s20]]   ;;  %s6850_s7 = smov 14  }
   0xd   :  { %s6947_s30 = sld [smem:[%s7672_s0 + %s6848_s26]]   ;;  %s6851_s15 = smov 15  }
   0xe   :  { %s6952_s6 = sld [smem:[%s7672_s0 + %s6849_s1]]   ;;  %s6852_s22 = smov 16  }
   0xf   :  { %7679 = sst [smem:[#allocation14_spill]] %s6927_s8  ;;  %s6853_s28 = smov 17  }
  0x10   :  { %s6957_s12 = sld [smem:[%s7672_s0 + %s6850_s7]]   ;;  %s6854_s7 = smov 18  }
  0x11   :  { %s6962_s20 = sld [smem:[%s7672_s0 + %s6851_s15]]   ;;  %s6855_s15 = smov 19  }
  0x12   :  { %s6967_s27 = sld [smem:[%s7672_s0 + %s6852_s22]]   ;;  %s6856_s22 = smov 20  }
  0x13   :  { %s6972_s4 = sld [smem:[%s7672_s0 + %s6853_s28]]   ;;  %s6857_s28 = smov 21  }
  0x14   :  { %s6863_s16 = smov 27   ;;  %s6864_s23 = smov 28  }
  0x15   :  { %s6865_s1 = smov 29   ;;  %s6866_s10 = smov 30  }
  0x16   :  { %7680 = sst [smem:[#allocation15_spill]] %s6957_s12 }
  0x17   :  { %7681 = sst [smem:[#allocation16_spill]] %s6962_s20 }
  0x18   :  { %7682 = sst [smem:[#allocation17_spill]] %s6967_s27 }
  0x19   :  { %7683 = sst [smem:[#allocation18_spill]] %s6972_s4 }
  0x1a   :  { %s6977_s12 = sld [smem:[%s7672_s0 + %s6854_s7]]   ;;  %s6858_s7 = smov 22  }
  0x1b   :  { %s6982_s20 = sld [smem:[%s7672_s0 + %s6855_s15]]   ;;  %s6859_s15 = smov 23  }
  0x1c   :  { %s6987_s27 = sld [smem:[%s7672_s0 + %s6856_s22]]   ;;  %s6860_s22 = smov 24  }
  0x1d   :  { %s6992_s4 = sld [smem:[%s7672_s0 + %s6857_s28]]   ;;  %s6861_s28 = smov 25  }
  0x1e   :  { %s7035_s8 = sld [smem:[%s7672_s0 + %s6866_s10]]  }
  0x20   :  { %7684 = sst [smem:[#allocation19_spill]] %s6977_s12 }
  0x21   :  { %7685 = sst [smem:[#allocation20_spill]] %s6982_s20 }
  0x22   :  { %7686 = sst [smem:[#allocation21_spill]] %s6987_s27 }
  0x23   :  { %7687 = sst [smem:[#allocation22_spill]] %s6992_s4 }
  0x24   :  { %s6997_s12 = sld [smem:[%s7672_s0 + %s6858_s7]]   ;;  %s6862_s7 = smov 26  }
  0x25   :  { %s7002_s20 = sld [smem:[%s7672_s0 + %s6859_s15]]  }
  0x26   :  { %s7007_s27 = sld [smem:[%s7672_s0 + %s6860_s22]]  }
  0x27   :  { %s7012_s4 = sld [smem:[%s7672_s0 + %s6861_s28]]  }
  0x2a   :  { %7688 = sst [smem:[#allocation23_spill]] %s6997_s12 }
  0x2b   :  { %7689 = sst [smem:[#allocation24_spill]] %s7002_s20 }
  0x2c   :  { %7690 = sst [smem:[#allocation25_spill]] %s7007_s27 }
  0x2d   :  { %7691 = sst [smem:[#allocation26_spill]] %s7012_s4 }
  0x2e   :  { %s4853_s12 = sld [smem:[%s7672_s0 + %s6862_s7]]  }
  0x2f   :  { %s7020_s20 = sld [smem:[%s7672_s0 + %s6863_s16]]   ;;  %s6867_s16 = smov 31  }
  0x30   :  { %s7025_s27 = sld [smem:[%s7672_s0 + %s6864_s23]]  }
  0x31   :  { %s7030_s4 = sld [smem:[%s7672_s0 + %s6865_s1]]  }
  0x34   :  { %v69_v0 = vstv %s4853_s12 }
  0x35   :  { %7692 = sst [smem:[#allocation27_spill]] %s7020_s20  ;;  %70 = vst [vmem:[#allocation2] sm:$0x1] %v69_v0 }
  0x36   :  { %s7040_s20 = sld [smem:[%s7672_s0 + %s6867_s16]]  }
  0x37   :  { %71 = vsyncpa [#allocation4], 0 }
  0x38   :  { %72 = vsyncpa [#allocation6], 0  ;;  %v132_v1 = vld [vmem:[%s6897_s13] sm:$0xff]  ;;  %v133_v2 = vld [vmem:[%s6897_s13 + $0x8] sm:$0xff]  ;;  %vm134_vm0 = vcmask 130048  }
  0x39   :  { %v4863_v3 = vld [vmem:[%s6897_s13 + $0x10] sm:$0xff]  ;;  %v6165_v4 = vpack.c.bf16 %v133_v2, %v132_v1  ;;  %v4864_v5 = vld [vmem:[%s6897_s13 + $0x18] sm:$0xff]  ;;  %v7047_v6 = vld [vmem:[%s6887_s5] sm:$0xff] }
  0x3a   :  { %v6169_v7 = vpack.c.bf16 %v4864_v5, %v4863_v3  ;;  %5450 = vmatprep.mubr.msk.f32.mxu0 %vm134_vm0, %v7047_v6  ;;  %5460 = vmatprep.mubr.msk.f32.mxu1 %vm134_vm0, %v7047_v6 }
  0x3b   :  { %73 = vsyncpa [#allocation9], 0  ;;  %6166 = vmatprep.subr.bf16.mxu0 %v6165_v4  ;;  %v7054_v8 = vld [vmem:[%s6887_s5 + $0x8] sm:$0xff]  ;;  %v7057_v9 = vld [vmem:[%s6887_s5 + $0x10] sm:$0xff]  ;;  %vm325_vm1 = vcmask 261120   ;;  %v6868_v51 = vmov 0.0|0.0  }
  0x3c   :  { %6170 = vmatprep.subr.bf16.mxu1 %v6169_v7  ;;  %6168 = vmatpush3.bf16.msra.mxu0 %v6165_v4  ;;  %v7066_v10 = vld [vmem:[%s6887_s5 + $0x18] sm:$0xff]  ;;  %v4869_v11 = vld [vmem:[%s6892_s9 + $0x10] sm:$0xff]  ;;  %v232_v12 = vld [vmem:[%s6892_s9] sm:$0xff]  ;;  %vm6869_vm2 = vmmov 0   ;;  %vm1950_vm3 = vcmask 1043456   ;;  %vm1946_vm4 = vcmask 31744  }
  0x3d   :  { %6172 = vmatpush3.bf16.msra.mxu1 %v6169_v7  ;;  %v4875_v20 = vld [vmem:[%s6897_s13 + $0x20] sm:$0xff]  ;;  %v4876_v21 = vld [vmem:[%s6897_s13 + $0x28] sm:$0xff]  ;;  %v4870_v29 = vld [vmem:[%s6892_s9 + $0x18] sm:$0xff]  ;;  %s7693_s0 = sld [smem:[#allocation14_spill]]  ;;  %vm2297_vm5 = vcmask 64512   ;;  %vm4753_vm9 = vcmask 0  }
  0x3e   :  { %v6189_v27 = vpack.c.bf16 %v4876_v21, %v4875_v20  ;;  %v233_v28 = vld [vmem:[%s6892_s9 + $0x8] sm:$0xff]  ;;  %v4881_v30 = vld [vmem:[%s6892_s9 + $0x20] sm:$0xff]  ;;  %v4885_v40 = vld [vmem:[%s6897_s13 + $0x30] sm:$0xff]  ;;  %v6870_v20 = vmov 0.0   ;;  %s7705_s12 = sld [smem:[#allocation25_spill]]  ;;  %s6872_s23 = smov [#allocation8]  }
  0x3f   :  { %5451 = vmatmul.mubr.msk.f32.vlgmr.msra.gmra.mrb[0].mxu0 %vm134_vm0, %v7054_v8  ;;  %v4886_v41 = vld [vmem:[%s6897_s13 + $0x38] sm:$0xff]  ;;  %v4882_v46 = vld [vmem:[%s6892_s9 + $0x28] sm:$0xff]  ;;  %v4891_v47 = vld [vmem:[%s6892_s9 + $0x30] sm:$0xff]  ;;  %s7695_s13 = sld [smem:[#allocation15_spill]]  ;;  %s4796_s22 = sshll.u32 %s6872_s23, 4  ;;  %s4797_s22 = int_to_ptr.vmem [resolvable:$true] %s4796_s22 }
  0x40   :  { %5461 = vmatmul.mubr.msk.f32.vlgmr.msra.gmra.mrb[0].mxu1 %vm134_vm0, %v7054_v8  ;;  %5453 = vmatprep.mubr.msk.f32.mxu0 %vm134_vm0, %v7057_v9  ;;  %v6201_v45 = vpack.c.bf16 %v4886_v41, %v4885_v40  ;;  %v838_v48 = vld [vmem:[%s6932_s14] sm:$0xff]  ;;  %v839_v49 = vld [vmem:[%s6932_s14 + $0x8] sm:$0xff]  ;;  %v840_v50 = vld [vmem:[%s6932_s14 + $0x10] sm:$0xff]  ;;  %s6721_s26 = scalar_lea.vmem %s4797_s22, 16  ;;  %s6725_s1 = scalar_lea.vmem %s4797_s22, 32 }
  0x41   :  { %5463 = vmatprep.mubr.msk.f32.mxu1 %vm134_vm0, %v7057_v9  ;;  %v7112_v52 = vpack.c.bf16 %v839_v49, %v838_v48  ;;  %v841_v53 = vld [vmem:[%s6932_s14 + $0x18] sm:$0xff]  ;;  %v842_v55 = vld [vmem:[%s6932_s14 + $0x20] sm:$0xff]  ;;  %v843_v56 = vld [vmem:[%s6932_s14 + $0x28] sm:$0xff]  ;;  %p6722_p0 = scmp.ne.s32.totalorder %s4797_s22, %s6721_s26  ;;  %p6726_p1 = scmp.lt.s32.totalorder %s4797_s22, %s4797_s22 }
  0x42   :  { %v7116_v54 = vpack.c.bf16 %v841_v53, %v840_v50  ;;  %v7122_v57 = vpack.c.bf16 %v843_v56, %v842_v55  ;;  %v844_v58 = vld [vmem:[%s6932_s14 + $0x30] sm:$0xff]  ;;  %v845_v59 = vld [vmem:[%s6932_s14 + $0x38] sm:$0xff]  ;;  %p6727_p2 = scmp.lt.s32.totalorder %s6725_s1, %s6721_s26 }
  0x43   :  { %5454 = vmatmul.mubr.msk.f32.gmra.mrb[2].mxu0 %vm134_vm0, %v7066_v10  ;;  %v7128_v60 = vpack.c.bf16 %v845_v59, %v844_v58  ;;  %v4892_v7 = vld [vmem:[%s6892_s9 + $0x38] sm:$0xff]  ;;  %v4899_v59 = vld [vmem:[%s6917_s29 + $0x80] sm:$0xff]  ;;  %s7694_s9 = sld [smem:[#allocation17_spill]] }
  0x44   :  { %5464 = vmatmul.mubr.msk.f32.gmra.mrb[2].mxu1 %vm134_vm0, %v7066_v10  ;;  %5485 = vmatprep.mubr.msk.f32.mxu0 %vm325_vm1, %v232_v12  ;;  %v849_v12 = vld [vmem:[%s6932_s14 + $0x58] sm:$0xff]  ;;  %p6728_p3 = por %p6727_p2, %p6726_p1 }
  0x45   :  { %5474 = vmatprep.mubr.msk.f32.mxu1 %vm325_vm1, %v4869_v11  ;;  %v848_v11 = vld [vmem:[%s6932_s14 + $0x50] sm:$0xff] }
  0x46   :  { %p6729_p4 = pnand %p6728_p3, %p6722_p0 }
 0x112   :  { %v5452_v13 = vpop.f32.mrb[0].mxu0 }
 0x113   :  { %v5462_v14 = vpop.f32.mrb[0].mxu1  ;;  %v213_v15 = vpop.f32.mrb[1].mxu0 }
 0x114   :  { %v6181_v16 = vpack.c.bf16 %v5452_v13, %v213_v15  ;;  %v303_v17 = vpop.f32.mrb[1].mxu1  ;;  %v7144_v13 = vpack.c.bf16 %v849_v12, %v848_v11  ;;  %v851_v15 = vld [vmem:[%s6932_s14 + $0x68] sm:$0xff]  ;;  %v4907_v12 = vld [vmem:[%s6917_s29 + $0xc0] sm:$0xff] }
 0x115   :  { %v6173_v18 = vpack.c.bf16 %v5462_v14, %v303_v17  ;;  %v850_v14 = vld [vmem:[%s6932_s14 + $0x60] sm:$0xff]  ;;  %v852_v17 = vld [vmem:[%s6932_s14 + $0x70] sm:$0xff] }
 0x116   :  { %v5455_v19 = vpop.f32.mrb[2].mxu0  ;;  %6182 = vmatprep.subr.bf16.mxu0 %v6181_v16 }
 0x117   :  { %v5465_v22 = vpop.f32.mrb[2].mxu1  ;;  %6174 = vmatprep.subr.bf16.mxu1 %v6173_v18  ;;  %v223_v23 = vpop.f32.mrb[3].mxu0  ;;  %6184 = vmatpush3.bf16.msra.mxu0 %v6181_v16  ;;  %v7150_v16 = vpack.c.bf16 %v851_v15, %v850_v14  ;;  %v4908_v14 = vld [vmem:[%s6917_s29 + $0xc8] sm:$0xff] }
 0x118   :  { %v6185_v24 = vpack.c.bf16 %v5455_v19, %v223_v23  ;;  %v313_v25 = vpop.f32.mrb[3].mxu1  ;;  %6176 = vmatpush3.bf16.msra.mxu1 %v6173_v18  ;;  %v853_v18 = vld [vmem:[%s6932_s14 + $0x78] sm:$0xff]  ;;  %v6315_v15 = vpack.c.bf16 %v4908_v14, %v4907_v12 }
 0x119   :  { %v6177_v26 = vpack.c.bf16 %v5465_v22, %v313_v25  ;;  %v7156_v19 = vpack.c.bf16 %v853_v18, %v852_v17  ;;  %v4909_v17 = vld [vmem:[%s6917_s29 + $0xd0] sm:$0xff]  ;;  %v4910_v18 = vld [vmem:[%s6917_s29 + $0xd8] sm:$0xff] }
 0x11a   :  { %6186 = vmatprep.subr.bf16.mxu0 %v6185_v24 }
 0x11b   :  { %6178 = vmatprep.subr.bf16.mxu1 %v6177_v26  ;;  %6188 = vmatpush3.bf16.msra.mxu0 %v6185_v24 }
 0x11c   :  { %6180 = vmatpush3.bf16.msra.mxu1 %v6177_v26 }
 0x11d   :  { %6190 = vmatprep.subr.bf16.mxu1 %v6189_v27 }
 0x11e   :  { %5486 = vmatmul.mubr.msk.f32.vlgmr.msra.gmra.mrb[4].mxu0 %vm325_vm1, %v233_v28 }
 0x11f   :  { %5475 = vmatmul.mubr.msk.f32.vlgmr.msra.gmra.mrb[4].mxu1 %vm325_vm1, %v4870_v29  ;;  %5527 = vmatprep.mubr.msk.f32.mxu0 %vm325_vm1, %v4891_v47 }
 0x120   :  { %6192 = vmatpush3.bf16.msra.mxu1 %v6189_v27  ;;  %5492 = vmatprep.mubr.msk.f32.mxu1 %vm134_vm0, %v7047_v6 }
 0x123   :  { %5493 = vmatmul.mubr.msk.f32.vlgmr.msra.gmra.mrb[6].mxu1 %vm134_vm0, %v7054_v8 }
 0x124   :  { %5495 = vmatprep.mubr.msk.f32.mxu1 %vm134_vm0, %v7057_v9 }
 0x127   :  { %5496 = vmatmul.mubr.msk.f32.gmra.mrb[8].mxu1 %vm134_vm0, %v7066_v10 }
 0x128   :  { %5506 = vmatprep.mubr.msk.f32.mxu1 %vm325_vm1, %v4881_v30 }
 0x1f1   :  { %v5487_v31 = vpop.f32.mrb[4].mxu0 }
 0x1f2   :  { %v5476_v32 = vpop.f32.mrb[4].mxu1  ;;  %v479_v33 = vpop.f32.mrb[5].mxu0 }
 0x1f3   :  { %v485_v34 = vadd.f32 %v5487_v31, %v5476_v32  ;;  %v398_v35 = vpop.f32.mrb[5].mxu1  ;;  %v854_v32 = vld [vmem:[%s6937_s19] sm:$0xff] }
 0x1f4   :  { %v480_v36 = vadd.f32 %v479_v33, %v398_v35  ;;  %v855_v33 = vld [vmem:[%s6937_s19 + $0x8] sm:$0xff]  ;;  %s7701_s19 = sld [smem:[#allocation21_spill]] }
 0x1f6   :  { %v5494_v37 = vpop.f32.mrb[6].mxu1 }
 0x1f7   :  { %v557_v38 = vpop.f32.mrb[7].mxu1 }
 0x1f8   :  { %v6193_v39 = vpack.c.bf16 %v5494_v37, %v557_v38  ;;  %v1007_v38 = vlaneseq }
 0x1fa   :  { %v5497_v42 = vpop.f32.mrb[8].mxu1  ;;  %6194 = vmatprep.subr.bf16.mxu1 %v6193_v39 }
 0x1fb   :  { %v567_v43 = vpop.f32.mrb[9].mxu1  ;;  %6196 = vmatpush3.bf16.msra.mxu1 %v6193_v39  ;;  %v1008_v39 = vshrl.u32 %v1007_v38, 7  ;;  %v1201_v38 = vld [vmem:[%s6917_s29 + $0x48] sm:$0xff] }
 0x1fc   :  { %v6197_v44 = vpack.c.bf16 %v5497_v42, %v567_v43 }
 0x1fd   :  { %v7191_v40 = vsub.s32 0, %v1008_v39 }
 0x1fe   :  { %6198 = vmatprep.subr.bf16.mxu1 %v6197_v44 }
 0x1ff   :  { %6200 = vmatpush3.bf16.msra.mxu1 %v6197_v44 }
 0x200   :  { %6202 = vmatprep.subr.bf16.mxu1 %v6201_v45 }
 0x202   :  { %5507 = vmatmul.mubr.msk.f32.vlgmr.msra.gmra.mrb[10].mxu1 %vm325_vm1, %v4882_v46 }
 0x203   :  { %6204 = vmatpush3.bf16.msra.mxu1 %v6201_v45  ;;  %5513 = vmatprep.mubr.msk.f32.mxu1 %vm134_vm0, %v7047_v6 }
 0x204   :  { %6213 = vmatprep.subr.bf16.mxu1 %v6868_v51 }
 0x206   :  { %5514 = vmatmul.mubr.msk.f32.vlgmr.msra.gmra.mrb[12].mxu1 %vm134_vm0, %v7054_v8  ;;  %v846_v8 = vld [vmem:[%s6932_s14 + $0x40] sm:$0xff] }
 0x207   :  { %5516 = vmatprep.mubr.msk.f32.mxu1 %vm134_vm0, %v7057_v9  ;;  %6215 = vmatpush3.bf16.msra.mxu1 %v7112_v52  ;;  %v847_v9 = vld [vmem:[%s6932_s14 + $0x48] sm:$0xff] }
 0x208   :  { %6216 = vmatprep.subr.bf16.mxu1 %v6868_v51 }
 0x20a   :  { %5517 = vmatmul.mubr.msk.f32.gmra.mrb[14].mxu1 %vm134_vm0, %v7066_v10  ;;  %v7138_v10 = vpack.c.bf16 %v847_v9, %v846_v8  ;;  %v4905_v8 = vld [vmem:[%s6917_s29 + $0xb0] sm:$0xff]  ;;  %v4906_v9 = vld [vmem:[%s6917_s29 + $0xb8] sm:$0xff] }
 0x20b   :  { %6218 = vmatpush3.bf16.msra.mxu1 %v7116_v54  ;;  %5562 = vmatprep.mubr.msk.f32.mxu1 %vm6869_vm2, %v6870_v20  ;;  %v6311_v11 = vpack.c.bf16 %v4906_v9, %v4905_v8  ;;  %v4898_v8 = vld [vmem:[%s6907_s21] ss:$0 sm:$0xff]  ;;  %s7697_s21 = sld [smem:[#allocation18_spill]] }
 0x20c   :  { %6219 = vmatprep.subr.bf16.mxu1 %v6868_v51 }
 0x20f   :  { %6221 = vmatpush3.bf16.msra.mxu1 %v7122_v57 }
 0x210   :  { %6222 = vmatprep.subr.bf16.mxu1 %v6868_v51 }
 0x213   :  { %6224 = vmatpush3.bf16.msra.mxu1 %v7128_v60 }
 0x214   :  { %6225 = vmatprep.subr.bf16.mxu1 %v6868_v51 }
 0x217   :  { %6227 = vmatpush3.bf16.msra.mxu1 %v7138_v10 }
 0x218   :  { %6228 = vmatprep.subr.bf16.mxu1 %v6868_v51 }
 0x21b   :  { %6230 = vmatpush3.bf16.msra.mxu1 %v7144_v13 }
 0x21c   :  { %6231 = vmatprep.subr.bf16.mxu1 %v6868_v51 }
 0x21f   :  { %6233 = vmatpush3.bf16.msra.mxu1 %v7150_v16 }
 0x220   :  { %6234 = vmatprep.subr.bf16.mxu1 %v6868_v51 }
 0x223   :  { %6236 = vmatpush3.bf16.msra.mxu1 %v7156_v19 }
 0x224   :  { %6264 = vmatprep.subr.bf16.mxu1 %v6868_v51 }
 0x2d5   :  { %v5508_v61 = vpop.f32.mrb[10].mxu1 }
 0x2d6   :  { %v661_v62 = vadd.f32 %v5508_v61, %v485_v34  ;;  %v651_v63 = vpop.f32.mrb[11].mxu1  ;;  %v7168_v34 = vpack.c.bf16 %v855_v33, %v854_v32  ;;  %v4900_v61 = vld [vmem:[%s6917_s29 + $0x88] sm:$0xff]  ;;  %v1198_v33 = vld [vmem:[%s6917_s29 + $0x30] sm:$0xff] }
 0x2d7   :  { %v660_v0 = vadd.f32 %v651_v63, %v480_v36  ;;  %v6299_v63 = vpack.c.bf16 %v4900_v61, %v4899_v59  ;;  %v1206_v59 = vld [vmem:[%s6917_s29 + $0x70] sm:$0xff]  ;;  %v1207_v61 = vld [vmem:[%s6917_s29 + $0x78] sm:$0xff] }
 0x2d9   :  { %v5515_v1 = vpop.f32.mrb[12].mxu1 }
 0x2da   :  { %v731_v2 = vpop.f32.mrb[13].mxu1 }
 0x2db   :  { %v6205_v3 = vpack.c.bf16 %v5515_v1, %v731_v2  ;;  %v4901_v1 = vld [vmem:[%s6917_s29 + $0x90] sm:$0xff]  ;;  %v4902_v2 = vld [vmem:[%s6917_s29 + $0x98] sm:$0xff] }
 0x2dd   :  { %v5518_v4 = vpop.f32.mrb[14].mxu1  ;;  %6206 = vmatprep.subr.bf16.mxu0 %v6205_v3 }
 0x2de   :  { %v741_v5 = vpop.f32.mrb[15].mxu1  ;;  %6208 = vmatpush3.bf16.msra.mxu0 %v6205_v3 }
 0x2df   :  { %v6209_v6 = vpack.c.bf16 %v5518_v4, %v741_v5  ;;  %v6303_v4 = vpack.c.bf16 %v4902_v2, %v4901_v1  ;;  %v4903_v5 = vld [vmem:[%s6917_s29 + $0xa0] sm:$0xff] }
 0x2e1   :  { %6210 = vmatprep.subr.bf16.mxu0 %v6209_v6 }
 0x2e2   :  { %6212 = vmatpush3.bf16.msra.mxu0 %v6209_v6  ;;  %v4904_v6 = vld [vmem:[%s6917_s29 + $0xa8] sm:$0xff] }
 0x2e3   :  { %6237 = vmatprep.subr.bf16.mxu0 %v6868_v51 }
 0x2e5   :  { %5528 = vmatmul.mubr.msk.f32.vlgmr.msra.gmra.mrb[6].mxu0 %vm325_vm1, %v4892_v7  ;;  %v6307_v7 = vpack.c.bf16 %v4904_v6, %v4903_v5  ;;  %v4897_v5 = vld [vmem:[%s6902_s17] ss:$0 sm:$0xff]  ;;  %s7696_s17 = sld [smem:[#allocation16_spill]] }
 0x2e6   :  { %5569 = vmatprep.mubr.msk.f32.mxu0 %vm6869_vm2, %v6870_v20  ;;  %6239 = vmatpush3.bf16.msra.mxu0 %v7168_v34 }
 0x2e7   :  { %6240 = vmatprep.subr.bf16.mxu0 %v6868_v51 }
 0x3b8   :  { %v5529_v21 = vpop.f32.mrb[6].mxu0 }
 0x3b9   :  { %v835_v22 = vadd.f32 %v5529_v21, %v661_v62  ;;  %v825_v23 = vpop.f32.mrb[7].mxu0  ;;  %v1192_v62 = vld [vmem:[%s6917_s29] sm:$0xff]  ;;  %v6319_v21 = vpack.c.bf16 %v4910_v18, %v4909_v17  ;;  %v4939_v17 = vld [vmem:[%s6917_s29 + $0x198] sm:$0xff] }
 0x3ba   :  { %v834_v24 = vadd.f32 %v825_v23, %v660_v0  ;;  %v1193_v0 = vld [vmem:[%s6917_s29 + $0x8] sm:$0xff] }
 0x3bb   :  { %v6267_v3 = vpack.c.bf16 %v1193_v0, %v1192_v62  ;;  %v6295_v62 = vpack.c.bf16 %v1207_v61, %v1206_v59  ;;  %v4937_v0 = vld [vmem:[%s6917_s29 + $0x188] sm:$0xff]  ;;  %v1283_v59 = vld [vmem:[%s6912_s25] sm:$0xff] }
 0x3bc   :  { %v856_v25 = vadd.f32 %v835_v22, %v834_v24 }
 0x3be   :  { %v857_v26 = vrot.slane %v856_v25, 4 }
 0x3c0   :  { %v858_v27 = vadd.f32 %v857_v26, %v856_v25  ;;  %v1194_v26 = vld [vmem:[%s6917_s29 + $0x10] sm:$0xff] }
 0x3c2   :  { %v859_v28 = vrot.slane %v858_v27, 2 }
 0x3c4   :  { %v860_v29 = vadd.f32 %v859_v28, %v858_v27  ;;  %v1195_v27 = vld [vmem:[%s6917_s29 + $0x18] sm:$0xff] }
 0x3c5   :  { %v6271_v28 = vpack.c.bf16 %v1195_v27, %v1194_v26  ;;  %v4944_v27 = vld [vmem:[%s6917_s29 + $0x1c0] sm:$0xff] }
 0x3c6   :  { %v861_v30 = vrot.slane %v860_v29, 1 }
 0x3c8   :  { %v862_v31 = vadd.f32 %v861_v30, %v860_v29  ;;  %v1196_v30 = vld [vmem:[%s6917_s29 + $0x20] sm:$0xff] }
 0x3ca   :  { %5563 = vmatmul.mubr.f32.vlgmr.msra.gmra.mrb[16].mxu1 %v862_v31  ;;  %v1197_v31 = vld [vmem:[%s6917_s29 + $0x28] sm:$0xff] }
 0x3cb   :  { %5611 = vmatprep.mubr.msk.f32.mxu1 %vm6869_vm2, %v6870_v20  ;;  %6266 = vmatpush3.bf16.msra.mxu1 %v7168_v34  ;;  %v6275_v32 = vpack.c.bf16 %v1197_v31, %v1196_v30  ;;  %v4946_v30 = vld [vmem:[%s6917_s29 + $0x1d0] sm:$0xff]  ;;  %v4947_v31 = vld [vmem:[%s6917_s29 + $0x1d8] sm:$0xff] }
 0x3cc   :  { %6268 = vmatprep.subr.bf16.mxu1 %v6267_v3 }
 0x49d   :  { %v929_v35 = vpop.f32.mrb[16].mxu1 }
 0x49e   :  { %v933_v36 = vmul.f32 0.0078125, %v929_v35  ;;  %v5564_v37 = vpop.f32.mrb[17].mxu1  ;;  %v1199_v35 = vld [vmem:[%s6917_s29 + $0x38] sm:$0xff] }
 0x49f   :  { %v1200_v37 = vld [vmem:[%s6917_s29 + $0x40] sm:$0xff] }
 0x4a0   :  { %5570 = vmatmul.mubr.msk.f32.vlgmr.msra.gmra.mrb[8].mxu0 %vm134_vm0, %v933_v36  ;;  %v6279_v36 = vpack.c.bf16 %v1199_v35, %v1198_v33  ;;  %v6283_v39 = vpack.c.bf16 %v1201_v38, %v1200_v37  ;;  %v4948_v33 = vld [vmem:[%s6917_s29 + $0x1e0] sm:$0xff]  ;;  %v4949_v35 = vld [vmem:[%s6917_s29 + $0x1e8] sm:$0xff]  ;;  %v4950_v37 = vld [vmem:[%s6917_s29 + $0x1f0] sm:$0xff] }
 0x4a1   :  { %6242 = vmatpush3.bf16.msra.mxu0 %v7112_v52  ;;  %5604 = vmatprep.mubr.msk.f32.mxu0 %vm6869_vm2, %v6870_v20  ;;  %v4951_v38 = vld [vmem:[%s6917_s29 + $0x1f8] sm:$0xff] }
 0x4a2   :  { %6243 = vmatprep.subr.bf16.mxu0 %v6868_v51 }
 0x4a5   :  { %6245 = vmatpush3.bf16.msra.mxu0 %v7116_v54 }
 0x4a6   :  { %6246 = vmatprep.subr.bf16.mxu0 %v6868_v51 }
 0x4a9   :  { %6248 = vmatpush3.bf16.msra.mxu0 %v7122_v57 }
 0x4aa   :  { %6249 = vmatprep.subr.bf16.mxu0 %v6868_v51 }
 0x4ad   :  { %6251 = vmatpush3.bf16.msra.mxu0 %v7128_v60 }
 0x4ae   :  { %6252 = vmatprep.subr.bf16.mxu0 %v6868_v51 }
 0x4b1   :  { %6254 = vmatpush3.bf16.msra.mxu0 %v7138_v10 }
 0x4b2   :  { %6255 = vmatprep.subr.bf16.mxu0 %v6868_v51 }
 0x4b5   :  { %6257 = vmatpush3.bf16.msra.mxu0 %v7144_v13 }
 0x4b6   :  { %6258 = vmatprep.subr.bf16.mxu0 %v6868_v51 }
 0x4b9   :  { %6260 = vmatpush3.bf16.msra.mxu0 %v7150_v16 }
 0x4ba   :  { %6261 = vmatprep.subr.bf16.mxu0 %v6868_v51 }
 0x4bd   :  { %6263 = vmatpush3.bf16.msra.mxu0 %v7156_v19 }
 0x4be   :  { %6300 = vmatprep.subr.bf16.mxu0 %v6299_v63 }
 0x573   :  { %v1003_v41 = vpop.f32.mrb[8].mxu0 }
 0x574   :  { %v1010_v42 = vrot.slane %v1003_v41, %v7191_v40  ;;  %v5571_v43 = vpop.f32.mrb[9].mxu0  ;;  %v1202_v41 = vld [vmem:[%s6917_s29 + $0x50] sm:$0xff] }
 0x576   :  { %v7194_v44 = vsub.f32 %v834_v24, %v1010_v42  ;;  %v7196_v45 = vsub.f32 %v835_v22, %v1010_v42  ;;  %v1203_v42 = vld [vmem:[%s6917_s29 + $0x58] sm:$0xff] }
 0x577   :  { %v6287_v43 = vpack.c.bf16 %v1203_v42, %v1202_v41 }
 0x578   :  { %v1013_v46 = vmul.f32 %v7194_v44, %v7194_v44  ;;  %v1014_v47 = vmul.f32 %v7196_v45, %v7196_v45 }
 0x57a   :  { %v1015_v48 = vadd.f32 %v1014_v47, %v1013_v46  ;;  %v4911_v46 = vld [vmem:[%s6917_s29 + $0xe0] sm:$0xff]  ;;  %v4912_v47 = vld [vmem:[%s6917_s29 + $0xe8] sm:$0xff] }
 0x57c   :  { %v1016_v49 = vrot.slane %v1015_v48, 4 }
 0x57e   :  { %v1017_v50 = vadd.f32 %v1016_v49, %v1015_v48  ;;  %v6323_v48 = vpack.c.bf16 %v4912_v47, %v4911_v46  ;;  %v1204_v49 = vld [vmem:[%s6917_s29 + $0x60] sm:$0xff] }
 0x580   :  { %v1018_v53 = vrot.slane %v1017_v50, 2 }
 0x582   :  { %v1019_v55 = vadd.f32 %v1018_v53, %v1017_v50  ;;  %v1205_v50 = vld [vmem:[%s6917_s29 + $0x68] sm:$0xff] }
 0x583   :  { %v6291_v53 = vpack.c.bf16 %v1205_v50, %v1204_v49  ;;  %v4918_v49 = vld [vmem:[%s6917_s29 + $0x100] sm:$0xff]  ;;  %v4919_v50 = vld [vmem:[%s6917_s29 + $0x108] sm:$0xff] }
 0x584   :  { %v1020_v56 = vrot.slane %v1019_v55, 1 }
 0x586   :  { %v1021_v58 = vadd.f32 %v1020_v56, %v1019_v55  ;;  %v4913_v55 = vld [vmem:[%s6917_s29 + $0xf0] sm:$0xff]  ;;  %v4914_v56 = vld [vmem:[%s6917_s29 + $0xf8] sm:$0xff] }
 0x588   :  { %5605 = vmatmul.mubr.f32.vlgmr.msra.gmra.mrb[10].mxu0 %v1021_v58  ;;  %v6327_v58 = vpack.c.bf16 %v4914_v56, %v4913_v55  ;;  %v6337_v55 = vpack.c.bf16 %v4919_v50, %v4918_v49  ;;  %v4920_v56 = vld [vmem:[%s6917_s29 + $0x110] sm:$0xff] }
 0x589   :  { %6302 = vmatpush3.bf16.msra.mxu0 %v6299_v63  ;;  %v4936_v63 = vld [vmem:[%s6917_s29 + $0x180] sm:$0xff] }
 0x58a   :  { %6304 = vmatprep.subr.bf16.mxu0 %v6303_v4  ;;  %v6372_v1 = vpack.c.bf16 %v4937_v0, %v4936_v63  ;;  %v4923_v63 = vld [vmem:[%s6917_s29 + $0x128] sm:$0xff] }
 0x58d   :  { %6306 = vmatpush3.bf16.msra.mxu0 %v6303_v4 }
 0x58e   :  { %6308 = vmatprep.subr.bf16.mxu0 %v6307_v7 }
 0x591   :  { %6310 = vmatpush3.bf16.msra.mxu0 %v6307_v7 }
 0x592   :  { %6312 = vmatprep.subr.bf16.mxu0 %v6311_v11 }
 0x595   :  { %6314 = vmatpush3.bf16.msra.mxu0 %v6311_v11 }
 0x596   :  { %6316 = vmatprep.subr.bf16.mxu0 %v6315_v15 }
 0x599   :  { %6318 = vmatpush3.bf16.msra.mxu0 %v6315_v15  ;;  %v4938_v15 = vld [vmem:[%s6917_s29 + $0x190] sm:$0xff] }
 0x59a   :  { %6320 = vmatprep.subr.bf16.mxu0 %v6319_v21 }
 0x59d   :  { %6322 = vmatpush3.bf16.msra.mxu0 %v6319_v21 }
 0x59e   :  { %6324 = vmatprep.subr.bf16.mxu0 %v6323_v48 }
 0x5a1   :  { %6326 = vmatpush3.bf16.msra.mxu0 %v6323_v48 }
 0x5a2   :  { %6328 = vmatprep.subr.bf16.mxu0 %v6327_v58 }
 0x5a5   :  { %6330 = vmatpush3.bf16.msra.mxu0 %v6327_v58  ;;  %v4921_v58 = vld [vmem:[%s6917_s29 + $0x118] sm:$0xff] }
 0x5a6   :  { %6373 = vmatprep.subr.bf16.mxu0 %v6372_v1  ;;  %v6341_v61 = vpack.c.bf16 %v4921_v58, %v4920_v56 }
 0x65b   :  { %v1088_v22 = vpop.f32.mrb[10].mxu0 }
 0x65c   :  { %v1092_v23 = vmul.f32 0.0078125, %v1088_v22  ;;  %v5606_v24 = vpop.f32.mrb[11].mxu0  ;;  %v6376_v22 = vpack.c.bf16 %v4939_v17, %v4938_v15 }
 0x65d   :  { %v4942_v24 = vld [vmem:[%s6917_s29 + $0x1b0] sm:$0xff] }
 0x65e   :  { %v1093_v25 = vadd.f32 1e-05, %v1092_v23 }
 0x660   :  { %6703 = vrsqrt.f32 %v1093_v25  ;;  %v4943_v25 = vld [vmem:[%s6917_s29 + $0x1b8] sm:$0xff] }
 0x661   :  { %v6384_v26 = vpack.c.bf16 %v4943_v25, %v4942_v24 }
 0x66a   :  { %v6704_v29 = vpop.eup %6703 }
 0x66b   :  { %5612 = vmatmul.mubr.msk.f32.vlgmr.msra.gmra.mrb[18].mxu1 %vm134_vm0, %v6704_v29 }
 0x66c   :  { %6270 = vmatpush3.bf16.msra.mxu1 %v6267_v3 }
 0x66d   :  { %6272 = vmatprep.subr.bf16.mxu1 %v6271_v28 }
 0x670   :  { %6274 = vmatpush3.bf16.msra.mxu1 %v6271_v28  ;;  %v4945_v28 = vld [vmem:[%s6917_s29 + $0x1c8] sm:$0xff] }
 0x671   :  { %6276 = vmatprep.subr.bf16.mxu1 %v6275_v32  ;;  %v6388_v29 = vpack.c.bf16 %v4945_v28, %v4944_v27  ;;  %v1862_v27 = vld [vmem:[%s6942_s24] sm:$0xff]  ;;  %v1863_v28 = vld [vmem:[%s6942_s24 + $0x8] sm:$0xff]  ;;  %s7702_s24 = sld [smem:[#allocation26_spill]] }
 0x674   :  { %6278 = vmatpush3.bf16.msra.mxu1 %v6275_v32  ;;  %v6392_v32 = vpack.c.bf16 %v4947_v31, %v4946_v30 }
 0x675   :  { %6280 = vmatprep.subr.bf16.mxu1 %v6279_v36 }
 0x678   :  { %6282 = vmatpush3.bf16.msra.mxu1 %v6279_v36  ;;  %v6396_v36 = vpack.c.bf16 %v4949_v35, %v4948_v33 }
 0x679   :  { %6284 = vmatprep.subr.bf16.mxu1 %v6283_v39 }
 0x67c   :  { %6286 = vmatpush3.bf16.msra.mxu1 %v6283_v39  ;;  %v6400_v39 = vpack.c.bf16 %v4951_v38, %v4950_v37 }
 0x67d   :  { %6288 = vmatprep.subr.bf16.mxu1 %v6287_v43 }
 0x680   :  { %6290 = vmatpush3.bf16.msra.mxu1 %v6287_v43 }
 0x681   :  { %6292 = vmatprep.subr.bf16.mxu1 %v6291_v53 }
 0x684   :  { %6294 = vmatpush3.bf16.msra.mxu1 %v6291_v53  ;;  %v4915_v53 = vld [vmem:[%s6912_s25 + $0x8] sm:$0xff] }
 0x685   :  { %6296 = vmatprep.subr.bf16.mxu1 %v6295_v62 }
 0x688   :  { %6298 = vmatpush3.bf16.msra.mxu1 %v6295_v62  ;;  %v4922_v62 = vld [vmem:[%s6917_s29 + $0x120] sm:$0xff] }
 0x689   :  { %6331 = vmatprep.subr.bf16.mxu1 %v6868_v51  ;;  %v6345_v0 = vpack.c.bf16 %v4923_v63, %v4922_v62 }
 0x73e   :  { %v1164_v2 = vpop.f32.mrb[18].mxu1 }
 0x73f   :  { %v1171_v3 = vrot.slane %v1164_v2, %v7191_v40  ;;  %v5613_v4 = vpop.f32.mrb[19].mxu1  ;;  %v4925_v2 = vld [vmem:[%s6917_s29 + $0x138] sm:$0xff] }
 0x740   :  { %v4926_v4 = vld [vmem:[%s6917_s29 + $0x140] sm:$0xff] }
 0x741   :  { %v1172_v6 = vmul.f32 %v1171_v3, %v7194_v44  ;;  %v1173_v7 = vmul.f32 %v1171_v3, %v7196_v45  ;;  %v4940_v44 = vld [vmem:[%s6917_s29 + $0x1a0] sm:$0xff]  ;;  %v4941_v45 = vld [vmem:[%s6917_s29 + $0x1a8] sm:$0xff] }
 0x742   :  { %v6380_v23 = vpack.c.bf16 %v4941_v45, %v4940_v44  ;;  %v4933_v44 = vld [vmem:[%s6917_s29 + $0x178] sm:$0xff] }
 0x743   :  { %v1180_v9 = vmul.f32 %v4897_v5, %v1172_v6  ;;  %v1181_v11 = vmul.f32 %v4897_v5, %v1173_v7  ;;  %v4927_v5 = vld [vmem:[%s6917_s29 + $0x148] sm:$0xff]  ;;  %v4928_v7 = vld [vmem:[%s6917_s29 + $0x150] sm:$0xff] }
 0x744   :  { %v6353_v6 = vpack.c.bf16 %v4927_v5, %v4926_v4  ;;  %v2206_v5 = vld [vmem:[%s6952_s6] sm:$0xff] }
 0x745   :  { %v1188_v12 = vadd.f32 %v4898_v8, %v1180_v9  ;;  %v1189_v14 = vadd.f32 %v4898_v8, %v1181_v11  ;;  %v4929_v8 = vld [vmem:[%s6917_s29 + $0x158] sm:$0xff]  ;;  %v4930_v11 = vld [vmem:[%s6917_s29 + $0x160] sm:$0xff] }
 0x746   :  { %v6357_v9 = vpack.c.bf16 %v4929_v8, %v4928_v7 }
 0x747   :  { %v7245_v18 = vmax.f32 %v1188_v12, 0.0  ;;  %v7247_v21 = vmax.f32 %v1189_v14, 0.0  ;;  %v4931_v12 = vld [vmem:[%s6917_s29 + $0x168] sm:$0xff] }
 0x748   :  { %v6361_v17 = vpack.c.bf16 %v4931_v12, %v4930_v11  ;;  %v4960_v12 = vld [vmem:[%s6922_s3] ss:$0 sm:$0xff]  ;;  %s7700_s3 = sld [smem:[#allocation20_spill]] }
 0x749   :  { %5646 = vmatprep.mubr.f32.mxu1 %v7245_v18  ;;  %5681 = vmatprep.mubr.f32.mxu0 %v7245_v18 }
 0x74a   :  { %5647 = vmatmul.mubr.f32.vlgmr.msra.gmra.mrb[20].mxu1 %v7247_v21  ;;  %5682 = vmatmul.mubr.f32.vlgmr.msra.gmra.mrb[12].mxu0 %v7247_v21 }
 0x74b   :  { %6375 = vmatpush3.bf16.msra.mxu0 %v6372_v1  ;;  %5772 = vmatprep.mubr.f32.mxu0 %v7245_v18  ;;  %v4924_v1 = vld [vmem:[%s6917_s29 + $0x130] sm:$0xff] }
 0x74c   :  { %6377 = vmatprep.subr.bf16.mxu0 %v6376_v22  ;;  %5688 = vmatprep.mubr.msk.f32.mxu1 %vm6869_vm2, %v6870_v20  ;;  %v6349_v3 = vpack.c.bf16 %v4925_v2, %v4924_v1 }
 0x74f   :  { %6379 = vmatpush3.bf16.msra.mxu0 %v6376_v22  ;;  %v4932_v22 = vld [vmem:[%s6917_s29 + $0x170] sm:$0xff]  ;;  %s7699_s29 = sld [smem:[#allocation22_spill]] }
 0x750   :  { %6381 = vmatprep.subr.bf16.mxu0 %v6380_v23  ;;  %v6365_v45 = vpack.c.bf16 %v4933_v44, %v4932_v22  ;;  %v2288_v44 = vld [vmem:[%s7694_s9] sm:$0xff] }
 0x753   :  { %6383 = vmatpush3.bf16.msra.mxu0 %v6380_v23 }
 0x754   :  { %6385 = vmatprep.subr.bf16.mxu0 %v6384_v26 }
 0x757   :  { %6387 = vmatpush3.bf16.msra.mxu0 %v6384_v26  ;;  %v4934_v26 = vld [vmem:[%s6912_s25 + $0x10] sm:$0xff] }
 0x758   :  { %6389 = vmatprep.subr.bf16.mxu0 %v6388_v29 }
 0x75b   :  { %6391 = vmatpush3.bf16.msra.mxu0 %v6388_v29  ;;  %v6408_v29 = vpack.c.bf16 %v1863_v28, %v1862_v27  ;;  %v7356_v27 = vld [vmem:[%s7696_s17 + $0x2] ss:$0 sm:$0xff] }
 0x75c   :  { %6393 = vmatprep.subr.bf16.mxu0 %v6392_v32 }
 0x75f   :  { %6395 = vmatpush3.bf16.msra.mxu0 %v6392_v32 }
 0x760   :  { %6397 = vmatprep.subr.bf16.mxu0 %v6396_v36 }
 0x763   :  { %6399 = vmatpush3.bf16.msra.mxu0 %v6396_v36 }
 0x764   :  { %6401 = vmatprep.subr.bf16.mxu0 %v6400_v39 }
 0x767   :  { %6403 = vmatpush3.bf16.msra.mxu0 %v6400_v39 }
 0x768   :  { %6407 = vmatprep.subr.bf16.mxu0 %v6868_v51 }
 0x76a   :  { %5773 = vmatmul.mubr.f32.vlgmr.msra.gmra.mrb[14].mxu0 %v7247_v21 }
 0x76b   :  { %5786 = vmatprep.mubr.msk.f32.mxu0 %vm6869_vm2, %v6870_v20  ;;  %6409 = vmatpush3.bf16.msra.mxu0 %v6408_v29 }
 0x76c   :  { %6410 = vmatprep.subr.bf16.mxu0 %v6868_v51 }
 0x81d   :  { %v5648_v41 = vpop.f32.mrb[20].mxu1  ;;  %v5683_v42 = vpop.f32.mrb[12].mxu0 }
 0x81e   :  { %v1274_v43 = vpop.f32.mrb[21].mxu1  ;;  %v1367_v46 = vpop.f32.mrb[13].mxu0 }
 0x81f   :  { %v6335_v47 = vpack.c.bf16 %v5648_v41, %v1274_v43  ;;  %v6332_v48 = vpack.c.bf16 %v5683_v42, %v1367_v46  ;;  %v1864_v41 = vld [vmem:[%s6947_s30] sm:$0xf]  ;;  %s7703_s30 = sld [smem:[#allocation23_spill]] }
 0x821   :  { %6333 = vmatpush3.bf16.msra.mxu1 %v6332_v48 }
 0x822   :  { %6334 = vmatprep.subr.bf16.mxu1 %v6868_v51 }
 0x824   :  { %5689 = vmatmul.mubr.msk.f32.vlgmr.msra.gmra.mrb[22].mxu1 %vm134_vm0, %v4915_v53 }
 0x825   :  { %6336 = vmatpush3.bf16.msra.mxu1 %v6335_v47  ;;  %5695 = vmatprep.mubr.msk.f32.mxu1 %vm6869_vm2, %v6870_v20 }
 0x826   :  { %6338 = vmatprep.subr.bf16.mxu1 %v6337_v55 }
 0x82c   :  { %5696 = vmatmul.mubr.msk.f32.vlgmr.msra.gmra.mrb[22].mxu1 %vm134_vm0, %v1283_v59 }
 0x82d   :  { %6340 = vmatpush3.bf16.msra.mxu1 %v6337_v55  ;;  %5730 = vmatprep.mubr.f32.mxu1 %v7245_v18 }
 0x82e   :  { %6342 = vmatprep.subr.bf16.mxu1 %v6341_v61 }
 0x831   :  { %6344 = vmatpush3.bf16.msra.mxu1 %v6341_v61 }
 0x832   :  { %6346 = vmatprep.subr.bf16.mxu1 %v6345_v0 }
 0x835   :  { %6348 = vmatpush3.bf16.msra.mxu1 %v6345_v0 }
 0x836   :  { %6350 = vmatprep.subr.bf16.mxu1 %v6349_v3 }
 0x839   :  { %6352 = vmatpush3.bf16.msra.mxu1 %v6349_v3 }
 0x83a   :  { %6354 = vmatprep.subr.bf16.mxu1 %v6353_v6 }
 0x83d   :  { %6356 = vmatpush3.bf16.msra.mxu1 %v6353_v6  ;;  %v5774_v14 = vpop.f32.mrb[14].mxu0  ;;  %v2207_v6 = vld [vmem:[%s6952_s6 + $0x8] sm:$0xff]  ;;  %s7704_s6 = sld [smem:[#allocation24_spill]] }
 0x83e   :  { %v1775_v15 = vpop.f32.mrb[15].mxu0  ;;  %6358 = vmatprep.subr.bf16.mxu1 %v6357_v9  ;;  %v6414_v7 = vpack.c.bf16 %v2207_v6, %v2206_v5 }
 0x83f   :  { %v6405_v18 = vpack.c.bf16 %v5774_v14, %v1775_v15  ;;  %v4961_v15 = vld [vmem:[%s7693_s0] ss:$0 sm:$0xff] }
 0x841   :  { %6360 = vmatpush3.bf16.msra.mxu1 %v6357_v9 }
 0x842   :  { %6362 = vmatprep.subr.bf16.mxu1 %v6361_v17 }
 0x845   :  { %6364 = vmatpush3.bf16.msra.mxu1 %v6361_v17 }
 0x846   :  { %6366 = vmatprep.subr.bf16.mxu1 %v6365_v45 }
 0x849   :  { %6368 = vmatpush3.bf16.msra.mxu1 %v6365_v45  ;;  %v4962_v45 = vld [vmem:[%s7695_s13] ss:$0 sm:$0xff] }
 0x84a   :  { %6369 = vmatprep.subr.bf16.mxu1 %v6868_v51 }
 0x84c   :  { %5731 = vmatmul.mubr.f32.vlgmr.msra.gmra.mrb[24].mxu1 %v7247_v21  ;;  %v4952_v21 = vld [vmem:[%s6912_s25 + $0x18] sm:$0xff]  ;;  %s7698_s25 = sld [smem:[#allocation19_spill]] }
 0x84d   :  { %5737 = vmatprep.mubr.msk.f32.mxu1 %vm6869_vm2, %v6870_v20 }
 0x91f   :  { %v5732_v23 = vpop.f32.mrb[24].mxu1 }
 0x920   :  { %v1607_v24 = vpop.f32.mrb[25].mxu1 }
 0x921   :  { %v6370_v25 = vpack.c.bf16 %v5732_v23, %v1607_v24  ;;  %v7348_v24 = vld [vmem:[%s7696_s17] ss:$0 sm:$0xff] }
 0x923   :  { %6371 = vmatpush3.bf16.msra.mxu1 %v6370_v25  ;;  %v7351_v25 = vld [vmem:[%s7696_s17 + $0x1] ss:$0 sm:$0xff] }
 0x924   :  { %6404 = vmatprep.subr.bf16.mxu1 %v6868_v51 }
 0x926   :  { %5738 = vmatmul.mubr.msk.f32.vlgmr.msra.gmra.mrb[22].mxu1 %vm134_vm0, %v4934_v26 }
 0x927   :  { %6406 = vmatpush3.bf16.msra.mxu1 %v6405_v18  ;;  %5779 = vmatprep.mubr.msk.f32.mxu1 %vm6869_vm2, %v6870_v20 }
 0x928   :  { %5789 = vmatprep.subr.mxu1 %v6870_v20 }
 0x92e   :  { %5780 = vmatmul.mubr.msk.f32.vlgmr.msra.gmra.mrb[22].mxu1 %vm134_vm0, %v4952_v21 }
 0x92f   :  { %5791 = vmatprep.mubr.msk.f32.mxu1 %vm6869_vm2, %v6870_v20  ;;  %5790 = vmatpush3.msk.msra.mxu1 %vm1950_vm3, %v1864_v41 }
 0x930   :  { %5801 = vmatprep.subr.mxu1 %v6870_v20 }
 0xa01   :  { %v1855_v30 = vpop.f32.mrb[22].mxu1 }
 0xa02   :  { %v1865_v31 = vsel %vm134_vm0, %v1855_v30, 0.0  ;;  %v5781_v32 = vpop.f32.mrb[23].mxu1 }
 0xa03   :  { %v1866_v33 = vrot.slane %v1865_v31, 4 }
 0xa05   :  { %v1867_v35 = vadd.f32 %v1866_v33, %v1865_v31  ;;  %v7365_v33 = vld [vmem:[%s7696_s17 + $0x3] ss:$0 sm:$0xff] }
 0xa07   :  { %v1868_v36 = vrot.slane %v1867_v35, 2 }
 0xa09   :  { %v1869_v37 = vadd.f32 %v1868_v36, %v1867_v35 }
 0xa0b   :  { %v1870_v38 = vrot.slane %v1869_v37, 1 }
 0xa0d   :  { %v1871_v39 = vadd.f32 %v1870_v38, %v1869_v37  ;;  %v2289_v38 = vld [vmem:[%s7697_s21] sm:$0xf] }
 0xa0f   :  { %5787 = vmatmul.mubr.msk.f32.vlgmr.msra.gmra.mrb[16].mxu0 %vm134_vm0, %v1871_v39  ;;  %v5084_v39 = vld [vmem:[#allocation2] ss:$0 sm:$0xff] }
 0xa10   :  { %6412 = vmatpush3.bf16.msra.mxu0 %v6408_v29  ;;  %5798 = vmatprep.mubr.msk.f32.mxu0 %vm6869_vm2, %v6870_v20 }
 0xa11   :  { %6413 = vmatprep.subr.bf16.mxu0 %v6868_v51 }
 0xae2   :  { %v1941_v42 = vpop.f32.mrb[16].mxu0 }
 0xae3   :  { %v1945_v43 = vmul.f32 0.03125, %v1941_v42  ;;  %v5788_v46 = vpop.f32.mrb[17].mxu0 }
 0xae5   :  { %5792 = vmatmul.mubr.msk.f32.vlgmr.msra.gmra.mrb[26].mxu1 %vm1946_vm4, %v1945_v43 }
 0xae6   :  { %5802 = vmatpush3.msk.msra.mxu1 %vm1950_vm3, %v1864_v41  ;;  %5803 = vmatprep.mubr.msk.f32.mxu1 %vm6869_vm2, %v6870_v20  ;;  %v6871_v41 = vmov 0  }
 0xae7   :  { %5813 = vmatprep.subr.mxu1 %v6870_v20  ;;  %6702 = vset.pattern.permute.xlu0 %v6871_v41 }
 0xae8   :  { %4711 = vperm.xlu0 %6702, %v5084_v39   ;;  %v4991_v39 = vld [vmem:[%s7699_s29 + $0x28] sm:$0xff] }
 0xbb8   :  { %v2020_v47 = vpop.f32.mrb[26].mxu1 }
 0xbb9   :  { %v2027_v48 = vrot.slane %v2020_v47, %v7191_v40  ;;  %v5793_v49 = vpop.f32.mrb[27].mxu1 }
 0xbbb   :  { %v2028_v50 = vsub.f32 %v1855_v30, %v2027_v48 }
 0xbbd   :  { %v2029_v53 = vmul.f32 %v2028_v50, %v2028_v50 }
 0xbbf   :  { %v2030_v55 = vsel %vm134_vm0, %v2029_v53, 0.0 }
 0xbc0   :  { %v2031_v56 = vrot.slane %v2030_v55, 4 }
 0xbc2   :  { %v2032_v58 = vadd.f32 %v2031_v56, %v2030_v55 }
 0xbc4   :  { %v2033_v59 = vrot.slane %v2032_v58, 2 }
 0xbc6   :  { %v2034_v61 = vadd.f32 %v2033_v59, %v2032_v58 }
 0xbc8   :  { %v2035_v62 = vrot.slane %v2034_v61, 1 }
 0xbca   :  { %v2036_v63 = vadd.f32 %v2035_v62, %v2034_v61  ;;  %v2870_v62 = vld [vmem:[%s7698_s25] sm:$0xff] }
 0xbcc   :  { %5799 = vmatmul.mubr.msk.f32.vlgmr.msra.gmra.mrb[18].mxu0 %vm134_vm0, %v2036_v63 }
 0xbcd   :  { %5810 = vmatprep.mubr.msk.f32.mxu0 %vm6869_vm2, %v6870_v20  ;;  %6415 = vmatpush3.bf16.msra.mxu0 %v6414_v7 }
 0xbce   :  { %5818 = vmatprep.subr.mxu0 %v6870_v20 }
 0xc9f   :  { %v2106_v0 = vpop.f32.mrb[18].mxu0 }
 0xca0   :  { %v2110_v1 = vmul.f32 0.03125, %v2106_v0  ;;  %v5800_v2 = vpop.f32.mrb[19].mxu0 }
 0xca2   :  { %v2111_v3 = vadd.f32 1e-05, %v2110_v1 }
 0xca4   :  { %6705 = vrsqrt.f32 %v2111_v3 }
 0xcae   :  { %v6706_v4 = vpop.eup %6705 }
 0xcaf   :  { %5804 = vmatmul.mubr.msk.f32.vlgmr.msra.gmra.mrb[28].mxu1 %vm1946_vm4, %v6706_v4 }
 0xcb0   :  { %5815 = vmatprep.mubr.msk.f32.mxu1 %vm6869_vm2, %v6870_v20  ;;  %5814 = vmatpush3.msra.mxu1 %v2288_v44 }
 0xcb1   :  { %5823 = vmatprep.subr.mxu1 %v6870_v20 }
 0xd82   :  { %v2182_v8 = vpop.f32.mrb[28].mxu1 }
 0xd83   :  { %v2189_v9 = vrot.slane %v2182_v8, %v7191_v40  ;;  %v5805_v11 = vpop.f32.mrb[29].mxu1 }
 0xd85   :  { %v2190_v14 = vmul.f32 %v2189_v9, %v2028_v50 }
 0xd87   :  { %v2197_v17 = vmul.f32 %v4960_v12, %v2190_v14 }
 0xd89   :  { %v2204_v18 = vadd.f32 %v4961_v15, %v2197_v17 }
 0xd8b   :  { %v2205_v22 = vmax.f32 %v2204_v18, 0.0 }
 0xd8d   :  { %5811 = vmatmul.mubr.msk.f32.vlgmr.msra.gmra.mrb[20].mxu0 %vm134_vm0, %v2205_v22 }
 0xd8e   :  { %5820 = vmatprep.mubr.msk.f32.mxu0 %vm6869_vm2, %v6870_v20  ;;  %5819 = vmatpush3.msra.mxu0 %v2288_v44 }
 0xd8f   :  { %5828 = vmatprep.subr.mxu0 %v6870_v20 }
 0xe60   :  { %v2284_v23 = vpop.f32.mrb[20].mxu0 }
 0xe61   :  { %v7353_v26 = vadd.f32 %v4962_v45, %v2284_v23  ;;  %v5812_v21 = vpop.f32.mrb[21].mxu0 }
 0xe62   :  { %v4981_v21 = vld [vmem:[%s7699_s29 + $0x10] sm:$0xff] }
 0xe63   :  { %v2295_v28 = vsub.f32 %v7353_v26, %v7348_v24  ;;  %v2377_v29 = vsub.f32 %v7353_v26, %v7351_v25  ;;  %v2540_v32 = vsub.f32 %v7353_v26, %v7356_v27  ;;  %v2700_v36 = vsub.f32 %v7353_v26, %v7365_v33 }
 0xe65   :  { %v2296_v30 = vmul.f32 %v2295_v28, %v2295_v28  ;;  %v2378_v31 = vmul.f32 %v2377_v29, %v2377_v29  ;;  %v2541_v35 = vmul.f32 %v2540_v32, %v2540_v32  ;;  %v2701_v37 = vmul.f32 %v2700_v36, %v2700_v36  ;;  %v4982_v28 = vld [vmem:[%s7699_s29 + $0x18] sm:$0xff] }
 0xe66   :  { %v6420_v29 = vpack.c.bf16 %v4982_v28, %v4981_v21 }
 0xe67   :  { %5816 = vmatmul.mubr.msk.f32.vlgmr.msra.gmra.mrb[30].mxu1 %vm2297_vm5, %v2296_v30  ;;  %5821 = vmatmul.mubr.msk.f32.vlgmr.msra.gmra.mrb[22].mxu0 %vm2297_vm5, %v2378_v31 }
 0xe68   :  { %5829 = vmatpush3.msra.mxu0 %v2288_v44  ;;  %5830 = vmatprep.mubr.msk.f32.mxu0 %vm6869_vm2, %v6870_v20 }
 0xe69   :  { %5838 = vmatprep.subr.mxu0 %v6870_v20  ;;  %5825 = vmatprep.mubr.msk.f32.mxu1 %vm6869_vm2, %v6870_v20 }
 0xe6a   :  { %5824 = vmatpush3.msk.msra.mxu1 %vm1950_vm3, %v2289_v38 }
 0xe6b   :  { %5831 = vmatmul.mubr.msk.f32.vlgmr.msra.gmra.mrb[24].mxu0 %vm2297_vm5, %v2541_v35  ;;  %5833 = vmatprep.subr.mxu1 %v6870_v20 }
 0xe6c   :  { %5839 = vmatpush3.msra.mxu0 %v2288_v44  ;;  %5840 = vmatprep.mubr.msk.f32.mxu0 %vm6869_vm2, %v6870_v20 }
 0xe6d   :  { %5848 = vmatprep.subr.mxu0 %v6870_v20 }
 0xe6f   :  { %5841 = vmatmul.mubr.msk.f32.vlgmr.msra.gmra.mrb[26].mxu0 %vm2297_vm5, %v2701_v37 }
 0xe70   :  { %5850 = vmatprep.mubr.msk.f32.mxu0 %vm6869_vm2, %v6870_v20  ;;  %5849 = vmatpush3.msra.mxu0 %v2870_v62 }
 0xe71   :  { %6419 = vmatprep.subr.bf16.mxu0 %v6868_v51 }
 0xf3a   :  { %v2367_v42 = vpop.f32.mrb[30].mxu1  ;;  %v2448_v43 = vpop.f32.mrb[22].mxu0 }
 0xf3b   :  { %vm2452_vm6 = vcmp.lt.f32.partialorder %v2448_v43, %v2367_v42  ;;  %v2534_v46 = vmin.f32 %v2367_v42, %v2448_v43  ;;  %v5817_v47 = vpop.f32.mrb[31].mxu1  ;;  %v5822_v48 = vpop.f32.mrb[23].mxu0  ;;  %v4978_v42 = vld [vmem:[%s7700_s3] ss:$0 sm:$0xff] }
 0xf3c   :  { %v2453_v49 = vsel %vm2452_vm6, 1.0, %v6870_v20 }
 0xf3d   :  { %5826 = vmatmul.mubr.msk.f32.vlgmr.msra.gmra.mrb[32].mxu1 %vm1946_vm4, %v2453_v49 }
 0xf3e   :  { %v2611_v50 = vpop.f32.mrb[24].mxu0  ;;  %5834 = vmatpush3.msk.msra.mxu1 %vm1950_vm3, %v2289_v38  ;;  %5835 = vmatprep.mubr.msk.f32.mxu1 %vm6869_vm2, %v6870_v20 }
 0xf3f   :  { %vm2615_vm7 = vcmp.lt.f32.partialorder %v2611_v50, %v2534_v46  ;;  %v2694_v53 = vmin.f32 %v2534_v46, %v2611_v50  ;;  %v5832_v55 = vpop.f32.mrb[25].mxu0  ;;  %5843 = vmatprep.subr.mxu1 %v6870_v20  ;;  %v4997_v50 = vld [vmem:[%s7699_s29 + $0x30] sm:$0xff] }
 0xf40   :  { %v2616_v56 = vsel %vm2615_vm7, 1.0, %v6870_v20 }
 0xf41   :  { %5836 = vmatmul.mubr.msk.f32.vlgmr.msra.gmra.mrb[34].mxu1 %vm1946_vm4, %v2616_v56  ;;  %v4984_v56 = vld [vmem:[%s7701_s19 + $0x10] sm:$0xff] }
 0xf42   :  { %v2771_v58 = vpop.f32.mrb[26].mxu0  ;;  %5844 = vmatpush3.msk.msra.mxu1 %vm1950_vm3, %v2289_v38  ;;  %5845 = vmatprep.mubr.msk.f32.mxu1 %vm6869_vm2, %v6870_v20  ;;  %v4990_v38 = vld [vmem:[%s7699_s29 + $0x20] sm:$0xff] }
 0xf43   :  { %vm2775_vm8 = vcmp.lt.f32.partialorder %v2771_v58, %v2694_v53  ;;  %v5842_v59 = vpop.f32.mrb[27].mxu0  ;;  %6416 = vmatprep.subr.bf16.mxu1 %v6868_v51  ;;  %v6423_v47 = vpack.c.bf16 %v4991_v39, %v4990_v38  ;;  %v4998_v53 = vld [vmem:[%s7699_s29 + $0x38] sm:$0xff]  ;;  %v5012_v39 = vld [vmem:[%s7702_s24 + $0xa0] sm:$0xff] }
 0xf44   :  { %v2776_v61 = vsel %vm2775_vm8, 1.0, %v6870_v20  ;;  %v6426_v55 = vpack.c.bf16 %v4998_v53, %v4997_v50  ;;  %v5017_v50 = vld [vmem:[%s7702_s24 + $0xc8] sm:$0xff] }
 0xf45   :  { %5846 = vmatmul.mubr.msk.f32.vlgmr.msra.gmra.mrb[36].mxu1 %vm1946_vm4, %v2776_v61  ;;  %v4985_v61 = vld [vmem:[%s7701_s19 + $0x18] sm:$0xff] }
 0xf46   :  { %5857 = vmatprep.mubr.msk.f32.mxu1 %vm6869_vm2, %v6870_v20 }
0x1010   :  { %v2526_v63 = vpop.f32.mrb[32].mxu1 }
0x1011   :  { %v2531_v0 = vsub.f32 1.0, %v2526_v63  ;;  %v5827_v1 = vpop.f32.mrb[33].mxu1  ;;  %v2530_v2 = vmul.f32 %v7351_v25, %v2526_v63  ;;  %v2952_v25 = vld [vmem:[%s7699_s29 + $0x8] sm:$0xff] }
0x1013   :  { %v2532_v3 = vmul.f32 %v7348_v24, %v2531_v0  ;;  %v2951_v24 = vld [vmem:[%s7699_s29] sm:$0xff] }
0x1014   :  { %v2686_v4 = vpop.f32.mrb[34].mxu1  ;;  %v3026_v0 = vld [vmem:[%s7701_s19] sm:$0xff] }
0x1015   :  { %v2533_v5 = vadd.f32 %v2532_v3, %v2530_v2  ;;  %v2691_v6 = vsub.f32 1.0, %v2686_v4  ;;  %v5837_v7 = vpop.f32.mrb[35].mxu1  ;;  %v2690_v8 = vmul.f32 %v7356_v27, %v2686_v4  ;;  %v6417_v27 = vpack.c.bf16 %v2952_v25, %v2951_v24  ;;  %v3027_v4 = vld [vmem:[%s7701_s19 + $0x8] sm:$0xff] }
0x1016   :  { %v4994_v7 = vld [vmem:[%s7701_s19 + $0x28] sm:$0xff] }
0x1017   :  { %v2692_v9 = vmul.f32 %v2691_v6, %v2533_v5  ;;  %6418 = vmatpush3.bf16.msra.mxu1 %v6417_v27  ;;  %v4993_v6 = vld [vmem:[%s7701_s19 + $0x20] sm:$0xff] }
0x1018   :  { %v2846_v11 = vpop.f32.mrb[36].mxu1 }
0x1019   :  { %v2693_v12 = vadd.f32 %v2692_v9, %v2690_v8  ;;  %v2851_v14 = vsub.f32 1.0, %v2846_v11  ;;  %v5847_v15 = vpop.f32.mrb[37].mxu1  ;;  %v2850_v17 = vmul.f32 %v7365_v33, %v2846_v11  ;;  %v5000_v8 = vld [vmem:[%s7701_s19 + $0x30] sm:$0xff]  ;;  %v5001_v9 = vld [vmem:[%s7701_s19 + $0x38] sm:$0xff] }
0x101b   :  { %v2852_v18 = vmul.f32 %v2851_v14, %v2693_v12 }
0x101d   :  { %v2853_v22 = vadd.f32 %v2852_v18, %v2850_v17 }
0x101f   :  { %5851 = vmatmul.mubr.msk.f32.vlgmr.msra.gmra.mrb[28].mxu0 %vm2297_vm5, %v2853_v22  ;;  %v2854_v44 = vsub.f32 %v2853_v22, %v7353_v26  ;;  %v7418_v26 = vpop.permute.xlu0 %4711 }
0x1020   :  { %5864 = vmatprep.mubr.msk.f32.mxu0 %vm6869_vm2, %v6870_v20  ;;  %6421 = vmatpush3.bf16.msra.mxu0 %v6420_v29  ;;  %v5008_v29 = vld [vmem:[%s7702_s24 + $0x80] sm:$0xff] }
0x1021   :  { %v2855_v45 = vmul.f32 %v2854_v44, %v2854_v44  ;;  %6422 = vmatprep.subr.bf16.mxu0 %v6868_v51 }
0x1023   :  { %v2856_v23 = vsel %vm2297_vm5, %v2855_v45, 0.0 }
0x1024   :  { %2857 = vadd.xlane.f32.xlu0 %v2856_v23 }
0x10b1   :  { %v2858_v30 = vpop.xlane.xlu0 %2857 }
0x10b2   :  { %v2859_v31 = vrot.slane %v2858_v30, 4 }
0x10b4   :  { %v2860_v32 = vadd.f32 %v2859_v31, %v2858_v30  ;;  %v5009_v30 = vld [vmem:[%s7702_s24 + $0x88] sm:$0xff]  ;;  %v3922_v31 = vld [vmem:[%s7702_s24] sm:$0xff] }
0x10b6   :  { %v2861_v33 = vrot.slane %v2860_v32, 2 }
0x10b8   :  { %v2862_v35 = vadd.f32 %v2861_v33, %v2860_v32  ;;  %v6514_v32 = vpack.c.bf16 %v5009_v30, %v5008_v29  ;;  %v3923_v33 = vld [vmem:[%s7702_s24 + $0x8] sm:$0xff]  ;;  %v5006_v29 = vld [vmem:[%s7703_s30] ss:$0 sm:$0xff] }
0x10ba   :  { %v2863_v36 = vrot.slane %v2862_v35, 1 }
0x10bc   :  { %v2864_v37 = vadd.f32 %v2863_v36, %v2862_v35  ;;  %v5010_v35 = vld [vmem:[%s7702_s24 + $0x90] sm:$0xff]  ;;  %v5011_v36 = vld [vmem:[%s7702_s24 + $0x98] sm:$0xff] }
0x10bd   :  { %v6518_v38 = vpack.c.bf16 %v5011_v36, %v5010_v35 }
0x10be   :  { %6656 = vpush %v2864_v37  ;;  %v6482_v37 = vpack.c.bf16 %v3923_v33, %v3922_v31 }
0x10ef   :  { %s6657_s14 = spop %6656 }
0x10f0   :  { %v2866_v41 = vstv %s6657_s14 }
0x10f1   :  { %v7423_v43 = vmul.f32 0.015625, %v2866_v41  ;;  %v5013_v41 = vld [vmem:[%s7702_s24 + $0xa8] sm:$0xff] }
0x10f2   :  { %v2947_v46 = vpop.f32.mrb[28].mxu0 }
0x10f3   :  { %v2948_v48 = vadd.f32 %v4978_v42, %v2947_v46  ;;  %v5852_v49 = vpop.f32.mrb[29].mxu0  ;;  %4756 = vst.msk [vmem:[#allocation8] sm:$0x1] %vm4753_vm9, %v7423_v43  ;;  %4757 = vst.msk [vmem:[#allocation10] sm:$0x1] %vm4753_vm9, %v7423_v43  ;;  %v6522_v42 = vpack.c.bf16 %v5013_v41, %v5012_v39  ;;  %v5014_v46 = vld [vmem:[%s7702_s24 + $0xb0] sm:$0xff] }
0x10f4   :  { %v5016_v49 = vld [vmem:[%s7702_s24 + $0xc0] sm:$0xff]  ;;  %v5039_v39 = vld [vmem:[%s7702_s24 + $0x118] sm:$0xff] }
0x10f5   :  { %5858 = vmatmul.mubr.msk.f32.vlgmr.msra.gmra.mrb[38].mxu1 %vm134_vm0, %v2948_v48  ;;  %5865 = vmatmul.mubr.msk.f32.vlgmr.msra.gmra.mrb[30].mxu0 %vm134_vm0, %v2948_v48  ;;  %v6530_v53 = vpack.c.bf16 %v5017_v50, %v5016_v49  ;;  %v5044_v50 = vld [vmem:[%s7702_s24 + $0x140] sm:$0xff] }
0x10f6   :  { %6424 = vmatpush3.bf16.msra.mxu0 %v6423_v47  ;;  %5881 = vmatprep.mubr.msk.f32.mxu0 %vm6869_vm2, %v6870_v20  ;;  %v5015_v47 = vld [vmem:[%s7702_s24 + $0xb8] sm:$0xff] }
0x10f7   :  { %6425 = vmatprep.subr.bf16.mxu0 %v6868_v51  ;;  %5869 = vmatprep.mubr.msk.f32.mxu1 %vm2297_vm5, %v4984_v56  ;;  %v5019_v56 = vld [vmem:[%s7702_s24 + $0xd8] sm:$0xff] }
0x10f9   :  { %5882 = vmatmul.mubr.msk.f32.vlgmr.msra.gmra.mrb[32].mxu0 %vm134_vm0, %v2948_v48 }
0x10fa   :  { %6427 = vmatpush3.bf16.msra.mxu0 %v6426_v55  ;;  %5893 = vmatprep.mubr.msk.f32.mxu0 %vm6869_vm2, %v6870_v20  ;;  %v5018_v55 = vld [vmem:[%s7702_s24 + $0xd0] sm:$0xff] }
0x10fb   :  { %6428 = vmatprep.subr.bf16.mxu0 %v6868_v51 }
0x10fd   :  { %5894 = vmatmul.mubr.msk.f32.vlgmr.msra.gmra.mrb[34].mxu0 %vm134_vm0, %v2948_v48  ;;  %v6526_v48 = vpack.c.bf16 %v5015_v47, %v5014_v46  ;;  %v5042_v47 = vld [vmem:[%s7702_s24 + $0x130] sm:$0xff] }
0x10fe   :  { %6430 = vmatpush3.bf16.msra.mxu0 %v7112_v52  ;;  %5933 = vmatprep.mubr.msk.f32.mxu0 %vm6869_vm2, %v6870_v20 }
0x10ff   :  { %6431 = vmatprep.subr.bf16.mxu0 %v6868_v51 }
0x1102   :  { %6433 = vmatpush3.bf16.msra.mxu0 %v7116_v54 }
0x1103   :  { %6434 = vmatprep.subr.bf16.mxu0 %v6868_v51 }
0x1106   :  { %6436 = vmatpush3.bf16.msra.mxu0 %v7122_v57 }
0x1107   :  { %6437 = vmatprep.subr.bf16.mxu0 %v6868_v51 }
0x110a   :  { %6439 = vmatpush3.bf16.msra.mxu0 %v7128_v60 }
0x110b   :  { %6440 = vmatprep.subr.bf16.mxu0 %v6868_v51 }
0x110e   :  { %6442 = vmatpush3.bf16.msra.mxu0 %v7138_v10 }
0x110f   :  { %6443 = vmatprep.subr.bf16.mxu0 %v6868_v51 }
0x1112   :  { %6445 = vmatpush3.bf16.msra.mxu0 %v7144_v13 }
0x1113   :  { %6446 = vmatprep.subr.bf16.mxu0 %v6868_v51 }
0x1116   :  { %6448 = vmatpush3.bf16.msra.mxu0 %v7150_v16 }
0x1117   :  { %6449 = vmatprep.subr.bf16.mxu0 %v6868_v51 }
0x111a   :  { %6451 = vmatpush3.bf16.msra.mxu0 %v7156_v19 }
0x111b   :  { %6479 = vmatprep.subr.bf16.mxu0 %v6868_v51 }
0x11c8   :  { %v3022_v58 = vpop.f32.mrb[38].mxu1  ;;  %v3097_v59 = vpop.f32.mrb[30].mxu0 }
0x11c9   :  { %v5859_v62 = vpop.f32.mrb[39].mxu1  ;;  %v5866_v63 = vpop.f32.mrb[31].mxu0  ;;  %5867 = vmatprep.subr.mxu1 %v3097_v59 }
0x11ca   :  { %5868 = vmatpush3.msra.mxu1 %v3097_v59 }
0x11cb   :  { %5870 = vmatmul.mubr.msk.f32.vlgmr.msra.gmra.mrb[40].mxu1 %vm2297_vm5, %v4985_v61  ;;  %5872 = vmatprep.subr.mxu1 %v3022_v58 }
0x11cc   :  { %5873 = vmatpush3.msra.mxu1 %v3022_v58  ;;  %v3335_v1 = vpop.f32.mrb[32].mxu0  ;;  %5874 = vmatprep.mubr.msk.f32.mxu1 %vm2297_vm5, %v3026_v0  ;;  %v6534_v58 = vpack.c.bf16 %v5019_v56, %v5018_v55  ;;  %v3924_v0 = vld [vmem:[%s7702_s24 + $0x10] sm:$0xff] }
0x11cd   :  { %v5883_v2 = vpop.f32.mrb[33].mxu0  ;;  %5884 = vmatprep.subr.mxu1 %v3335_v1  ;;  %v5046_v56 = vld [vmem:[%s7702_s24 + $0x150] sm:$0xff] }
0x11d0   :  { %v3494_v3 = vpop.f32.mrb[34].mxu0 }
0x11d1   :  { %v5895_v5 = vpop.f32.mrb[35].mxu0 }
0x11d2   :  { %v3927_v5 = vld [vmem:[%s7702_s24 + $0x28] sm:$0xff] }
0x11d3   :  { %5875 = vmatmul.mubr.msk.f32.vlgmr.msra.gmra.mrb[40].mxu1 %vm2297_vm5, %v3027_v4  ;;  %v3926_v4 = vld [vmem:[%s7702_s24 + $0x20] sm:$0xff] }
0x11d4   :  { %5885 = vmatpush3.msra.mxu1 %v3335_v1  ;;  %5886 = vmatprep.mubr.msk.f32.mxu1 %vm2297_vm5, %v4993_v6  ;;  %v3925_v1 = vld [vmem:[%s7702_s24 + $0x18] sm:$0xff]  ;;  %v6490_v6 = vpack.c.bf16 %v3927_v5, %v3926_v4 }
0x11d5   :  { %5896 = vmatprep.subr.mxu1 %v3494_v3  ;;  %v6486_v2 = vpack.c.bf16 %v3925_v1, %v3924_v0  ;;  %v5050_v0 = vld [vmem:[%s7702_s24 + $0x170] sm:$0xff]  ;;  %v5051_v1 = vld [vmem:[%s7702_s24 + $0x178] sm:$0xff] }
0x11db   :  { %5887 = vmatmul.mubr.msk.f32.vlgmr.msra.gmra.mrb[40].mxu1 %vm2297_vm5, %v4994_v7  ;;  %v3928_v7 = vld [vmem:[%s7702_s24 + $0x30] sm:$0xff] }
0x11dc   :  { %5897 = vmatpush3.msra.mxu1 %v3494_v3  ;;  %5898 = vmatprep.mubr.msk.f32.mxu1 %vm2297_vm5, %v5000_v8  ;;  %v3929_v8 = vld [vmem:[%s7702_s24 + $0x38] sm:$0xff] }
0x11dd   :  { %6452 = vmatprep.subr.bf16.mxu1 %v6868_v51 }
0x11e3   :  { %5899 = vmatmul.mubr.msk.f32.vlgmr.msra.gmra.mrb[40].mxu1 %vm2297_vm5, %v5001_v9  ;;  %v6494_v9 = vpack.c.bf16 %v3929_v8, %v3928_v7 }
0x11e4   :  { %6454 = vmatpush3.bf16.msra.mxu1 %v7168_v34  ;;  %5940 = vmatprep.mubr.msk.f32.mxu1 %vm6869_vm2, %v6870_v20 }
0x11e5   :  { %6455 = vmatprep.subr.bf16.mxu1 %v6868_v51 }
0x12b6   :  { %v5900_v11 = vpop.f32.mrb[40].mxu1 }
0x12b7   :  { %v3573_v12 = vpop.f32.mrb[41].mxu1 }
0x12b8   :  { %v3586_v14 = vadd.f32 %v5900_v11, %v3573_v12 }
0x12ba   :  { %v3587_v15 = vrot.slane %v3586_v14, 4 }
0x12bc   :  { %v3588_v17 = vadd.f32 %v3587_v15, %v3586_v14  ;;  %v3932_v15 = vld [vmem:[%s7702_s24 + $0x50] sm:$0xff] }
0x12be   :  { %v3589_v18 = vrot.slane %v3588_v17, 2 }
0x12c0   :  { %v3590_v22 = vadd.f32 %v3589_v18, %v3588_v17  ;;  %v3933_v17 = vld [vmem:[%s7702_s24 + $0x58] sm:$0xff] }
0x12c1   :  { %v6502_v18 = vpack.c.bf16 %v3933_v17, %v3932_v15  ;;  %v4013_v15 = vld [vmem:[%s7705_s12] sm:$0xff]  ;;  %v4014_v17 = vld [vmem:[%s7705_s12 + $0x8] sm:$0xff] }
0x12c2   :  { %v3591_v44 = vrot.slane %v3590_v22, 1 }
0x12c4   :  { %v3592_v45 = vadd.f32 %v3591_v44, %v3590_v22  ;;  %v5020_v22 = vld [vmem:[%s7702_s24 + $0xe0] sm:$0xff]  ;;  %v5021_v44 = vld [vmem:[%s7702_s24 + $0xe8] sm:$0xff] }
0x12c6   :  { %5934 = vmatmul.mubr.f32.vlgmr.msra.gmra.mrb[36].mxu0 %v3592_v45  ;;  %v6538_v45 = vpack.c.bf16 %v5021_v44, %v5020_v22  ;;  %v4016_v22 = vld [vmem:[%s7705_s12 + $0x18] sm:$0xff]  ;;  %v5052_v44 = vld [vmem:[%s7705_s12 + $0x40] sm:$0xff] }
0x12c7   :  { %6481 = vmatpush3.bf16.msra.mxu0 %v7168_v34  ;;  %5982 = vmatprep.mubr.msk.f32.mxu0 %vm6869_vm2, %v6870_v20 }
0x12c8   :  { %6483 = vmatprep.subr.bf16.mxu0 %v6482_v37 }
0x1399   :  { %v3659_v23 = vpop.f32.mrb[36].mxu0 }
0x139a   :  { %v3663_v24 = vmul.f32 0.0078125, %v3659_v23  ;;  %v5935_v25 = vpop.f32.mrb[37].mxu0  ;;  %v3934_v23 = vld [vmem:[%s7702_s24 + $0x60] sm:$0xff] }
0x139c   :  { %5941 = vmatmul.mubr.msk.f32.vlgmr.msra.gmra.mrb[42].mxu1 %vm134_vm0, %v3663_v24  ;;  %v3935_v24 = vld [vmem:[%s7702_s24 + $0x68] sm:$0xff] }
0x139d   :  { %6457 = vmatpush3.bf16.msra.mxu1 %v7112_v52  ;;  %5975 = vmatprep.mubr.msk.f32.mxu1 %vm6869_vm2, %v6870_v20  ;;  %v6506_v25 = vpack.c.bf16 %v3935_v24, %v3934_v23  ;;  %v5061_v23 = vld [vmem:[%s7702_s24 + $0x188] sm:$0xff] }
0x139e   :  { %6458 = vmatprep.subr.bf16.mxu1 %v6868_v51 }
0x13a1   :  { %6460 = vmatpush3.bf16.msra.mxu1 %v7116_v54 }
0x13a2   :  { %6461 = vmatprep.subr.bf16.mxu1 %v6868_v51 }
0x13a5   :  { %6463 = vmatpush3.bf16.msra.mxu1 %v7122_v57 }
0x13a6   :  { %6464 = vmatprep.subr.bf16.mxu1 %v6868_v51 }
0x13a9   :  { %6466 = vmatpush3.bf16.msra.mxu1 %v7128_v60 }
0x13aa   :  { %6467 = vmatprep.subr.bf16.mxu1 %v6868_v51 }
0x13ad   :  { %6469 = vmatpush3.bf16.msra.mxu1 %v7138_v10 }
0x13ae   :  { %6470 = vmatprep.subr.bf16.mxu1 %v6868_v51 }
0x13b1   :  { %6472 = vmatpush3.bf16.msra.mxu1 %v7144_v13 }
0x13b2   :  { %6473 = vmatprep.subr.bf16.mxu1 %v6868_v51 }
0x13b5   :  { %6475 = vmatpush3.bf16.msra.mxu1 %v7150_v16 }
0x13b6   :  { %6476 = vmatprep.subr.bf16.mxu1 %v6868_v51 }
0x13b9   :  { %6478 = vmatpush3.bf16.msra.mxu1 %v7156_v19 }
0x13ba   :  { %6515 = vmatprep.subr.bf16.mxu1 %v6514_v32 }
0x146f   :  { %v3733_v52 = vpop.f32.mrb[42].mxu1 }
0x1470   :  { %v3740_v54 = vrot.slane %v3733_v52, %v7191_v40  ;;  %v5942_v57 = vpop.f32.mrb[43].mxu1  ;;  %v5022_v52 = vld [vmem:[%s7702_s24 + $0xf0] sm:$0xff] }
0x1472   :  { %v7502_v60 = vsub.f32 %v3573_v12, %v3740_v54  ;;  %v7504_v10 = vsub.f32 %v5900_v11, %v3740_v54  ;;  %v3930_v11 = vld [vmem:[%s7702_s24 + $0x40] sm:$0xff]  ;;  %v3931_v12 = vld [vmem:[%s7702_s24 + $0x48] sm:$0xff]  ;;  %v5023_v54 = vld [vmem:[%s7702_s24 + $0xf8] sm:$0xff] }
0x1473   :  { %v6498_v14 = vpack.c.bf16 %v3931_v12, %v3930_v11  ;;  %v6542_v57 = vpack.c.bf16 %v5023_v54, %v5022_v52  ;;  %v5025_v11 = vld [vmem:[%s7705_s12 + $0x28] sm:$0xff]  ;;  %v5026_v12 = vld [vmem:[%s7705_s12 + $0x30] sm:$0xff] }
0x1474   :  { %v3743_v13 = vmul.f32 %v7502_v60, %v7502_v60  ;;  %v3744_v51 = vmul.f32 %v7504_v10, %v7504_v10 }
0x1476   :  { %v3745_v16 = vadd.f32 %v3744_v51, %v3743_v13  ;;  %v3936_v13 = vld [vmem:[%s7702_s24 + $0x70] sm:$0xff]  ;;  %v3937_v51 = vld [vmem:[%s7702_s24 + $0x78] sm:$0xff] }
0x1478   :  { %v3746_v19 = vrot.slane %v3745_v16, 4 }
0x147a   :  { %v3747_v20 = vadd.f32 %v3746_v19, %v3745_v16  ;;  %v6510_v16 = vpack.c.bf16 %v3937_v51, %v3936_v13  ;;  %v5036_v19 = vld [vmem:[%s7702_s24 + $0x100] sm:$0xff]  ;;  %v5063_v13 = vld [vmem:[%s7702_s24 + $0x198] sm:$0xff]  ;;  %v5053_v51 = vld [vmem:[%s7705_s12 + $0x48] sm:$0xff] }
0x147c   :  { %v3748_v34 = vrot.slane %v3747_v20, 2 }
0x147e   :  { %v3749_v21 = vadd.f32 %v3748_v34, %v3747_v20  ;;  %v5037_v20 = vld [vmem:[%s7702_s24 + $0x108] sm:$0xff] }
0x147f   :  { %v6554_v34 = vpack.c.bf16 %v5037_v20, %v5036_v19  ;;  %v5064_v20 = vld [vmem:[%s7702_s24 + $0x1a0] sm:$0xff] }
0x1480   :  { %v3750_v27 = vrot.slane %v3749_v21, 1 }
0x1482   :  { %v3751_v28 = vadd.f32 %v3750_v27, %v3749_v21 }
0x1484   :  { %5976 = vmatmul.mubr.f32.vlgmr.msra.gmra.mrb[44].mxu1 %v3751_v28 }
0x1485   :  { %6517 = vmatpush3.bf16.msra.mxu1 %v6514_v32  ;;  %v5007_v32 = vld [vmem:[%s7704_s6] ss:$0 sm:$0xff] }
0x1486   :  { %6519 = vmatprep.subr.bf16.mxu1 %v6518_v38 }
0x1489   :  { %6521 = vmatpush3.bf16.msra.mxu1 %v6518_v38  ;;  %v5038_v38 = vld [vmem:[%s7702_s24 + $0x110] sm:$0xff] }
0x148a   :  { %6523 = vmatprep.subr.bf16.mxu1 %v6522_v42 }
0x148d   :  { %6525 = vmatpush3.bf16.msra.mxu1 %v6522_v42  ;;  %v6558_v42 = vpack.c.bf16 %v5039_v39, %v5038_v38  ;;  %v5072_v38 = vld [vmem:[%s7702_s24 + $0x1e0] sm:$0xff]  ;;  %v5073_v39 = vld [vmem:[%s7702_s24 + $0x1e8] sm:$0xff] }
0x148e   :  { %6527 = vmatprep.subr.bf16.mxu1 %v6526_v48 }
0x1491   :  { %6529 = vmatpush3.bf16.msra.mxu1 %v6526_v48  ;;  %v5043_v48 = vld [vmem:[%s7702_s24 + $0x138] sm:$0xff] }
0x1492   :  { %6531 = vmatprep.subr.bf16.mxu1 %v6530_v53  ;;  %v6566_v49 = vpack.c.bf16 %v5043_v48, %v5042_v47 }
0x1495   :  { %6533 = vmatpush3.bf16.msra.mxu1 %v6530_v53  ;;  %v5045_v53 = vld [vmem:[%s7702_s24 + $0x148] sm:$0xff] }
0x1496   :  { %6535 = vmatprep.subr.bf16.mxu1 %v6534_v58  ;;  %v6570_v55 = vpack.c.bf16 %v5045_v53, %v5044_v50  ;;  %v5077_v50 = vld [vmem:[%s7705_s12 + $0x68] sm:$0xff]  ;;  %v5078_v53 = vld [vmem:[%s7705_s12 + $0x70] sm:$0xff] }
0x1499   :  { %6537 = vmatpush3.bf16.msra.mxu1 %v6534_v58  ;;  %v5047_v58 = vld [vmem:[%s7702_s24 + $0x158] sm:$0xff] }
0x149a   :  { %6539 = vmatprep.subr.bf16.mxu1 %v6538_v45 }
0x149d   :  { %6541 = vmatpush3.bf16.msra.mxu1 %v6538_v45  ;;  %v5060_v45 = vld [vmem:[%s7702_s24 + $0x180] sm:$0xff] }
0x149e   :  { %6543 = vmatprep.subr.bf16.mxu1 %v6542_v57  ;;  %v6590_v54 = vpack.c.bf16 %v5061_v23, %v5060_v45 }
0x14a1   :  { %6545 = vmatpush3.bf16.msra.mxu1 %v6542_v57  ;;  %v5062_v57 = vld [vmem:[%s7702_s24 + $0x190] sm:$0xff] }
0x14a2   :  { %6555 = vmatprep.subr.bf16.mxu1 %v6554_v34  ;;  %v6594_v19 = vpack.c.bf16 %v5063_v13, %v5062_v57 }
0x1557   :  { %v3818_v59 = vpop.f32.mrb[44].mxu1 }
0x1558   :  { %v3822_v61 = vmul.f32 0.0078125, %v3818_v59  ;;  %v5977_v62 = vpop.f32.mrb[45].mxu1  ;;  %v6574_v59 = vpack.c.bf16 %v5047_v58, %v5046_v56 }
0x1559   :  { %v5049_v62 = vld [vmem:[%s7702_s24 + $0x168] sm:$0xff] }
0x155a   :  { %v3823_v63 = vadd.f32 1e-05, %v3822_v61  ;;  %v5048_v61 = vld [vmem:[%s7702_s24 + $0x160] sm:$0xff] }
0x155c   :  { %6707 = vrsqrt.f32 %v3823_v63  ;;  %v6578_v63 = vpack.c.bf16 %v5049_v62, %v5048_v61 }
0x1566   :  { %v6708_v3 = vpop.eup %6707 }
0x1567   :  { %5983 = vmatmul.mubr.msk.f32.vlgmr.msra.gmra.mrb[38].mxu0 %vm134_vm0, %v6708_v3  ;;  %v5024_v3 = vld [vmem:[%s7705_s12 + $0x20] sm:$0xff] }
0x1568   :  { %6485 = vmatpush3.bf16.msra.mxu0 %v6482_v37 }
0x1569   :  { %6487 = vmatprep.subr.bf16.mxu0 %v6486_v2 }
0x156c   :  { %6489 = vmatpush3.bf16.msra.mxu0 %v6486_v2  ;;  %v6582_v2 = vpack.c.bf16 %v5051_v1, %v5050_v0 }
0x156d   :  { %6491 = vmatprep.subr.bf16.mxu0 %v6490_v6 }
0x1570   :  { %6493 = vmatpush3.bf16.msra.mxu0 %v6490_v6 }
0x1571   :  { %6495 = vmatprep.subr.bf16.mxu0 %v6494_v9 }
0x1574   :  { %6497 = vmatpush3.bf16.msra.mxu0 %v6494_v9 }
0x1575   :  { %6499 = vmatprep.subr.bf16.mxu0 %v6498_v14 }
0x1578   :  { %6501 = vmatpush3.bf16.msra.mxu0 %v6498_v14  ;;  %v5027_v14 = vld [vmem:[%s7705_s12 + $0x38] sm:$0xff] }
0x1579   :  { %6503 = vmatprep.subr.bf16.mxu0 %v6502_v18 }
0x157c   :  { %6505 = vmatpush3.bf16.msra.mxu0 %v6502_v18  ;;  %v4015_v18 = vld [vmem:[%s7705_s12 + $0x10] sm:$0xff] }
0x157d   :  { %6507 = vmatprep.subr.bf16.mxu0 %v6506_v25 }
0x1580   :  { %6509 = vmatpush3.bf16.msra.mxu0 %v6506_v25 }
0x1581   :  { %6511 = vmatprep.subr.bf16.mxu0 %v6510_v16 }
0x1584   :  { %6513 = vmatpush3.bf16.msra.mxu0 %v6510_v16  ;;  %v5054_v16 = vld [vmem:[%s7705_s12 + $0x50] sm:$0xff] }
0x163a   :  { %v3894_v21 = vpop.f32.mrb[38].mxu0 }
0x163b   :  { %v3901_v27 = vrot.slane %v3894_v21, %v7191_v40  ;;  %v5984_v28 = vpop.f32.mrb[39].mxu0  ;;  %v5055_v21 = vld [vmem:[%s7705_s12 + $0x58] sm:$0xff] }
0x163c   :  { %v5066_v28 = vld [vmem:[%s7702_s24 + $0x1b0] sm:$0xff] }
0x163d   :  { %v3902_v30 = vmul.f32 %v3901_v27, %v7502_v60  ;;  %v3903_v31 = vmul.f32 %v3901_v27, %v7504_v10  ;;  %v5040_v60 = vld [vmem:[%s7702_s24 + $0x120] sm:$0xff]  ;;  %v5041_v10 = vld [vmem:[%s7702_s24 + $0x128] sm:$0xff] }
0x163e   :  { %v6562_v46 = vpack.c.bf16 %v5041_v10, %v5040_v60  ;;  %v5075_v60 = vld [vmem:[%s7702_s24 + $0x1f8] sm:$0xff] }
0x163f   :  { %v3910_v33 = vmul.f32 %v5006_v29, %v3902_v30  ;;  %v3911_v35 = vmul.f32 %v5006_v29, %v3903_v31  ;;  %v5067_v29 = vld [vmem:[%s7702_s24 + $0x1b8] sm:$0xff]  ;;  %v5068_v31 = vld [vmem:[%s7702_s24 + $0x1c0] sm:$0xff] }
0x1640   :  { %v6602_v30 = vpack.c.bf16 %v5067_v29, %v5066_v28 }
0x1641   :  { %v3918_v36 = vadd.f32 %v5007_v32, %v3910_v33  ;;  %v3919_v37 = vadd.f32 %v5007_v32, %v3911_v35  ;;  %v5069_v32 = vld [vmem:[%s7702_s24 + $0x1c8] sm:$0xff]  ;;  %v5070_v35 = vld [vmem:[%s7702_s24 + $0x1d0] sm:$0xff] }
0x1642   :  { %v6606_v33 = vpack.c.bf16 %v5069_v32, %v5068_v31 }
0x1643   :  { %v7552_v41 = vmax.f32 %v3918_v36, 0.0  ;;  %v7554_v40 = vmax.f32 %v3919_v37, 0.0  ;;  %v5071_v36 = vld [vmem:[%s7702_s24 + $0x1d8] sm:$0xff] }
0x1644   :  { %v6610_v37 = vpack.c.bf16 %v5071_v36, %v5070_v35 }
0x1645   :  { %6017 = vmatprep.mubr.f32.mxu0 %v7552_v41  ;;  %6052 = vmatprep.mubr.f32.mxu1 %v7552_v41 }
0x1646   :  { %6018 = vmatmul.mubr.f32.vlgmr.msra.gmra.mrb[40].mxu0 %v7554_v40  ;;  %6053 = vmatmul.mubr.f32.vlgmr.msra.gmra.mrb[46].mxu1 %v7554_v40 }
0x1647   :  { %6557 = vmatpush3.bf16.msra.mxu1 %v6554_v34  ;;  %6107 = vmatprep.mubr.f32.mxu1 %v7552_v41  ;;  %v5065_v34 = vld [vmem:[%s7702_s24 + $0x1a8] sm:$0xff] }
0x1648   :  { %6559 = vmatprep.subr.bf16.mxu1 %v6558_v42  ;;  %6059 = vmatprep.mubr.msk.f32.mxu0 %vm134_vm0, %v5024_v3  ;;  %v6598_v27 = vpack.c.bf16 %v5065_v34, %v5064_v20  ;;  %v6717_v3 = vld [vmem:[%s6887_s5 + $0x8] sm:$0xff] }
0x164b   :  { %6561 = vmatpush3.bf16.msra.mxu1 %v6558_v42  ;;  %v5074_v42 = vld [vmem:[%s7702_s24 + $0x1f0] sm:$0xff] }
0x164c   :  { %6563 = vmatprep.subr.bf16.mxu1 %v6562_v46  ;;  %v6618_v10 = vpack.c.bf16 %v5075_v60, %v5074_v42 }
0x164f   :  { %6565 = vmatpush3.bf16.msra.mxu1 %v6562_v46  ;;  %v5076_v46 = vld [vmem:[%s7705_s12 + $0x60] sm:$0xff] }
0x1650   :  { %6567 = vmatprep.subr.bf16.mxu1 %v6566_v49 }
0x1653   :  { %6569 = vmatpush3.bf16.msra.mxu1 %v6566_v49 }
0x1654   :  { %6571 = vmatprep.subr.bf16.mxu1 %v6570_v55 }
0x1657   :  { %6573 = vmatpush3.bf16.msra.mxu1 %v6570_v55  ;;  %v5079_v55 = vld [vmem:[%s7705_s12 + $0x78] sm:$0xff] }
0x1658   :  { %6575 = vmatprep.subr.bf16.mxu1 %v6574_v59 }
0x165b   :  { %6577 = vmatpush3.bf16.msra.mxu1 %v6574_v59 }
0x165c   :  { %6579 = vmatprep.subr.bf16.mxu1 %v6578_v63 }
0x165f   :  { %6581 = vmatpush3.bf16.msra.mxu1 %v6578_v63 }
0x1660   :  { %6583 = vmatprep.subr.bf16.mxu1 %v6582_v2 }
0x1663   :  { %6585 = vmatpush3.bf16.msra.mxu1 %v6582_v2 }
0x1666   :  { %6108 = vmatmul.mubr.f32.vlgmr.msra.gmra.mrb[48].mxu1 %v7554_v40 }
0x1719   :  { %v6019_v4 = vpop.f32.mrb[40].mxu0  ;;  %v6054_v5 = vpop.f32.mrb[46].mxu1 }
0x171a   :  { %v4004_v6 = vpop.f32.mrb[41].mxu0  ;;  %v4100_v7 = vpop.f32.mrb[47].mxu1 }
0x171b   :  { %v6550_v8 = vpack.c.bf16 %v6019_v4, %v4004_v6  ;;  %v6546_v9 = vpack.c.bf16 %v6054_v5, %v4100_v7  ;;  %v6718_v5 = vld [vmem:[%s6887_s5] sm:$0xff] }
0x171d   :  { %6547 = vmatprep.subr.bf16.mxu0 %v6546_v9 }
0x171e   :  { %6549 = vmatpush3.bf16.msra.mxu0 %v6546_v9 }
0x171f   :  { %6551 = vmatprep.subr.bf16.mxu0 %v6550_v8 }
0x1721   :  { %6060 = vmatmul.mubr.msk.f32.vlgmr.msra.gmra.mrb[42].mxu0 %vm134_vm0, %v5025_v11 }
0x1722   :  { %6553 = vmatpush3.bf16.msra.mxu0 %v6550_v8  ;;  %6062 = vmatprep.mubr.msk.f32.mxu0 %vm134_vm0, %v5026_v12 }
0x1725   :  { %6063 = vmatmul.mubr.msk.f32.gmra.mrb[44].mxu0 %vm134_vm0, %v5027_v14 }
0x1726   :  { %6069 = vmatprep.mubr.msk.f32.mxu0 %vm134_vm0, %v4013_v15  ;;  %v6720_v15 = vld [vmem:[%s6887_s5 + $0x10] sm:$0xff] }
0x1729   :  { %6070 = vmatmul.mubr.msk.f32.vlgmr.msra.gmra.mrb[42].mxu0 %vm134_vm0, %v4014_v17 }
0x172a   :  { %6072 = vmatprep.mubr.msk.f32.mxu0 %vm134_vm0, %v4015_v18 }
0x172d   :  { %6073 = vmatmul.mubr.msk.f32.gmra.mrb[44].mxu0 %vm134_vm0, %v4016_v22 }
0x172e   :  { %6114 = vmatprep.mubr.msk.f32.mxu0 %vm134_vm0, %v5052_v44 }
0x1739   :  { %v6109_v24 = vpop.f32.mrb[48].mxu1 }
0x173a   :  { %v4391_v25 = vpop.f32.mrb[49].mxu1 }
0x173b   :  { %v6586_v52 = vpack.c.bf16 %v6109_v24, %v4391_v25 }
0x173d   :  { %6587 = vmatprep.subr.bf16.mxu0 %v6586_v52 }
0x173e   :  { %6589 = vmatpush3.bf16.msra.mxu0 %v6586_v52 }
0x173f   :  { %6591 = vmatprep.subr.bf16.mxu0 %v6590_v54 }
0x1741   :  { %6115 = vmatmul.mubr.msk.f32.vlgmr.msra.gmra.mrb[42].mxu0 %vm134_vm0, %v5053_v51 }
0x1742   :  { %6593 = vmatpush3.bf16.msra.mxu0 %v6590_v54  ;;  %6117 = vmatprep.mubr.msk.f32.mxu0 %vm134_vm0, %v5054_v16 }
0x1743   :  { %6595 = vmatprep.subr.bf16.mxu0 %v6594_v19 }
0x1745   :  { %6118 = vmatmul.mubr.msk.f32.gmra.mrb[44].mxu0 %vm134_vm0, %v5055_v21 }
0x1746   :  { %6597 = vmatpush3.bf16.msra.mxu0 %v6594_v19  ;;  %6152 = vmatprep.mubr.f32.mxu0 %v7552_v41  ;;  %v6614_v41 = vpack.c.bf16 %v5073_v39, %v5072_v38 }
0x1747   :  { %6599 = vmatprep.subr.bf16.mxu0 %v6598_v27 }
0x174a   :  { %6601 = vmatpush3.bf16.msra.mxu0 %v6598_v27 }
0x174b   :  { %6603 = vmatprep.subr.bf16.mxu0 %v6602_v30 }
0x174e   :  { %6605 = vmatpush3.bf16.msra.mxu0 %v6602_v30 }
0x174f   :  { %6607 = vmatprep.subr.bf16.mxu0 %v6606_v33 }
0x1752   :  { %6609 = vmatpush3.bf16.msra.mxu0 %v6606_v33 }
0x1753   :  { %6611 = vmatprep.subr.bf16.mxu0 %v6610_v37 }
0x1756   :  { %6613 = vmatpush3.bf16.msra.mxu0 %v6610_v37 }
0x1757   :  { %6615 = vmatprep.subr.bf16.mxu0 %v6614_v41 }
0x175a   :  { %6617 = vmatpush3.bf16.msra.mxu0 %v6614_v41 }
0x175b   :  { %6619 = vmatprep.subr.bf16.mxu0 %v6618_v10 }
0x175e   :  { %6621 = vmatpush3.bf16.msra.mxu0 %v6618_v10 }
0x1761   :  { %6153 = vmatmul.mubr.f32.vlgmr.msra.gmra.mrb[46].mxu0 %v7554_v40 }
0x1762   :  { %6159 = vmatprep.mubr.msk.f32.mxu0 %vm134_vm0, %v5076_v46 }
0x1834   :  { %v6154_v47 = vpop.f32.mrb[46].mxu0 }
0x1835   :  { %v4589_v48 = vpop.f32.mrb[47].mxu0 }
0x1836   :  { %v6622_v49 = vpack.c.bf16 %v6154_v47, %v4589_v48 }
0x1838   :  { %6623 = vmatprep.subr.bf16.mxu0 %v6622_v49 }
0x1839   :  { %6625 = vmatpush3.bf16.msra.mxu0 %v6622_v49 }
0x183c   :  { %6160 = vmatmul.mubr.msk.f32.vlgmr.msra.gmra.mrb[42].mxu0 %vm134_vm0, %v5077_v50 }
0x183d   :  { %6162 = vmatprep.mubr.msk.f32.mxu0 %vm134_vm0, %v5078_v53 }
0x1840   :  { %6163 = vmatmul.mubr.msk.f32.gmra.mrb[44].mxu0 %vm134_vm0, %v5079_v55 }
0x190f   :  { %v6161_v56 = vpop.f32.mrb[42].mxu0 }
0x1910   :  { %v4715_v40 = vadd.f32 %v6161_v56, %v7418_v26  ;;  %v4681_v58 = vpop.f32.mrb[43].mxu0 }
0x1911   :  { %v4714_v59 = vadd.f32 %v7418_v26, %v4681_v58 }
0x1912   :  { %6709 = vtanh.f32 %v4715_v40 }
0x1913   :  { %6711 = vtanh.f32 %v4714_v59  ;;  %v6164_v61 = vpop.f32.mrb[44].mxu0 }
0x1914   :  { %v4717_v62 = vadd.f32 %v6164_v61, %v7418_v26  ;;  %v4691_v63 = vpop.f32.mrb[45].mxu0 }
0x1915   :  { %v4716_v0 = vadd.f32 %v7418_v26, %v4691_v63  ;;  %v6719_v26 = vld [vmem:[%s6887_s5 + $0x18] sm:$0xff] }
0x1916   :  { %6713 = vtanh.f32 %v4717_v62 }
0x1917   :  { %6715 = vtanh.f32 %v4716_v0 }
0x191c   :  { %v6710_v1 = vpop.eup %6709 }
0x191d   :  { %v6712_v2 = vpop.eup %6711  ;;  %4723 = vst.msk [vmem:[#allocation3 + $0x8] sm:$0xff] %vm134_vm0, %v6710_v1  ;;  %v4727_v4 = vsub.f32 %v6710_v1, %v6717_v3 }
0x191e   :  { %4722 = vst.msk [vmem:[#allocation3] sm:$0xff] %vm134_vm0, %v6712_v2  ;;  %v4726_v6 = vsub.f32 %v6712_v2, %v6718_v5 }
0x191f   :  { %v4731_v7 = vmul.f32 %v4727_v4, %v4727_v4 }
0x1920   :  { %v6714_v8 = vpop.eup %6713  ;;  %v4730_v9 = vmul.f32 %v4726_v6, %v4726_v6 }
0x1921   :  { %v6716_v11 = vpop.eup %6715  ;;  %4725 = vst.msk [vmem:[#allocation3 + $0x18] sm:$0xff] %vm134_vm0, %v6714_v8  ;;  %v4729_v12 = vsub.f32 %v6714_v8, %v6719_v26  ;;  %v4735_v14 = vsel %vm134_vm0, %v4731_v7, 0.0 }
0x1922   :  { %4724 = vst.msk [vmem:[#allocation3 + $0x10] sm:$0xff] %vm134_vm0, %v6716_v11  ;;  %v4728_v17 = vsub.f32 %v6716_v11, %v6720_v15  ;;  %v4734_v18 = vsel %vm134_vm0, %v4730_v9, 0.0 }
0x1923   :  { %v4736_v22 = vadd.f32 %v4735_v14, %v4734_v18  ;;  %v4733_v45 = vmul.f32 %v4729_v12, %v4729_v12 }
0x1924   :  { %v4732_v44 = vmul.f32 %v4728_v17, %v4728_v17 }
0x1925   :  { %v4739_v25 = vsel %vm134_vm0, %v4733_v45, 0.0 }
0x1926   :  { %v4737_v23 = vsel %vm134_vm0, %v4732_v44, 0.0 }
0x1927   :  { %v4738_v24 = vadd.f32 %v4737_v23, %v4736_v22 }
0x1929   :  { %v4740_v52 = vadd.f32 %v4739_v25, %v4738_v24 }
0x192b   :  { %4741 = vadd.xlane.f32.xlu1 %v4740_v52 }
0x192c   :  { %6732 = shalt.err (!%p6729_p4)
}
0x192d   :  { %s6733_s5 = scalar_lea.hbm %s7035_s8, 16 }
0x192e   :  { %p6734_p5 = scmp.ne.s32.totalorder %s7035_s8, %s6733_s5  ;;  %p6737_p6 = scmp.lt.u32.totalorder %s6733_s5, %s7035_s8 }
0x1930   :  { %p6739_p7 = pnand %p6737_p6, %p6734_p5 }
0x1932   :  { %6742 = shalt.err (!%p6739_p7)
}
0x1933   :  { %4799 = dma.vmem_to_hbm [thread:$0]  %s4797_s22, 16, %s7035_s8, [#allocation9]  }
0x1934   :  { %s6873_s28 = smov [#allocation3]  }
0x1935   :  { %s4763_s2 = sshll.u32 %s6873_s28, 4  ;;  %s4764_s2 = int_to_ptr.vmem [resolvable:$true] %s4763_s2 }
0x1936   :  { %s6743_s10 = scalar_lea.vmem %s4764_s2, 512  ;;  %p6748_p9 = scmp.lt.s32.totalorder %s4764_s2, %s4764_s2 }
0x1937   :  { %p6744_p8 = scmp.ne.s32.totalorder %s4764_s2, %s6743_s10  ;;  %p6749_p10 = scmp.lt.s32.totalorder %s6743_s10, %s6743_s10 }
0x1939   :  { %p6750_p11 = por %p6749_p10, %p6748_p9 }
0x193b   :  { %p6751_p12 = pnand %p6750_p11, %p6744_p8 }
0x193d   :  { %6754 = shalt.err (!%p6751_p12)
}
0x193e   :  { %s7706_s7 = sld [smem:[#allocation27_spill]] }
0x1944   :  { %s6755_s11 = scalar_lea.hbm %s7706_s7, 512 }
0x1945   :  { %p6756_p13 = scmp.ne.s32.totalorder %s7706_s7, %s6755_s11  ;;  %p6759_p0 = scmp.lt.u32.totalorder %s6755_s11, %s7706_s7 }
0x1947   :  { %p6761_p1 = pnand %p6759_p0, %p6756_p13 }
0x1949   :  { %6764 = shalt.err (!%p6761_p1)
}
0x194a   :  { %s6874_s16 = smov 128   ;;  %s6875_s8 = smov 8  }
0x194b   :  { %4769 = dma.vmem_to_hbm [thread:$0]  %s4764_s2, 512, %s7706_s7, [#allocation4], %s6874_s16, %s6874_s16, %s6875_s8  }
0x194c   :  { %s6876_s15 = smov [#allocation10]  }
0x194d   :  { %s4806_s18 = sshll.u32 %s6876_s15, 4  ;;  %s4807_s18 = int_to_ptr.vmem [resolvable:$true] %s4806_s18 }
0x194e   :  { %s6765_s0 = scalar_lea.vmem %s4807_s18, 16  ;;  %s6769_s9 = scalar_lea.vmem %s4807_s18, 32 }
0x194f   :  { %p6766_p2 = scmp.ne.s32.totalorder %s4807_s18, %s6765_s0  ;;  %p6770_p3 = scmp.lt.s32.totalorder %s4807_s18, %s4807_s18 }
0x1950   :  { %p6771_p4 = scmp.lt.s32.totalorder %s6769_s9, %s6765_s0 }
0x1952   :  { %p6772_p5 = por %p6771_p4, %p6770_p3 }
0x1954   :  { %p6773_p6 = pnand %p6772_p5, %p6766_p2 }
0x1956   :  { %6776 = shalt.err (!%p6773_p6)
}
0x1957   :  { %s6777_s13 = scalar_lea.hbm %s7040_s20, 16 }
0x1958   :  { %p6778_p7 = scmp.ne.s32.totalorder %s7040_s20, %s6777_s13  ;;  %p6781_p8 = scmp.lt.u32.totalorder %s6777_s13, %s7040_s20 }
0x195a   :  { %p6783_p9 = pnand %p6781_p8, %p6778_p7 }
0x195c   :  { %6786 = shalt.err (!%p6783_p9)
}
0x195d   :  { %4809 = dma.vmem_to_hbm [thread:$0]  %s4807_s18, 16, %s7040_s20, [#allocation9]   ;;  %v2868_v34 = vmul.f32 0.2, %v7423_v43 }
0x195e   :  { %s6877_s21 = smov [#allocation5]   ;;  %s6878_s29 = smov [#allocation7]  }
0x195f   :  { %s4776_s25 = sshll.u32 %s6877_s21, 4  ;;  %v2869_v27 = vadd.f32 %v2868_v34, %v7423_v43  ;;  %s4786_s3 = sshll.u32 %s6878_s29, 4  ;;  %s4777_s25 = int_to_ptr.vmem [resolvable:$true] %s4776_s25  ;;  %s7655_s3 = int_to_ptr.vmem [resolvable:$true] %s4786_s3 }
0x1960   :  { %s6787_s20 = scalar_lea.vmem %s4777_s25, 16  ;;  %s6791_s14 = scalar_lea.vmem %s4777_s25, 32 }
0x1961   :  { %p6788_p10 = scmp.ne.s32.totalorder %s4777_s25, %s6787_s20  ;;  %p6792_p11 = scmp.lt.s32.totalorder %s4777_s25, %s4777_s25 }
0x1962   :  { %p6793_p12 = scmp.lt.s32.totalorder %s6791_s14, %s6787_s20 }
0x1964   :  { %p6794_p13 = por %p6793_p12, %p6792_p11 }
0x1966   :  { %p6795_p0 = pnand %p6794_p13, %p6788_p10 }
0x19b8   :  { %v4742_v54 = vpop.xlane.xlu1 %4741 }
0x19b9   :  { %v4743_v57 = vrot.slane %v4742_v54, 4 }
0x19bb   :  { %v4744_v13 = vadd.f32 %v4743_v57, %v4742_v54 }
0x19bd   :  { %v4745_v51 = vrot.slane %v4744_v13, 2 }
0x19bf   :  { %v4746_v16 = vadd.f32 %v4745_v51, %v4744_v13 }
0x19c1   :  { %v4747_v19 = vrot.slane %v4746_v16, 1 }
0x19c3   :  { %v4748_v20 = vadd.f32 %v4747_v19, %v4746_v16 }
0x19c5   :  { %6658 = vpush %v4748_v20 }
0x19f6   :  { %s6659_s17 = spop %6658 }
0x19f7   :  { %v4750_v21 = vstv %s6659_s17 }
0x19f8   :  { %v4751_v28 = vmul.f32 0.001953125, %v4750_v21 }
0x19fa   :  { %v4752_v29 = vadd.f32 %v4751_v28, %v2869_v27  ;;  %4755 = vst.msk [vmem:[#allocation7] sm:$0x1] %vm4753_vm9, %v4751_v28 }
0x19fc   :  { %4754 = vst.msk [vmem:[#allocation5] sm:$0x1] %vm4753_vm9, %v4752_v29 }
0x19fd   :  { %6798 = shalt.err (!%p6795_p0)
}
0x19fe   :  { %s6799_s19 = scalar_lea.hbm %s7025_s27, 16 }
0x19ff   :  { %p6800_p1 = scmp.ne.s32.totalorder %s7025_s27, %s6799_s19  ;;  %p6803_p2 = scmp.lt.u32.totalorder %s6799_s19, %s7025_s27 }
0x1a01   :  { %p6805_p3 = pnand %p6803_p2, %p6800_p1 }
0x1a03   :  { %6808 = shalt.err (!%p6805_p3)
}
0x1a04   :  { %4779 = dma.vmem_to_hbm [thread:$0]  %s4777_s25, 16, %s7025_s27, [#allocation6]  }
0x1a05   :  { %s6809_s24 = scalar_lea.vmem %s7655_s3, 16  ;;  %s6813_s30 = scalar_lea.vmem %s7655_s3, 32 }
0x1a06   :  { %p6810_p4 = scmp.ne.s32.totalorder %s7655_s3, %s6809_s24  ;;  %p6814_p5 = scmp.lt.s32.totalorder %s7655_s3, %s7655_s3 }
0x1a07   :  { %p6815_p6 = scmp.lt.s32.totalorder %s6813_s30, %s6809_s24 }
0x1a09   :  { %p6816_p7 = por %p6815_p6, %p6814_p5 }
0x1a0b   :  { %p6817_p8 = pnand %p6816_p7, %p6810_p4 }
0x1a0d   :  { %6820 = shalt.err (!%p6817_p8)
}
0x1a0e   :  { %s6821_s6 = scalar_lea.hbm %s7030_s4, 16 }
0x1a0f   :  { %p6822_p9 = scmp.ne.s32.totalorder %s7030_s4, %s6821_s6  ;;  %p6825_p10 = scmp.lt.u32.totalorder %s6821_s6, %s7030_s4 }
0x1a11   :  { %p6827_p11 = pnand %p6825_p10, %p6822_p9 }
0x1a13   :  { %6830 = shalt.err (!%p6827_p11)
}
0x1a14   :  { %4789 = dma.vmem_to_hbm [thread:$0]  %s7655_s3, 16, %s7030_s4, [#allocation6]  }
0x1a15   :  { %6831 = dma.done.wait [#allocation4], 512  }
0x1a16   :  { %6832 = vsyncadd [#allocation4], 4294966784 }
0x1a17   :  { %6833 = dma.done.wait [#allocation6], 32  }
0x1a18   :  { %6834 = vsyncadd [#allocation6], 4294967264 }
0x1a19   :  { %6835 = dma.done.wait [#allocation9], 32  }
0x1a1a   :  { %6836 = vsyncadd [#allocation9], 4294967264 }
0x1a1b   :  { %4825 = vsyncpa [#allocation4], 1 }
0x1a1c   :  { %4826 = vsyncpa [#allocation6], 1 }
0x1a1d   :  { %4827 = vsyncpa [#allocation9], 1 }

</bundles_post_ra>
